<compile_context>
chip_gen: v6e
topology: v6e:2x2x1
jax: 0.10.0
libtpu: 0.0.40
codegen_flags: <defaults>
</compile_context>

<pallas_src>
import functools

import jax
import jax.numpy as jnp
import numpy as np
from jax.experimental import pallas as pl
from jax.experimental.pallas import tpu as pltpu

# ---- model config (small, consistent with the module's forward) ----
VOCAB_SIZE = 50          # synthetic stand-in for len(TEXT.vocab)
VOCAB_PAD = 128          # lane-dense one-hot width (rows >= VOCAB_SIZE are zero)
EMBEDDING_DIM = 100      # exactly the spec; only enters the host-side precompose
HIDDEN_DIM = 128
NUM_CLASSES = 5
NUM_CLASSES_PAD = 128    # lane-dense fc output slab; sliced to 5 outside
NUM_LAYERS = 2
SEQ_LEN = 8
BATCH = 8


def _lstm_cell(gates, c, hidden):
    """PyTorch LSTM cell update. gates: (B, 4H) f32 pre-activation (i,f,g,o)."""
    H = hidden
    i = jax.nn.sigmoid(gates[:, 0:H])
    f = jax.nn.sigmoid(gates[:, H:2 * H])
    g = jnp.tanh(gates[:, 2 * H:3 * H])
    o = jax.nn.sigmoid(gates[:, 3 * H:4 * H])
    c_new = f * c + i * g
    # carry h in bf16: the cast is fused here instead of sitting on the
    # matmul's critical path every step.
    h_new = (o * jnp.tanh(c_new)).astype(jnp.bfloat16)
    return h_new, c_new


def fused_rnn_kernel(tok_ref,        # (S*B, 1) int32 token ids
                     emb_proj_ref,   # (VOCAB_PAD, 4H) bf16 = embedding @ W_ih0
                     b0_ref,         # (1, 4H) f32  = b_ih0 + b_hh0
                     w_comb_ref,     # (2H, 8H) bf16 = [[W_hh0|W_ih1],[0|W_hh1]]
                     b1_ref,         # (1, 4H) f32  = b_ih1 + b_hh1
                     wfc_ref,        # (H, NUM_CLASSES_PAD) bf16
                     bfc_ref,        # (1, NUM_CLASSES_PAD) f32
                     out_ref,        # (B, NUM_CLASSES_PAD) f32
                     *, seq_len, batch, hidden):
    H = hidden
    SB = seq_len * batch

    # ---- fused embedding gather + layer-0 input projection (non-recurrent):
    # one-hot(tokens) @ (embedding @ W_ih0) == embedding-lookup @ W_ih0.
    lanes = jax.lax.broadcasted_iota(jnp.int32, (SB, VOCAB_PAD), 1)
    onehot = jnp.where(lanes == tok_ref[...], 1.0, 0.0).astype(jnp.bfloat16)
    xg0 = jnp.dot(onehot, emb_proj_ref[...],
                  preferred_element_type=jnp.float32) + b0_ref[...]   # (S*B, 4H)

    w_comb = w_comb_ref[...]          # hoisted load, (2H, 8H) bf16
    b1 = b1_ref[...]                  # (1, 4H) f32

    h0 = jnp.zeros((batch, H), jnp.bfloat16)
    h1 = jnp.zeros((batch, H), jnp.bfloat16)
    c0 = jnp.zeros((batch, H), jnp.float32)
    c1 = jnp.zeros((batch, H), jnp.float32)

    # super-step 0: layer-0 step 0 only (h0_{-1}=0 -> recurrent term is zero,
    # so no matmul is needed).
    h0, c0 = _lstm_cell(xg0[0:batch, :], c0, H)

    # super-steps 1..S: layer-0 step k interleaved with layer-1 step k-1.
    # Exactly one (B,2H)@(2H,8H) MXU matmul sits on the serial path per step:
    #   gg[:, :4H]  = h0_{k-1} @ W_hh0                      (layer-0 recurrent)
    #   gg[:, 4H:]  = h0_{k-1} @ W_ih1 + h1_{k-2} @ W_hh1   (layer-1 full gates)
    for k in range(1, seq_len + 1):
        lhs = jnp.concatenate([h0, h1], axis=-1)              # (B, 2H) bf16
        gg = jnp.dot(lhs, w_comb, preferred_element_type=jnp.float32)
        if k < seq_len:
            h0, c0 = _lstm_cell(
                xg0[k * batch:(k + 1) * batch, :] + gg[:, 0:4 * H], c0, H)
        h1, c1 = _lstm_cell(gg[:, 4 * H:8 * H] + b1, c1, H)

    # ---- fc on the last timestep's top-layer hidden state (out[-1, :, :]).
    out_ref[...] = jnp.dot(h1, wfc_ref[...],
                           preferred_element_type=jnp.float32) + bfc_ref[...]


def fused_forward(packed, tok_col):
    vmem = pl.BlockSpec(memory_space=pltpu.MemorySpace.VMEM)
    kernel = functools.partial(fused_rnn_kernel, seq_len=SEQ_LEN, batch=BATCH,
                               hidden=HIDDEN_DIM)
    out_pad = pl.pallas_call(
        kernel,
        out_shape=jax.ShapeDtypeStruct((BATCH, NUM_CLASSES_PAD), jnp.float32),
        in_specs=[vmem] * 7,
        out_specs=vmem,
    )(tok_col, packed["emb_proj"], packed["b0"], packed["w_comb"],
      packed["b1"], packed["w_fc"], packed["b_fc"])
    return out_pad[:, :NUM_CLASSES]


@jax.jit
def rnn_forward(packed, x_tokens):
    # (S, B) int32 -> time-major flattened (S*B, 1) column of token ids.
    tok_col = x_tokens.reshape(SEQ_LEN * BATCH, 1).astype(jnp.int32)
    return fused_forward(packed, tok_col)


# ---------------- Parameter init (deterministic, synthetic, f32 master) ----------------
def init_params(key):
    ks = jax.random.split(key, 1 + 3 * NUM_LAYERS + 2)
    params = {}
    params["embedding"] = jax.random.normal(
        ks[0], (VOCAB_SIZE, EMBEDDING_DIM), jnp.float32) * 0.1

    scale = 1.0 / float(np.sqrt(HIDDEN_DIM))
    k = 1
    for layer in range(NUM_LAYERS):
        in_dim = EMBEDDING_DIM if layer == 0 else HIDDEN_DIM
        # stored transposed relative to PyTorch: (in_dim, 4H) / (H, 4H)
        params[f"w_ih_{layer}"] = jax.random.uniform(
            ks[k], (in_dim, 4 * HIDDEN_DIM), jnp.float32, -scale, scale)
        params[f"w_hh_{layer}"] = jax.random.uniform(
            ks[k + 1], (HIDDEN_DIM, 4 * HIDDEN_DIM), jnp.float32, -scale, scale)
        # combined bias (b_ih + b_hh)
        params[f"b_{layer}"] = jax.random.uniform(
            ks[k + 2], (1, 4 * HIDDEN_DIM), jnp.float32, -scale, scale)
        k += 3
    params["w_fc"] = jax.random.uniform(
        ks[k], (HIDDEN_DIM, NUM_CLASSES), jnp.float32, -scale, scale)
    params["b_fc"] = jax.random.uniform(
        ks[k + 1], (1, NUM_CLASSES), jnp.float32, -scale, scale)
    return params


def pack_params(p):
    """Precompose / pack f32 master weights into the kernel's bf16 layout."""
    H = HIDDEN_DIM
    # embedding table precomposed with layer-0 input weights; rows >= vocab zero.
    emb_proj = jnp.zeros((VOCAB_PAD, 4 * H), jnp.float32)
    emb_proj = emb_proj.at[:VOCAB_SIZE].set(p["embedding"] @ p["w_ih_0"])
    # packed recurrent RHS: [[W_hh0 | W_ih1], [0 | W_hh1]]  -> (2H, 8H)
    top = jnp.concatenate([p["w_hh_0"], p["w_ih_1"]], axis=1)
    bot = jnp.concatenate([jnp.zeros((H, 4 * H), jnp.float32), p["w_hh_1"]],
                          axis=1)
    w_comb = jnp.concatenate([top, bot], axis=0)
    # lane-dense padded fc weights/bias (columns >= NUM_CLASSES are zero).
    w_fc_pad = jnp.zeros((H, NUM_CLASSES_PAD), jnp.float32)
    w_fc_pad = w_fc_pad.at[:, :NUM_CLASSES].set(p["w_fc"])
    b_fc_pad = jnp.zeros((1, NUM_CLASSES_PAD), jnp.float32)
    b_fc_pad = b_fc_pad.at[:, :NUM_CLASSES].set(p["b_fc"])
    return {
        "emb_proj": emb_proj.astype(jnp.bfloat16),
        "b0": p["b_0"],
        "w_comb": w_comb.astype(jnp.bfloat16),
        "b1": p["b_1"],
        "w_fc": w_fc_pad.astype(jnp.bfloat16),
        "b_fc": b_fc_pad,
    }


# ---------------- Pure-JAX f32 reference (PyTorch LSTM semantics) ----------------
def reference_forward(p, x_tokens):
    H = HIDDEN_DIM
    emb = jnp.take(p["embedding"], x_tokens, axis=0)        # (S, B, E)
    h = [jnp.zeros((BATCH, H), jnp.float32) for _ in range(NUM_LAYERS)]
    c = [jnp.zeros((BATCH, H), jnp.float32) for _ in range(NUM_LAYERS)]
    last = None
    for t in range(SEQ_LEN):
        x = emb[t]
        for l in range(NUM_LAYERS):
            gates = x @ p[f"w_ih_{l}"] + h[l] @ p[f"w_hh_{l}"] + p[f"b_{l}"]
            i = jax.nn.sigmoid(gates[:, 0:H])
            f = jax.nn.sigmoid(gates[:, H:2 * H])
            g = jnp.tanh(gates[:, 2 * H:3 * H])
            o = jax.nn.sigmoid(gates[:, 3 * H:4 * H])
            c[l] = f * c[l] + i * g
            h[l] = o * jnp.tanh(c[l])
            x = h[l]
        last = x
    return last @ p["w_fc"] + p["b_fc"]


if __name__ == "__main__":
    key = jax.random.PRNGKey(0)
    pkey, xkey = jax.random.split(key)
    params = init_params(pkey)
    packed = pack_params(params)
    x_tokens = jax.random.randint(xkey, (SEQ_LEN, BATCH), 0, VOCAB_SIZE,
                                  dtype=jnp.int32)

    out = rnn_forward(packed, x_tokens)
    jax.block_until_ready(out)
    assert out.shape == (BATCH, NUM_CLASSES)

    # correctness vs. f32 reference (kernel uses bf16 weights / bf16 h carry).
    ref = reference_forward(params, x_tokens)
    np.testing.assert_allclose(np.asarray(out), np.asarray(ref),
                               atol=3e-2, rtol=3e-2)
    print("KERNEL_OK")
</pallas_src>

<mosaic_0001>
module attributes {stable_mosaic.version = 11 : i64} {
  func.func @fused_rnn_kernel(%arg0: memref<64x1xi32, #tpu.memory_space<vmem>>, %arg1: memref<128x512xbf16, #tpu.memory_space<vmem>>, %arg2: memref<1x512xf32, #tpu.memory_space<vmem>>, %arg3: memref<256x1024xbf16, #tpu.memory_space<vmem>>, %arg4: memref<1x512xf32, #tpu.memory_space<vmem>>, %arg5: memref<128x128xbf16, #tpu.memory_space<vmem>>, %arg6: memref<1x128xf32, #tpu.memory_space<vmem>>, %arg7: memref<8x128xf32, #tpu.memory_space<vmem>>) attributes {dimension_semantics = [], scalar_prefetch = 0 : i64, scratch_operands = 0 : i64, tpu.core_type = #tpu.core_type<tc>} {
    %0 = tpu.iota {dimensions = array<i32: 1>} : vector<64x128xi32>
    %c0 = arith.constant 0 : index
    %c0_0 = arith.constant 0 : index
    %1 = vector.load %arg0[%c0, %c0_0] : memref<64x1xi32, #tpu.memory_space<vmem>>, vector<64x1xi32>
    %2 = vector.broadcast %1 : vector<64x1xi32> to vector<64x128xi32>
    %3 = arith.cmpi eq, %0, %2 : vector<64x128xi32>
    %cst = arith.constant 1.000000e+00 : f32
    %cst_1 = arith.constant 0.000000e+00 : f32
    %4 = vector.broadcast %cst : f32 to vector<64x128xf32>
    %5 = vector.broadcast %cst_1 : f32 to vector<64x128xf32>
    %6 = arith.select %3, %4, %5 : vector<64x128xi1>, vector<64x128xf32>
    %7 = arith.truncf %6 : vector<64x128xf32> to vector<64x128xbf16>
    %c0_2 = arith.constant 0 : index
    %c0_3 = arith.constant 0 : index
    %8 = vector.load %arg1[%c0_2, %c0_3] : memref<128x512xbf16, #tpu.memory_space<vmem>>, vector<128x512xbf16>
    %cst_4 = arith.constant dense<0.000000e+00> : vector<64x512xf32>
    %9 = tpu.matmul %7, %8, %cst_4 {dimension_numbers = #tpu.dot_dimension_numbers<[1], [0], [0], [1], [0, 0, 1, 1], [], []>} : vector<64x128xbf16>, vector<128x512xbf16>, vector<64x512xf32> -> vector<64x512xf32>
    %c0_5 = arith.constant 0 : index
    %c0_6 = arith.constant 0 : index
    %10 = vector.load %arg2[%c0_5, %c0_6] : memref<1x512xf32, #tpu.memory_space<vmem>>, vector<1x512xf32>
    %11 = vector.broadcast %10 : vector<1x512xf32> to vector<64x512xf32>
    %12 = arith.addf %9, %11 : vector<64x512xf32>
    %c0_7 = arith.constant 0 : index
    %c0_8 = arith.constant 0 : index
    %13 = vector.load %arg3[%c0_7, %c0_8] : memref<256x1024xbf16, #tpu.memory_space<vmem>>, vector<256x1024xbf16>
    %c0_9 = arith.constant 0 : index
    %c0_10 = arith.constant 0 : index
    %14 = vector.load %arg4[%c0_9, %c0_10] : memref<1x512xf32, #tpu.memory_space<vmem>>, vector<1x512xf32>
    %cst_11 = arith.constant 0.000000e+00 : bf16
    %15 = vector.broadcast %cst_11 : bf16 to vector<8x128xbf16>
    %cst_12 = arith.constant 0.000000e+00 : f32
    %16 = vector.broadcast %cst_12 : f32 to vector<8x128xf32>
    %cst_13 = arith.constant 0.000000e+00 : f32
    %17 = vector.broadcast %cst_13 : f32 to vector<8x128xf32>
    %18 = vector.extract_strided_slice %12 {offsets = [0, 0], sizes = [8, 512], strides = [1, 1]} : vector<64x512xf32> to vector<8x512xf32>
    %19 = vector.extract_strided_slice %18 {offsets = [0, 0], sizes = [8, 128], strides = [1, 1]} : vector<8x512xf32> to vector<8x128xf32>
    %20 = arith.negf %19 : vector<8x128xf32>
    %21 = math.exp %20 : vector<8x128xf32>
    %cst_14 = arith.constant 1.000000e+00 : f32
    %22 = vector.broadcast %cst_14 : f32 to vector<8x128xf32>
    %23 = arith.addf %22, %21 : vector<8x128xf32>
    %24 = arith.divf %22, %23 : vector<8x128xf32>
    %25 = vector.extract_strided_slice %18 {offsets = [0, 128], sizes = [8, 128], strides = [1, 1]} : vector<8x512xf32> to vector<8x128xf32>
    %26 = arith.negf %25 : vector<8x128xf32>
    %27 = math.exp %26 : vector<8x128xf32>
    %cst_15 = arith.constant 1.000000e+00 : f32
    %28 = vector.broadcast %cst_15 : f32 to vector<8x128xf32>
    %29 = arith.addf %28, %27 : vector<8x128xf32>
    %30 = arith.divf %28, %29 : vector<8x128xf32>
    %31 = vector.extract_strided_slice %18 {offsets = [0, 256], sizes = [8, 128], strides = [1, 1]} : vector<8x512xf32> to vector<8x128xf32>
    %32 = math.tanh %31 : vector<8x128xf32>
    %33 = vector.extract_strided_slice %18 {offsets = [0, 384], sizes = [8, 128], strides = [1, 1]} : vector<8x512xf32> to vector<8x128xf32>
    %34 = arith.negf %33 : vector<8x128xf32>
    %35 = math.exp %34 : vector<8x128xf32>
    %cst_16 = arith.constant 1.000000e+00 : f32
    %36 = vector.broadcast %cst_16 : f32 to vector<8x128xf32>
    %37 = arith.addf %36, %35 : vector<8x128xf32>
    %38 = arith.divf %36, %37 : vector<8x128xf32>
    %39 = arith.mulf %30, %16 : vector<8x128xf32>
    %40 = arith.mulf %24, %32 : vector<8x128xf32>
    %41 = arith.addf %39, %40 : vector<8x128xf32>
    %42 = math.tanh %41 : vector<8x128xf32>
    %43 = arith.mulf %38, %42 : vector<8x128xf32>
    %44 = arith.truncf %43 : vector<8x128xf32> to vector<8x128xbf16>
    %45 = tpu.concatenate %44, %15 in 1 : vector<8x128xbf16>, vector<8x128xbf16> -> vector<8x256xbf16>
    %cst_17 = arith.constant dense<0.000000e+00> : vector<8x1024xf32>
    %46 = tpu.matmul %45, %13, %cst_17 {dimension_numbers = #tpu.dot_dimension_numbers<[1], [0], [0], [1], [0, 0, 1, 1], [], []>} : vector<8x256xbf16>, vector<256x1024xbf16>, vector<8x1024xf32> -> vector<8x1024xf32>
    %47 = vector.extract_strided_slice %12 {offsets = [8, 0], sizes = [8, 512], strides = [1, 1]} : vector<64x512xf32> to vector<8x512xf32>
    %48 = vector.extract_strided_slice %46 {offsets = [0, 0], sizes = [8, 512], strides = [1, 1]} : vector<8x1024xf32> to vector<8x512xf32>
    %49 = arith.addf %47, %48 : vector<8x512xf32>
    %50 = vector.extract_strided_slice %49 {offsets = [0, 0], sizes = [8, 128], strides = [1, 1]} : vector<8x512xf32> to vector<8x128xf32>
    %51 = arith.negf %50 : vector<8x128xf32>
    %52 = math.exp %51 : vector<8x128xf32>
    %cst_18 = arith.constant 1.000000e+00 : f32
    %53 = vector.broadcast %cst_18 : f32 to vector<8x128xf32>
    %54 = arith.addf %53, %52 : vector<8x128xf32>
    %55 = arith.divf %53, %54 : vector<8x128xf32>
    %56 = vector.extract_strided_slice %49 {offsets = [0, 128], sizes = [8, 128], strides = [1, 1]} : vector<8x512xf32> to vector<8x128xf32>
    %57 = arith.negf %56 : vector<8x128xf32>
    %58 = math.exp %57 : vector<8x128xf32>
    %cst_19 = arith.constant 1.000000e+00 : f32
    %59 = vector.broadcast %cst_19 : f32 to vector<8x128xf32>
    %60 = arith.addf %59, %58 : vector<8x128xf32>
    %61 = arith.divf %59, %60 : vector<8x128xf32>
    %62 = vector.extract_strided_slice %49 {offsets = [0, 256], sizes = [8, 128], strides = [1, 1]} : vector<8x512xf32> to vector<8x128xf32>
    %63 = math.tanh %62 : vector<8x128xf32>
    %64 = vector.extract_strided_slice %49 {offsets = [0, 384], sizes = [8, 128], strides = [1, 1]} : vector<8x512xf32> to vector<8x128xf32>
    %65 = arith.negf %64 : vector<8x128xf32>
    %66 = math.exp %65 : vector<8x128xf32>
    %cst_20 = arith.constant 1.000000e+00 : f32
    %67 = vector.broadcast %cst_20 : f32 to vector<8x128xf32>
    %68 = arith.addf %67, %66 : vector<8x128xf32>
    %69 = arith.divf %67, %68 : vector<8x128xf32>
    %70 = arith.mulf %61, %41 : vector<8x128xf32>
    %71 = arith.mulf %55, %63 : vector<8x128xf32>
    %72 = arith.addf %70, %71 : vector<8x128xf32>
    %73 = math.tanh %72 : vector<8x128xf32>
    %74 = arith.mulf %69, %73 : vector<8x128xf32>
    %75 = arith.truncf %74 : vector<8x128xf32> to vector<8x128xbf16>
    %76 = vector.extract_strided_slice %46 {offsets = [0, 512], sizes = [8, 512], strides = [1, 1]} : vector<8x1024xf32> to vector<8x512xf32>
    %77 = vector.broadcast %14 : vector<1x512xf32> to vector<8x512xf32>
    %78 = arith.addf %76, %77 : vector<8x512xf32>
    %79 = vector.extract_strided_slice %78 {offsets = [0, 0], sizes = [8, 128], strides = [1, 1]} : vector<8x512xf32> to vector<8x128xf32>
    %80 = arith.negf %79 : vector<8x128xf32>
    %81 = math.exp %80 : vector<8x128xf32>
    %cst_21 = arith.constant 1.000000e+00 : f32
    %82 = vector.broadcast %cst_21 : f32 to vector<8x128xf32>
    %83 = arith.addf %82, %81 : vector<8x128xf32>
    %84 = arith.divf %82, %83 : vector<8x128xf32>
    %85 = vector.extract_strided_slice %78 {offsets = [0, 128], sizes = [8, 128], strides = [1, 1]} : vector<8x512xf32> to vector<8x128xf32>
    %86 = arith.negf %85 : vector<8x128xf32>
    %87 = math.exp %86 : vector<8x128xf32>
    %cst_22 = arith.constant 1.000000e+00 : f32
    %88 = vector.broadcast %cst_22 : f32 to vector<8x128xf32>
    %89 = arith.addf %88, %87 : vector<8x128xf32>
    %90 = arith.divf %88, %89 : vector<8x128xf32>
    %91 = vector.extract_strided_slice %78 {offsets = [0, 256], sizes = [8, 128], strides = [1, 1]} : vector<8x512xf32> to vector<8x128xf32>
    %92 = math.tanh %91 : vector<8x128xf32>
    %93 = vector.extract_strided_slice %78 {offsets = [0, 384], sizes = [8, 128], strides = [1, 1]} : vector<8x512xf32> to vector<8x128xf32>
    %94 = arith.negf %93 : vector<8x128xf32>
    %95 = math.exp %94 : vector<8x128xf32>
    %cst_23 = arith.constant 1.000000e+00 : f32
    %96 = vector.broadcast %cst_23 : f32 to vector<8x128xf32>
    %97 = arith.addf %96, %95 : vector<8x128xf32>
    %98 = arith.divf %96, %97 : vector<8x128xf32>
    %99 = arith.mulf %90, %17 : vector<8x128xf32>
    %100 = arith.mulf %84, %92 : vector<8x128xf32>
    %101 = arith.addf %99, %100 : vector<8x128xf32>
    %102 = math.tanh %101 : vector<8x128xf32>
    %103 = arith.mulf %98, %102 : vector<8x128xf32>
    %104 = arith.truncf %103 : vector<8x128xf32> to vector<8x128xbf16>
    %105 = tpu.concatenate %75, %104 in 1 : vector<8x128xbf16>, vector<8x128xbf16> -> vector<8x256xbf16>
    %cst_24 = arith.constant dense<0.000000e+00> : vector<8x1024xf32>
    %106 = tpu.matmul %105, %13, %cst_24 {dimension_numbers = #tpu.dot_dimension_numbers<[1], [0], [0], [1], [0, 0, 1, 1], [], []>} : vector<8x256xbf16>, vector<256x1024xbf16>, vector<8x1024xf32> -> vector<8x1024xf32>
    %107 = vector.extract_strided_slice %12 {offsets = [16, 0], sizes = [8, 512], strides = [1, 1]} : vector<64x512xf32> to vector<8x512xf32>
    %108 = vector.extract_strided_slice %106 {offsets = [0, 0], sizes = [8, 512], strides = [1, 1]} : vector<8x1024xf32> to vector<8x512xf32>
    %109 = arith.addf %107, %108 : vector<8x512xf32>
    %110 = vector.extract_strided_slice %109 {offsets = [0, 0], sizes = [8, 128], strides = [1, 1]} : vector<8x512xf32> to vector<8x128xf32>
    %111 = arith.negf %110 : vector<8x128xf32>
    %112 = math.exp %111 : vector<8x128xf32>
    %cst_25 = arith.constant 1.000000e+00 : f32
    %113 = vector.broadcast %cst_25 : f32 to vector<8x128xf32>
    %114 = arith.addf %113, %112 : vector<8x128xf32>
    %115 = arith.divf %113, %114 : vector<8x128xf32>
    %116 = vector.extract_strided_slice %109 {offsets = [0, 128], sizes = [8, 128], strides = [1, 1]} : vector<8x512xf32> to vector<8x128xf32>
    %117 = arith.negf %116 : vector<8x128xf32>
    %118 = math.exp %117 : vector<8x128xf32>
    %cst_26 = arith.constant 1.000000e+00 : f32
    %119 = vector.broadcast %cst_26 : f32 to vector<8x128xf32>
    %120 = arith.addf %119, %118 : vector<8x128xf32>
    %121 = arith.divf %119, %120 : vector<8x128xf32>
    %122 = vector.extract_strided_slice %109 {offsets = [0, 256], sizes = [8, 128], strides = [1, 1]} : vector<8x512xf32> to vector<8x128xf32>
    %123 = math.tanh %122 : vector<8x128xf32>
    %124 = vector.extract_strided_slice %109 {offsets = [0, 384], sizes = [8, 128], strides = [1, 1]} : vector<8x512xf32> to vector<8x128xf32>
    %125 = arith.negf %124 : vector<8x128xf32>
    %126 = math.exp %125 : vector<8x128xf32>
    %cst_27 = arith.constant 1.000000e+00 : f32
    %127 = vector.broadcast %cst_27 : f32 to vector<8x128xf32>
    %128 = arith.addf %127, %126 : vector<8x128xf32>
    %129 = arith.divf %127, %128 : vector<8x128xf32>
    %130 = arith.mulf %121, %72 : vector<8x128xf32>
    %131 = arith.mulf %115, %123 : vector<8x128xf32>
    %132 = arith.addf %130, %131 : vector<8x128xf32>
    %133 = math.tanh %132 : vector<8x128xf32>
    %134 = arith.mulf %129, %133 : vector<8x128xf32>
    %135 = arith.truncf %134 : vector<8x128xf32> to vector<8x128xbf16>
    %136 = vector.extract_strided_slice %106 {offsets = [0, 512], sizes = [8, 512], strides = [1, 1]} : vector<8x1024xf32> to vector<8x512xf32>
    %137 = vector.broadcast %14 : vector<1x512xf32> to vector<8x512xf32>
    %138 = arith.addf %136, %137 : vector<8x512xf32>
    %139 = vector.extract_strided_slice %138 {offsets = [0, 0], sizes = [8, 128], strides = [1, 1]} : vector<8x512xf32> to vector<8x128xf32>
    %140 = arith.negf %139 : vector<8x128xf32>
    %141 = math.exp %140 : vector<8x128xf32>
    %cst_28 = arith.constant 1.000000e+00 : f32
    %142 = vector.broadcast %cst_28 : f32 to vector<8x128xf32>
    %143 = arith.addf %142, %141 : vector<8x128xf32>
    %144 = arith.divf %142, %143 : vector<8x128xf32>
    %145 = vector.extract_strided_slice %138 {offsets = [0, 128], sizes = [8, 128], strides = [1, 1]} : vector<8x512xf32> to vector<8x128xf32>
    %146 = arith.negf %145 : vector<8x128xf32>
    %147 = math.exp %146 : vector<8x128xf32>
    %cst_29 = arith.constant 1.000000e+00 : f32
    %148 = vector.broadcast %cst_29 : f32 to vector<8x128xf32>
    %149 = arith.addf %148, %147 : vector<8x128xf32>
    %150 = arith.divf %148, %149 : vector<8x128xf32>
    %151 = vector.extract_strided_slice %138 {offsets = [0, 256], sizes = [8, 128], strides = [1, 1]} : vector<8x512xf32> to vector<8x128xf32>
    %152 = math.tanh %151 : vector<8x128xf32>
    %153 = vector.extract_strided_slice %138 {offsets = [0, 384], sizes = [8, 128], strides = [1, 1]} : vector<8x512xf32> to vector<8x128xf32>
    %154 = arith.negf %153 : vector<8x128xf32>
    %155 = math.exp %154 : vector<8x128xf32>
    %cst_30 = arith.constant 1.000000e+00 : f32
    %156 = vector.broadcast %cst_30 : f32 to vector<8x128xf32>
    %157 = arith.addf %156, %155 : vector<8x128xf32>
    %158 = arith.divf %156, %157 : vector<8x128xf32>
    %159 = arith.mulf %150, %101 : vector<8x128xf32>
    %160 = arith.mulf %144, %152 : vector<8x128xf32>
    %161 = arith.addf %159, %160 : vector<8x128xf32>
    %162 = math.tanh %161 : vector<8x128xf32>
    %163 = arith.mulf %158, %162 : vector<8x128xf32>
    %164 = arith.truncf %163 : vector<8x128xf32> to vector<8x128xbf16>
    %165 = tpu.concatenate %135, %164 in 1 : vector<8x128xbf16>, vector<8x128xbf16> -> vector<8x256xbf16>
    %cst_31 = arith.constant dense<0.000000e+00> : vector<8x1024xf32>
    %166 = tpu.matmul %165, %13, %cst_31 {dimension_numbers = #tpu.dot_dimension_numbers<[1], [0], [0], [1], [0, 0, 1, 1], [], []>} : vector<8x256xbf16>, vector<256x1024xbf16>, vector<8x1024xf32> -> vector<8x1024xf32>
    %167 = vector.extract_strided_slice %12 {offsets = [24, 0], sizes = [8, 512], strides = [1, 1]} : vector<64x512xf32> to vector<8x512xf32>
    %168 = vector.extract_strided_slice %166 {offsets = [0, 0], sizes = [8, 512], strides = [1, 1]} : vector<8x1024xf32> to vector<8x512xf32>
    %169 = arith.addf %167, %168 : vector<8x512xf32>
    %170 = vector.extract_strided_slice %169 {offsets = [0, 0], sizes = [8, 128], strides = [1, 1]} : vector<8x512xf32> to vector<8x128xf32>
    %171 = arith.negf %170 : vector<8x128xf32>
    %172 = math.exp %171 : vector<8x128xf32>
    %cst_32 = arith.constant 1.000000e+00 : f32
    %173 = vector.broadcast %cst_32 : f32 to vector<8x128xf32>
    %174 = arith.addf %173, %172 : vector<8x128xf32>
    %175 = arith.divf %173, %174 : vector<8x128xf32>
    %176 = vector.extract_strided_slice %169 {offsets = [0, 128], sizes = [8, 128], strides = [1, 1]} : vector<8x512xf32> to vector<8x128xf32>
    %177 = arith.negf %176 : vector<8x128xf32>
    %178 = math.exp %177 : vector<8x128xf32>
    %cst_33 = arith.constant 1.000000e+00 : f32
    %179 = vector.broadcast %cst_33 : f32 to vector<8x128xf32>
    %180 = arith.addf %179, %178 : vector<8x128xf32>
    %181 = arith.divf %179, %180 : vector<8x128xf32>
    %182 = vector.extract_strided_slice %169 {offsets = [0, 256], sizes = [8, 128], strides = [1, 1]} : vector<8x512xf32> to vector<8x128xf32>
    %183 = math.tanh %182 : vector<8x128xf32>
    %184 = vector.extract_strided_slice %169 {offsets = [0, 384], sizes = [8, 128], strides = [1, 1]} : vector<8x512xf32> to vector<8x128xf32>
    %185 = arith.negf %184 : vector<8x128xf32>
    %186 = math.exp %185 : vector<8x128xf32>
    %cst_34 = arith.constant 1.000000e+00 : f32
    %187 = vector.broadcast %cst_34 : f32 to vector<8x128xf32>
    %188 = arith.addf %187, %186 : vector<8x128xf32>
    %189 = arith.divf %187, %188 : vector<8x128xf32>
    %190 = arith.mulf %181, %132 : vector<8x128xf32>
    %191 = arith.mulf %175, %183 : vector<8x128xf32>
    %192 = arith.addf %190, %191 : vector<8x128xf32>
    %193 = math.tanh %192 : vector<8x128xf32>
    %194 = arith.mulf %189, %193 : vector<8x128xf32>
    %195 = arith.truncf %194 : vector<8x128xf32> to vector<8x128xbf16>
    %196 = vector.extract_strided_slice %166 {offsets = [0, 512], sizes = [8, 512], strides = [1, 1]} : vector<8x1024xf32> to vector<8x512xf32>
    %197 = vector.broadcast %14 : vector<1x512xf32> to vector<8x512xf32>
    %198 = arith.addf %196, %197 : vector<8x512xf32>
    %199 = vector.extract_strided_slice %198 {offsets = [0, 0], sizes = [8, 128], strides = [1, 1]} : vector<8x512xf32> to vector<8x128xf32>
    %200 = arith.negf %199 : vector<8x128xf32>
    %201 = math.exp %200 : vector<8x128xf32>
    %cst_35 = arith.constant 1.000000e+00 : f32
    %202 = vector.broadcast %cst_35 : f32 to vector<8x128xf32>
    %203 = arith.addf %202, %201 : vector<8x128xf32>
    %204 = arith.divf %202, %203 : vector<8x128xf32>
    %205 = vector.extract_strided_slice %198 {offsets = [0, 128], sizes = [8, 128], strides = [1, 1]} : vector<8x512xf32> to vector<8x128xf32>
    %206 = arith.negf %205 : vector<8x128xf32>
    %207 = math.exp %206 : vector<8x128xf32>
    %cst_36 = arith.constant 1.000000e+00 : f32
    %208 = vector.broadcast %cst_36 : f32 to vector<8x128xf32>
    %209 = arith.addf %208, %207 : vector<8x128xf32>
    %210 = arith.divf %208, %209 : vector<8x128xf32>
    %211 = vector.extract_strided_slice %198 {offsets = [0, 256], sizes = [8, 128], strides = [1, 1]} : vector<8x512xf32> to vector<8x128xf32>
    %212 = math.tanh %211 : vector<8x128xf32>
    %213 = vector.extract_strided_slice %198 {offsets = [0, 384], sizes = [8, 128], strides = [1, 1]} : vector<8x512xf32> to vector<8x128xf32>
    %214 = arith.negf %213 : vector<8x128xf32>
    %215 = math.exp %214 : vector<8x128xf32>
    %cst_37 = arith.constant 1.000000e+00 : f32
    %216 = vector.broadcast %cst_37 : f32 to vector<8x128xf32>
    %217 = arith.addf %216, %215 : vector<8x128xf32>
    %218 = arith.divf %216, %217 : vector<8x128xf32>
    %219 = arith.mulf %210, %161 : vector<8x128xf32>
    %220 = arith.mulf %204, %212 : vector<8x128xf32>
    %221 = arith.addf %219, %220 : vector<8x128xf32>
    %222 = math.tanh %221 : vector<8x128xf32>
    %223 = arith.mulf %218, %222 : vector<8x128xf32>
    %224 = arith.truncf %223 : vector<8x128xf32> to vector<8x128xbf16>
    %225 = tpu.concatenate %195, %224 in 1 : vector<8x128xbf16>, vector<8x128xbf16> -> vector<8x256xbf16>
    %cst_38 = arith.constant dense<0.000000e+00> : vector<8x1024xf32>
    %226 = tpu.matmul %225, %13, %cst_38 {dimension_numbers = #tpu.dot_dimension_numbers<[1], [0], [0], [1], [0, 0, 1, 1], [], []>} : vector<8x256xbf16>, vector<256x1024xbf16>, vector<8x1024xf32> -> vector<8x1024xf32>
    %227 = vector.extract_strided_slice %12 {offsets = [32, 0], sizes = [8, 512], strides = [1, 1]} : vector<64x512xf32> to vector<8x512xf32>
    %228 = vector.extract_strided_slice %226 {offsets = [0, 0], sizes = [8, 512], strides = [1, 1]} : vector<8x1024xf32> to vector<8x512xf32>
    %229 = arith.addf %227, %228 : vector<8x512xf32>
    %230 = vector.extract_strided_slice %229 {offsets = [0, 0], sizes = [8, 128], strides = [1, 1]} : vector<8x512xf32> to vector<8x128xf32>
    %231 = arith.negf %230 : vector<8x128xf32>
    %232 = math.exp %231 : vector<8x128xf32>
    %cst_39 = arith.constant 1.000000e+00 : f32
    %233 = vector.broadcast %cst_39 : f32 to vector<8x128xf32>
    %234 = arith.addf %233, %232 : vector<8x128xf32>
    %235 = arith.divf %233, %234 : vector<8x128xf32>
    %236 = vector.extract_strided_slice %229 {offsets = [0, 128], sizes = [8, 128], strides = [1, 1]} : vector<8x512xf32> to vector<8x128xf32>
    %237 = arith.negf %236 : vector<8x128xf32>
    %238 = math.exp %237 : vector<8x128xf32>
    %cst_40 = arith.constant 1.000000e+00 : f32
    %239 = vector.broadcast %cst_40 : f32 to vector<8x128xf32>
    %240 = arith.addf %239, %238 : vector<8x128xf32>
    %241 = arith.divf %239, %240 : vector<8x128xf32>
    %242 = vector.extract_strided_slice %229 {offsets = [0, 256], sizes = [8, 128], strides = [1, 1]} : vector<8x512xf32> to vector<8x128xf32>
    %243 = math.tanh %242 : vector<8x128xf32>
    %244 = vector.extract_strided_slice %229 {offsets = [0, 384], sizes = [8, 128], strides = [1, 1]} : vector<8x512xf32> to vector<8x128xf32>
    %245 = arith.negf %244 : vector<8x128xf32>
    %246 = math.exp %245 : vector<8x128xf32>
    %cst_41 = arith.constant 1.000000e+00 : f32
    %247 = vector.broadcast %cst_41 : f32 to vector<8x128xf32>
    %248 = arith.addf %247, %246 : vector<8x128xf32>
    %249 = arith.divf %247, %248 : vector<8x128xf32>
    %250 = arith.mulf %241, %192 : vector<8x128xf32>
    %251 = arith.mulf %235, %243 : vector<8x128xf32>
    %252 = arith.addf %250, %251 : vector<8x128xf32>
    %253 = math.tanh %252 : vector<8x128xf32>
    %254 = arith.mulf %249, %253 : vector<8x128xf32>
    %255 = arith.truncf %254 : vector<8x128xf32> to vector<8x128xbf16>
    %256 = vector.extract_strided_slice %226 {offsets = [0, 512], sizes = [8, 512], strides = [1, 1]} : vector<8x1024xf32> to vector<8x512xf32>
    %257 = vector.broadcast %14 : vector<1x512xf32> to vector<8x512xf32>
    %258 = arith.addf %256, %257 : vector<8x512xf32>
    %259 = vector.extract_strided_slice %258 {offsets = [0, 0], sizes = [8, 128], strides = [1, 1]} : vector<8x512xf32> to vector<8x128xf32>
    %260 = arith.negf %259 : vector<8x128xf32>
    %261 = math.exp %260 : vector<8x128xf32>
    %cst_42 = arith.constant 1.000000e+00 : f32
    %262 = vector.broadcast %cst_42 : f32 to vector<8x128xf32>
    %263 = arith.addf %262, %261 : vector<8x128xf32>
    %264 = arith.divf %262, %263 : vector<8x128xf32>
    %265 = vector.extract_strided_slice %258 {offsets = [0, 128], sizes = [8, 128], strides = [1, 1]} : vector<8x512xf32> to vector<8x128xf32>
    %266 = arith.negf %265 : vector<8x128xf32>
    %267 = math.exp %266 : vector<8x128xf32>
    %cst_43 = arith.constant 1.000000e+00 : f32
    %268 = vector.broadcast %cst_43 : f32 to vector<8x128xf32>
    %269 = arith.addf %268, %267 : vector<8x128xf32>
    %270 = arith.divf %268, %269 : vector<8x128xf32>
    %271 = vector.extract_strided_slice %258 {offsets = [0, 256], sizes = [8, 128], strides = [1, 1]} : vector<8x512xf32> to vector<8x128xf32>
    %272 = math.tanh %271 : vector<8x128xf32>
    %273 = vector.extract_strided_slice %258 {offsets = [0, 384], sizes = [8, 128], strides = [1, 1]} : vector<8x512xf32> to vector<8x128xf32>
    %274 = arith.negf %273 : vector<8x128xf32>
    %275 = math.exp %274 : vector<8x128xf32>
    %cst_44 = arith.constant 1.000000e+00 : f32
    %276 = vector.broadcast %cst_44 : f32 to vector<8x128xf32>
    %277 = arith.addf %276, %275 : vector<8x128xf32>
    %278 = arith.divf %276, %277 : vector<8x128xf32>
    %279 = arith.mulf %270, %221 : vector<8x128xf32>
    %280 = arith.mulf %264, %272 : vector<8x128xf32>
    %281 = arith.addf %279, %280 : vector<8x128xf32>
    %282 = math.tanh %281 : vector<8x128xf32>
    %283 = arith.mulf %278, %282 : vector<8x128xf32>
    %284 = arith.truncf %283 : vector<8x128xf32> to vector<8x128xbf16>
    %285 = tpu.concatenate %255, %284 in 1 : vector<8x128xbf16>, vector<8x128xbf16> -> vector<8x256xbf16>
    %cst_45 = arith.constant dense<0.000000e+00> : vector<8x1024xf32>
    %286 = tpu.matmul %285, %13, %cst_45 {dimension_numbers = #tpu.dot_dimension_numbers<[1], [0], [0], [1], [0, 0, 1, 1], [], []>} : vector<8x256xbf16>, vector<256x1024xbf16>, vector<8x1024xf32> -> vector<8x1024xf32>
    %287 = vector.extract_strided_slice %12 {offsets = [40, 0], sizes = [8, 512], strides = [1, 1]} : vector<64x512xf32> to vector<8x512xf32>
    %288 = vector.extract_strided_slice %286 {offsets = [0, 0], sizes = [8, 512], strides = [1, 1]} : vector<8x1024xf32> to vector<8x512xf32>
    %289 = arith.addf %287, %288 : vector<8x512xf32>
    %290 = vector.extract_strided_slice %289 {offsets = [0, 0], sizes = [8, 128], strides = [1, 1]} : vector<8x512xf32> to vector<8x128xf32>
    %291 = arith.negf %290 : vector<8x128xf32>
    %292 = math.exp %291 : vector<8x128xf32>
    %cst_46 = arith.constant 1.000000e+00 : f32
    %293 = vector.broadcast %cst_46 : f32 to vector<8x128xf32>
    %294 = arith.addf %293, %292 : vector<8x128xf32>
    %295 = arith.divf %293, %294 : vector<8x128xf32>
    %296 = vector.extract_strided_slice %289 {offsets = [0, 128], sizes = [8, 128], strides = [1, 1]} : vector<8x512xf32> to vector<8x128xf32>
    %297 = arith.negf %296 : vector<8x128xf32>
    %298 = math.exp %297 : vector<8x128xf32>
    %cst_47 = arith.constant 1.000000e+00 : f32
    %299 = vector.broadcast %cst_47 : f32 to vector<8x128xf32>
    %300 = arith.addf %299, %298 : vector<8x128xf32>
    %301 = arith.divf %299, %300 : vector<8x128xf32>
    %302 = vector.extract_strided_slice %289 {offsets = [0, 256], sizes = [8, 128], strides = [1, 1]} : vector<8x512xf32> to vector<8x128xf32>
    %303 = math.tanh %302 : vector<8x128xf32>
    %304 = vector.extract_strided_slice %289 {offsets = [0, 384], sizes = [8, 128], strides = [1, 1]} : vector<8x512xf32> to vector<8x128xf32>
    %305 = arith.negf %304 : vector<8x128xf32>
    %306 = math.exp %305 : vector<8x128xf32>
    %cst_48 = arith.constant 1.000000e+00 : f32
    %307 = vector.broadcast %cst_48 : f32 to vector<8x128xf32>
    %308 = arith.addf %307, %306 : vector<8x128xf32>
    %309 = arith.divf %307, %308 : vector<8x128xf32>
    %310 = arith.mulf %301, %252 : vector<8x128xf32>
    %311 = arith.mulf %295, %303 : vector<8x128xf32>
    %312 = arith.addf %310, %311 : vector<8x128xf32>
    %313 = math.tanh %312 : vector<8x128xf32>
    %314 = arith.mulf %309, %313 : vector<8x128xf32>
    %315 = arith.truncf %314 : vector<8x128xf32> to vector<8x128xbf16>
    %316 = vector.extract_strided_slice %286 {offsets = [0, 512], sizes = [8, 512], strides = [1, 1]} : vector<8x1024xf32> to vector<8x512xf32>
    %317 = vector.broadcast %14 : vector<1x512xf32> to vector<8x512xf32>
    %318 = arith.addf %316, %317 : vector<8x512xf32>
    %319 = vector.extract_strided_slice %318 {offsets = [0, 0], sizes = [8, 128], strides = [1, 1]} : vector<8x512xf32> to vector<8x128xf32>
    %320 = arith.negf %319 : vector<8x128xf32>
    %321 = math.exp %320 : vector<8x128xf32>
    %cst_49 = arith.constant 1.000000e+00 : f32
    %322 = vector.broadcast %cst_49 : f32 to vector<8x128xf32>
    %323 = arith.addf %322, %321 : vector<8x128xf32>
    %324 = arith.divf %322, %323 : vector<8x128xf32>
    %325 = vector.extract_strided_slice %318 {offsets = [0, 128], sizes = [8, 128], strides = [1, 1]} : vector<8x512xf32> to vector<8x128xf32>
    %326 = arith.negf %325 : vector<8x128xf32>
    %327 = math.exp %326 : vector<8x128xf32>
    %cst_50 = arith.constant 1.000000e+00 : f32
    %328 = vector.broadcast %cst_50 : f32 to vector<8x128xf32>
    %329 = arith.addf %328, %327 : vector<8x128xf32>
    %330 = arith.divf %328, %329 : vector<8x128xf32>
    %331 = vector.extract_strided_slice %318 {offsets = [0, 256], sizes = [8, 128], strides = [1, 1]} : vector<8x512xf32> to vector<8x128xf32>
    %332 = math.tanh %331 : vector<8x128xf32>
    %333 = vector.extract_strided_slice %318 {offsets = [0, 384], sizes = [8, 128], strides = [1, 1]} : vector<8x512xf32> to vector<8x128xf32>
    %334 = arith.negf %333 : vector<8x128xf32>
    %335 = math.exp %334 : vector<8x128xf32>
    %cst_51 = arith.constant 1.000000e+00 : f32
    %336 = vector.broadcast %cst_51 : f32 to vector<8x128xf32>
    %337 = arith.addf %336, %335 : vector<8x128xf32>
    %338 = arith.divf %336, %337 : vector<8x128xf32>
    %339 = arith.mulf %330, %281 : vector<8x128xf32>
    %340 = arith.mulf %324, %332 : vector<8x128xf32>
    %341 = arith.addf %339, %340 : vector<8x128xf32>
    %342 = math.tanh %341 : vector<8x128xf32>
    %343 = arith.mulf %338, %342 : vector<8x128xf32>
    %344 = arith.truncf %343 : vector<8x128xf32> to vector<8x128xbf16>
    %345 = tpu.concatenate %315, %344 in 1 : vector<8x128xbf16>, vector<8x128xbf16> -> vector<8x256xbf16>
    %cst_52 = arith.constant dense<0.000000e+00> : vector<8x1024xf32>
    %346 = tpu.matmul %345, %13, %cst_52 {dimension_numbers = #tpu.dot_dimension_numbers<[1], [0], [0], [1], [0, 0, 1, 1], [], []>} : vector<8x256xbf16>, vector<256x1024xbf16>, vector<8x1024xf32> -> vector<8x1024xf32>
    %347 = vector.extract_strided_slice %12 {offsets = [48, 0], sizes = [8, 512], strides = [1, 1]} : vector<64x512xf32> to vector<8x512xf32>
    %348 = vector.extract_strided_slice %346 {offsets = [0, 0], sizes = [8, 512], strides = [1, 1]} : vector<8x1024xf32> to vector<8x512xf32>
    %349 = arith.addf %347, %348 : vector<8x512xf32>
    %350 = vector.extract_strided_slice %349 {offsets = [0, 0], sizes = [8, 128], strides = [1, 1]} : vector<8x512xf32> to vector<8x128xf32>
    %351 = arith.negf %350 : vector<8x128xf32>
    %352 = math.exp %351 : vector<8x128xf32>
    %cst_53 = arith.constant 1.000000e+00 : f32
    %353 = vector.broadcast %cst_53 : f32 to vector<8x128xf32>
    %354 = arith.addf %353, %352 : vector<8x128xf32>
    %355 = arith.divf %353, %354 : vector<8x128xf32>
    %356 = vector.extract_strided_slice %349 {offsets = [0, 128], sizes = [8, 128], strides = [1, 1]} : vector<8x512xf32> to vector<8x128xf32>
    %357 = arith.negf %356 : vector<8x128xf32>
    %358 = math.exp %357 : vector<8x128xf32>
    %cst_54 = arith.constant 1.000000e+00 : f32
    %359 = vector.broadcast %cst_54 : f32 to vector<8x128xf32>
    %360 = arith.addf %359, %358 : vector<8x128xf32>
    %361 = arith.divf %359, %360 : vector<8x128xf32>
    %362 = vector.extract_strided_slice %349 {offsets = [0, 256], sizes = [8, 128], strides = [1, 1]} : vector<8x512xf32> to vector<8x128xf32>
    %363 = math.tanh %362 : vector<8x128xf32>
    %364 = vector.extract_strided_slice %349 {offsets = [0, 384], sizes = [8, 128], strides = [1, 1]} : vector<8x512xf32> to vector<8x128xf32>
    %365 = arith.negf %364 : vector<8x128xf32>
    %366 = math.exp %365 : vector<8x128xf32>
    %cst_55 = arith.constant 1.000000e+00 : f32
    %367 = vector.broadcast %cst_55 : f32 to vector<8x128xf32>
    %368 = arith.addf %367, %366 : vector<8x128xf32>
    %369 = arith.divf %367, %368 : vector<8x128xf32>
    %370 = arith.mulf %361, %312 : vector<8x128xf32>
    %371 = arith.mulf %355, %363 : vector<8x128xf32>
    %372 = arith.addf %370, %371 : vector<8x128xf32>
    %373 = math.tanh %372 : vector<8x128xf32>
    %374 = arith.mulf %369, %373 : vector<8x128xf32>
    %375 = arith.truncf %374 : vector<8x128xf32> to vector<8x128xbf16>
    %376 = vector.extract_strided_slice %346 {offsets = [0, 512], sizes = [8, 512], strides = [1, 1]} : vector<8x1024xf32> to vector<8x512xf32>
    %377 = vector.broadcast %14 : vector<1x512xf32> to vector<8x512xf32>
    %378 = arith.addf %376, %377 : vector<8x512xf32>
    %379 = vector.extract_strided_slice %378 {offsets = [0, 0], sizes = [8, 128], strides = [1, 1]} : vector<8x512xf32> to vector<8x128xf32>
    %380 = arith.negf %379 : vector<8x128xf32>
    %381 = math.exp %380 : vector<8x128xf32>
    %cst_56 = arith.constant 1.000000e+00 : f32
    %382 = vector.broadcast %cst_56 : f32 to vector<8x128xf32>
    %383 = arith.addf %382, %381 : vector<8x128xf32>
    %384 = arith.divf %382, %383 : vector<8x128xf32>
    %385 = vector.extract_strided_slice %378 {offsets = [0, 128], sizes = [8, 128], strides = [1, 1]} : vector<8x512xf32> to vector<8x128xf32>
    %386 = arith.negf %385 : vector<8x128xf32>
    %387 = math.exp %386 : vector<8x128xf32>
    %cst_57 = arith.constant 1.000000e+00 : f32
    %388 = vector.broadcast %cst_57 : f32 to vector<8x128xf32>
    %389 = arith.addf %388, %387 : vector<8x128xf32>
    %390 = arith.divf %388, %389 : vector<8x128xf32>
    %391 = vector.extract_strided_slice %378 {offsets = [0, 256], sizes = [8, 128], strides = [1, 1]} : vector<8x512xf32> to vector<8x128xf32>
    %392 = math.tanh %391 : vector<8x128xf32>
    %393 = vector.extract_strided_slice %378 {offsets = [0, 384], sizes = [8, 128], strides = [1, 1]} : vector<8x512xf32> to vector<8x128xf32>
    %394 = arith.negf %393 : vector<8x128xf32>
    %395 = math.exp %394 : vector<8x128xf32>
    %cst_58 = arith.constant 1.000000e+00 : f32
    %396 = vector.broadcast %cst_58 : f32 to vector<8x128xf32>
    %397 = arith.addf %396, %395 : vector<8x128xf32>
    %398 = arith.divf %396, %397 : vector<8x128xf32>
    %399 = arith.mulf %390, %341 : vector<8x128xf32>
    %400 = arith.mulf %384, %392 : vector<8x128xf32>
    %401 = arith.addf %399, %400 : vector<8x128xf32>
    %402 = math.tanh %401 : vector<8x128xf32>
    %403 = arith.mulf %398, %402 : vector<8x128xf32>
    %404 = arith.truncf %403 : vector<8x128xf32> to vector<8x128xbf16>
    %405 = tpu.concatenate %375, %404 in 1 : vector<8x128xbf16>, vector<8x128xbf16> -> vector<8x256xbf16>
    %cst_59 = arith.constant dense<0.000000e+00> : vector<8x1024xf32>
    %406 = tpu.matmul %405, %13, %cst_59 {dimension_numbers = #tpu.dot_dimension_numbers<[1], [0], [0], [1], [0, 0, 1, 1], [], []>} : vector<8x256xbf16>, vector<256x1024xbf16>, vector<8x1024xf32> -> vector<8x1024xf32>
    %407 = vector.extract_strided_slice %12 {offsets = [56, 0], sizes = [8, 512], strides = [1, 1]} : vector<64x512xf32> to vector<8x512xf32>
    %408 = vector.extract_strided_slice %406 {offsets = [0, 0], sizes = [8, 512], strides = [1, 1]} : vector<8x1024xf32> to vector<8x512xf32>
    %409 = arith.addf %407, %408 : vector<8x512xf32>
    %410 = vector.extract_strided_slice %409 {offsets = [0, 0], sizes = [8, 128], strides = [1, 1]} : vector<8x512xf32> to vector<8x128xf32>
    %411 = arith.negf %410 : vector<8x128xf32>
    %412 = math.exp %411 : vector<8x128xf32>
    %cst_60 = arith.constant 1.000000e+00 : f32
    %413 = vector.broadcast %cst_60 : f32 to vector<8x128xf32>
    %414 = arith.addf %413, %412 : vector<8x128xf32>
    %415 = arith.divf %413, %414 : vector<8x128xf32>
    %416 = vector.extract_strided_slice %409 {offsets = [0, 128], sizes = [8, 128], strides = [1, 1]} : vector<8x512xf32> to vector<8x128xf32>
    %417 = arith.negf %416 : vector<8x128xf32>
    %418 = math.exp %417 : vector<8x128xf32>
    %cst_61 = arith.constant 1.000000e+00 : f32
    %419 = vector.broadcast %cst_61 : f32 to vector<8x128xf32>
    %420 = arith.addf %419, %418 : vector<8x128xf32>
    %421 = arith.divf %419, %420 : vector<8x128xf32>
    %422 = vector.extract_strided_slice %409 {offsets = [0, 256], sizes = [8, 128], strides = [1, 1]} : vector<8x512xf32> to vector<8x128xf32>
    %423 = math.tanh %422 : vector<8x128xf32>
    %424 = vector.extract_strided_slice %409 {offsets = [0, 384], sizes = [8, 128], strides = [1, 1]} : vector<8x512xf32> to vector<8x128xf32>
    %425 = arith.negf %424 : vector<8x128xf32>
    %426 = math.exp %425 : vector<8x128xf32>
    %cst_62 = arith.constant 1.000000e+00 : f32
    %427 = vector.broadcast %cst_62 : f32 to vector<8x128xf32>
    %428 = arith.addf %427, %426 : vector<8x128xf32>
    %429 = arith.divf %427, %428 : vector<8x128xf32>
    %430 = arith.mulf %421, %372 : vector<8x128xf32>
    %431 = arith.mulf %415, %423 : vector<8x128xf32>
    %432 = arith.addf %430, %431 : vector<8x128xf32>
    %433 = math.tanh %432 : vector<8x128xf32>
    %434 = arith.mulf %429, %433 : vector<8x128xf32>
    %435 = arith.truncf %434 : vector<8x128xf32> to vector<8x128xbf16>
    %436 = vector.extract_strided_slice %406 {offsets = [0, 512], sizes = [8, 512], strides = [1, 1]} : vector<8x1024xf32> to vector<8x512xf32>
    %437 = vector.broadcast %14 : vector<1x512xf32> to vector<8x512xf32>
    %438 = arith.addf %436, %437 : vector<8x512xf32>
    %439 = vector.extract_strided_slice %438 {offsets = [0, 0], sizes = [8, 128], strides = [1, 1]} : vector<8x512xf32> to vector<8x128xf32>
    %440 = arith.negf %439 : vector<8x128xf32>
    %441 = math.exp %440 : vector<8x128xf32>
    %cst_63 = arith.constant 1.000000e+00 : f32
    %442 = vector.broadcast %cst_63 : f32 to vector<8x128xf32>
    %443 = arith.addf %442, %441 : vector<8x128xf32>
    %444 = arith.divf %442, %443 : vector<8x128xf32>
    %445 = vector.extract_strided_slice %438 {offsets = [0, 128], sizes = [8, 128], strides = [1, 1]} : vector<8x512xf32> to vector<8x128xf32>
    %446 = arith.negf %445 : vector<8x128xf32>
    %447 = math.exp %446 : vector<8x128xf32>
    %cst_64 = arith.constant 1.000000e+00 : f32
    %448 = vector.broadcast %cst_64 : f32 to vector<8x128xf32>
    %449 = arith.addf %448, %447 : vector<8x128xf32>
    %450 = arith.divf %448, %449 : vector<8x128xf32>
    %451 = vector.extract_strided_slice %438 {offsets = [0, 256], sizes = [8, 128], strides = [1, 1]} : vector<8x512xf32> to vector<8x128xf32>
    %452 = math.tanh %451 : vector<8x128xf32>
    %453 = vector.extract_strided_slice %438 {offsets = [0, 384], sizes = [8, 128], strides = [1, 1]} : vector<8x512xf32> to vector<8x128xf32>
    %454 = arith.negf %453 : vector<8x128xf32>
    %455 = math.exp %454 : vector<8x128xf32>
    %cst_65 = arith.constant 1.000000e+00 : f32
    %456 = vector.broadcast %cst_65 : f32 to vector<8x128xf32>
    %457 = arith.addf %456, %455 : vector<8x128xf32>
    %458 = arith.divf %456, %457 : vector<8x128xf32>
    %459 = arith.mulf %450, %401 : vector<8x128xf32>
    %460 = arith.mulf %444, %452 : vector<8x128xf32>
    %461 = arith.addf %459, %460 : vector<8x128xf32>
    %462 = math.tanh %461 : vector<8x128xf32>
    %463 = arith.mulf %458, %462 : vector<8x128xf32>
    %464 = arith.truncf %463 : vector<8x128xf32> to vector<8x128xbf16>
    %465 = tpu.concatenate %435, %464 in 1 : vector<8x128xbf16>, vector<8x128xbf16> -> vector<8x256xbf16>
    %cst_66 = arith.constant dense<0.000000e+00> : vector<8x1024xf32>
    %466 = tpu.matmul %465, %13, %cst_66 {dimension_numbers = #tpu.dot_dimension_numbers<[1], [0], [0], [1], [0, 0, 1, 1], [], []>} : vector<8x256xbf16>, vector<256x1024xbf16>, vector<8x1024xf32> -> vector<8x1024xf32>
    %467 = vector.extract_strided_slice %466 {offsets = [0, 512], sizes = [8, 512], strides = [1, 1]} : vector<8x1024xf32> to vector<8x512xf32>
    %468 = vector.broadcast %14 : vector<1x512xf32> to vector<8x512xf32>
    %469 = arith.addf %467, %468 : vector<8x512xf32>
    %470 = vector.extract_strided_slice %469 {offsets = [0, 0], sizes = [8, 128], strides = [1, 1]} : vector<8x512xf32> to vector<8x128xf32>
    %471 = arith.negf %470 : vector<8x128xf32>
    %472 = math.exp %471 : vector<8x128xf32>
    %cst_67 = arith.constant 1.000000e+00 : f32
    %473 = vector.broadcast %cst_67 : f32 to vector<8x128xf32>
    %474 = arith.addf %473, %472 : vector<8x128xf32>
    %475 = arith.divf %473, %474 : vector<8x128xf32>
    %476 = vector.extract_strided_slice %469 {offsets = [0, 128], sizes = [8, 128], strides = [1, 1]} : vector<8x512xf32> to vector<8x128xf32>
    %477 = arith.negf %476 : vector<8x128xf32>
    %478 = math.exp %477 : vector<8x128xf32>
    %cst_68 = arith.constant 1.000000e+00 : f32
    %479 = vector.broadcast %cst_68 : f32 to vector<8x128xf32>
    %480 = arith.addf %479, %478 : vector<8x128xf32>
    %481 = arith.divf %479, %480 : vector<8x128xf32>
    %482 = vector.extract_strided_slice %469 {offsets = [0, 256], sizes = [8, 128], strides = [1, 1]} : vector<8x512xf32> to vector<8x128xf32>
    %483 = math.tanh %482 : vector<8x128xf32>
    %484 = vector.extract_strided_slice %469 {offsets = [0, 384], sizes = [8, 128], strides = [1, 1]} : vector<8x512xf32> to vector<8x128xf32>
    %485 = arith.negf %484 : vector<8x128xf32>
    %486 = math.exp %485 : vector<8x128xf32>
    %cst_69 = arith.constant 1.000000e+00 : f32
    %487 = vector.broadcast %cst_69 : f32 to vector<8x128xf32>
    %488 = arith.addf %487, %486 : vector<8x128xf32>
    %489 = arith.divf %487, %488 : vector<8x128xf32>
    %490 = arith.mulf %481, %461 : vector<8x128xf32>
    %491 = arith.mulf %475, %483 : vector<8x128xf32>
    %492 = arith.addf %490, %491 : vector<8x128xf32>
    %493 = math.tanh %492 : vector<8x128xf32>
    %494 = arith.mulf %489, %493 : vector<8x128xf32>
    %495 = arith.truncf %494 : vector<8x128xf32> to vector<8x128xbf16>
    %c0_70 = arith.constant 0 : index
    %c0_71 = arith.constant 0 : index
    %496 = vector.load %arg5[%c0_70, %c0_71] : memref<128x128xbf16, #tpu.memory_space<vmem>>, vector<128x128xbf16>
    %cst_72 = arith.constant dense<0.000000e+00> : vector<8x128xf32>
    %497 = tpu.matmul %495, %496, %cst_72 {dimension_numbers = #tpu.dot_dimension_numbers<[1], [0], [0], [1], [0, 0, 1, 1], [], []>} : vector<8x128xbf16>, vector<128x128xbf16>, vector<8x128xf32> -> vector<8x128xf32>
    %c0_73 = arith.constant 0 : index
    %c0_74 = arith.constant 0 : index
    %498 = vector.load %arg6[%c0_73, %c0_74] : memref<1x128xf32, #tpu.memory_space<vmem>>, vector<1x128xf32>
    %499 = vector.broadcast %498 : vector<1x128xf32> to vector<8x128xf32>
    %500 = arith.addf %497, %499 : vector<8x128xf32>
    %c0_75 = arith.constant 0 : index
    %c0_76 = arith.constant 0 : index
    %501 = vector.load %arg7[%c0_75, %c0_76] : memref<8x128xf32, #tpu.memory_space<vmem>>, vector<8x128xf32>
    tpu.vector_store %arg7[%c0_75, %c0_76], %500 {strides = array<i32>} : memref<8x128xf32, #tpu.memory_space<vmem>>, vector<8x128xf32>,
    return
  }
}

</mosaic_0001>

<bundles_post_ra>
// kernel: rnn_forward.1
= control target key start
LH: loop header
LB: loop body
LE: loop exit
PB: predicated region body
PF: predicated region fallthrough
CT: control target
= control target key end

     0   :  { %12 = vsyncpa [#allocation3], 0  ;;  %s5364_s0 = inlined_call_operand.vmem [shape: s32[64,1], index: 0, kind: input, shape index: {}]   ;;  %s5365_s1 = inlined_call_operand.hbm [shape: bf16[128,512], index: 1, kind: input, shape index: {}]   ;;  %s5366_s2 = inlined_call_operand.vmem [shape: f32[1,512], index: 2, kind: input, shape index: {}]   ;;  %s5367_s3 = inlined_call_operand.hbm [shape: bf16[256,1024], index: 3, kind: input, shape index: {}]   ;;  %s5368_s4 = inlined_call_operand.vmem [shape: f32[1,512], index: 4, kind: input, shape index: {}]   ;;  %s5369_s5 = inlined_call_operand.vmem [shape: bf16[128,128], index: 5, kind: input, shape index: {}]   ;;  %s5370_s6 = inlined_call_operand.vmem [shape: f32[1,128], index: 6, kind: input, shape index: {}]   ;;  %s5371_s7 = inlined_call_operand.hbm [shape: f32[8,128], index: 7, kind: output, shape index: {}]  }
   0x1   :  { %13 = vsyncpa [#allocation6], 0 }
   0x2   :  { %14 = vsyncpa [#allocation4], 0  ;;  %s3731_s24 = smov [#allocation2]  }
   0x3   :  { %s22_s25 = sshll.u32 %s3731_s24, 4  ;;  %s23_s25 = int_to_ptr.vmem [resolvable:$true] %s22_s25 }
   0x4   :  { %s3673_s26 = scalar_lea.vmem %s23_s25, 4096  ;;  %p3678_p1 = scmp.lt.s32.totalorder %s23_s25, %s23_s25 }
   0x5   :  { %p3674_p0 = scmp.ne.s32.totalorder %s23_s25, %s3673_s26  ;;  %p3679_p2 = scmp.lt.s32.totalorder %s3673_s26, %s3673_s26 }
   0x7   :  { %p3680_p3 = por %p3679_p2, %p3678_p1 }
   0x9   :  { %p3681_p4 = pnand %p3680_p3, %p3674_p0 }
   0xb   :  { %3684 = shalt.err (!%p3681_p4)
}
   0xc   :  { %s3732_s27 = smov 256   ;;  %s3733_s28 = smov 16  }
   0xd   :  { %28 = dma.hbm_to_vmem [thread:$0]  %s5365_s1, 4096, %s23_s25, [#allocation3], %s3732_s27, %s3732_s27, %s3733_s28  }
   0xe   :  { %s3734_s8 = smov [#allocation5]  }
   0xf   :  { %s36_s9 = sshll.u32 %s3734_s8, 4  ;;  %s37_s9 = int_to_ptr.vmem [resolvable:$true] %s36_s9 }
  0x10   :  { %s3693_s10 = scalar_lea.vmem %s37_s9, 16384  ;;  %p3698_p6 = scmp.lt.s32.totalorder %s37_s9, %s37_s9 }
  0x11   :  { %p3694_p5 = scmp.ne.s32.totalorder %s37_s9, %s3693_s10  ;;  %p3699_p7 = scmp.lt.s32.totalorder %s3693_s10, %s3693_s10 }
  0x13   :  { %p3700_p8 = por %p3699_p7, %p3698_p6 }
  0x15   :  { %p3701_p9 = pnand %p3700_p8, %p3694_p5 }
  0x17   :  { %3704 = shalt.err (!%p3701_p9)
}
  0x18   :  { %s3735_s11 = smov 512   ;;  %s3736_s12 = smov 32  }
  0x19   :  { %42 = dma.hbm_to_vmem [thread:$0]  %s5367_s3, 16384, %s37_s9, [#allocation6], %s3735_s11, %s3735_s11, %s3736_s12  }
  0x1a   :  { %3725 = dma.done.wait [#allocation3], 4096  }
  0x1b   :  { %3726 = vsyncadd [#allocation3], 4294963200 }
  0x1c   :  { %3727 = dma.done.wait [#allocation6], 16384  }
  0x1d   :  { %3728 = vsyncadd [#allocation6], 4294950912  ;;  %v5372_v0 = vmov 0   ;;  %v60_v1 = vld [vmem:[%s5364_s0 + $0x10] sm:$0xff]  ;;  %v58_v2 = vld [vmem:[%s5364_s0] sm:$0xff]  ;;  %v5374_v49 = vlaneseq  ;;  %vm3740_vm12 = vmmov 0  }
  0x1e   :  { %3352 = vset.pattern.permute.xlu1 %v5372_v0  ;;  %3351 = vset.pattern.permute.xlu0 %v5372_v0  ;;  %v61_v3 = vld [vmem:[%s5364_s0 + $0x18] sm:$0xff]  ;;  %v59_v4 = vld [vmem:[%s5364_s0 + $0x8] sm:$0xff]  ;;  %v3353_v5 = vld [vmem:[#allocation2 + $0xe4] ss:$16 sps:$4 sm:$0xff]   ;;  %v3738_v60 = vmov 1.0|1.0  }
  0x1f   :  { %356 = vmatprep.mubr.bf16.mxu0 %v5372_v0  ;;  %429 = vmatprep.mubr.bf16.mxu1 %v5372_v0  ;;  %v63_v6 = vld [vmem:[%s5364_s0 + $0x28] sm:$0xff]  ;;  %v62_v7 = vld [vmem:[%s5364_s0 + $0x20] sm:$0xff]  ;;  %v65_v15 = vld [vmem:[%s5364_s0 + $0x38] sm:$0xff]  ;;  %v57_v51 = vand.u32 127, %v5374_v49  ;;  %s3741_s22 = smov [#allocation7]  }
  0x20   :  { %73 = vperm.xlu1 %3352, %v60_v1   ;;  %67 = vperm.xlu0 %3351, %v58_v2   ;;  %v3355_v8 = vld [vmem:[#allocation2 + $0xec] ss:$16 sps:$4 sm:$0xff]   ;;  %v3357_v9 = vld [vmem:[#allocation2 + $0xe0] ss:$16 sps:$4 sm:$0xff]   ;;  %v3358_v10 = vld [vmem:[#allocation2 + $0xe8] ss:$16 sps:$4 sm:$0xff]  }
  0x21   :  { %324 = vmatprep.subr.bf16.mxu0 %v3353_v5  ;;  %397 = vmatprep.subr.bf16.mxu1 %v3355_v8  ;;  %v3359_v11 = vld [vmem:[#allocation2 + $0xc4] ss:$16 sps:$4 sm:$0xff]   ;;  %v3361_v12 = vld [vmem:[#allocation2 + $0xcc] ss:$16 sps:$4 sm:$0xff]   ;;  %v3363_v13 = vld [vmem:[#allocation2 + $0xc0] ss:$16 sps:$4 sm:$0xff]  }
  0x22   :  { %325 = vmatpush1.bf16.msra.mxu0 %v3357_v9  ;;  %398 = vmatpush1.bf16.msra.mxu1 %v3358_v10  ;;  %v3364_v14 = vld [vmem:[#allocation2 + $0xc8] ss:$16 sps:$4 sm:$0xff]   ;;  %v3365_v16 = vld [vmem:[#allocation2 + $0xa4] ss:$16 sps:$4 sm:$0xff]   ;;  %v3367_v17 = vld [vmem:[#allocation2 + $0xac] ss:$16 sps:$4 sm:$0xff]  }
  0x23   :  { %326 = vmatprep.subr.bf16.mxu0 %v3359_v11  ;;  %v64_v18 = vld [vmem:[%s5364_s0 + $0x30] sm:$0xff]  ;;  %399 = vmatprep.subr.bf16.mxu1 %v3361_v12  ;;  %v3370_v20 = vld [vmem:[#allocation2 + $0xa8] ss:$16 sps:$4 sm:$0xff]   ;;  %v3373_v22 = vld [vmem:[#allocation2 + $0x8c] ss:$16 sps:$4 sm:$0xff]   ;;  %s3068_s23 = sshll.u32 %s3741_s22, 4  ;;  %s3069_s23 = int_to_ptr.vmem [resolvable:$true] %s3068_s23 }
  0x24   :  { %76 = vperm.xlu1 %3352, %v61_v3   ;;  %70 = vperm.xlu0 %3351, %v59_v4   ;;  %v3369_v19 = vld [vmem:[#allocation2 + $0xa0] ss:$16 sps:$4 sm:$0xff]   ;;  %v3371_v21 = vld [vmem:[#allocation2 + $0x84] ss:$16 sps:$4 sm:$0xff]   ;;  %v3376_v24 = vld [vmem:[#allocation2 + $0x88] ss:$16 sps:$4 sm:$0xff]   ;;  %p3710_p11 = scmp.lt.s32.totalorder %s3069_s23, %s3069_s23 }
  0x25   :  { %v3375_v23 = vld [vmem:[#allocation2 + $0x80] ss:$16 sps:$4 sm:$0xff]   ;;  %v3377_v25 = vld [vmem:[#allocation2 + $0x64] ss:$16 sps:$4 sm:$0xff]   ;;  %v3379_v26 = vld [vmem:[#allocation2 + $0x6c] ss:$16 sps:$4 sm:$0xff]  }
  0x26   :  { %327 = vmatpush1.bf16.msra.mxu0 %v3363_v13  ;;  %400 = vmatpush1.bf16.msra.mxu1 %v3364_v14  ;;  %v3381_v27 = vld [vmem:[#allocation2 + $0x60] ss:$16 sps:$4 sm:$0xff]   ;;  %v3382_v28 = vld [vmem:[#allocation2 + $0x68] ss:$16 sps:$4 sm:$0xff]   ;;  %v3383_v29 = vld [vmem:[#allocation2 + $0x44] ss:$16 sps:$4 sm:$0xff]  }
  0x27   :  { %328 = vmatprep.subr.bf16.mxu0 %v3365_v16  ;;  %401 = vmatprep.subr.bf16.mxu1 %v3367_v17  ;;  %v3385_v30 = vld [vmem:[#allocation2 + $0x4c] ss:$16 sps:$4 sm:$0xff]   ;;  %v3387_v31 = vld [vmem:[#allocation2 + $0x40] ss:$16 sps:$4 sm:$0xff]   ;;  %v3388_v32 = vld [vmem:[#allocation2 + $0x48] ss:$16 sps:$4 sm:$0xff]  }
  0x28   :  { %82 = vperm.xlu1 %3352, %v63_v6   ;;  %79 = vperm.xlu0 %3351, %v62_v7   ;;  %v3389_v33 = vld [vmem:[#allocation2 + $0x24] ss:$16 sps:$4 sm:$0xff]   ;;  %v3391_v34 = vld [vmem:[#allocation2 + $0x2c] ss:$16 sps:$4 sm:$0xff]   ;;  %v3393_v35 = vld [vmem:[#allocation2 + $0x20] ss:$16 sps:$4 sm:$0xff]  }
  0x29   :  { %v3394_v36 = vld [vmem:[#allocation2 + $0x28] ss:$16 sps:$4 sm:$0xff]   ;;  %v3395_v37 = vld [vmem:[#allocation2 + $0x4] ss:$16 sps:$4 sm:$0xff]   ;;  %v3397_v38 = vld [vmem:[#allocation2 + $0xc] ss:$16 sps:$4 sm:$0xff]  }
  0x2a   :  { %329 = vmatpush1.bf16.msra.mxu0 %v3369_v19  ;;  %402 = vmatpush1.bf16.msra.mxu1 %v3370_v20  ;;  %v526_v39 = vld [vmem:[#allocation5 + $0x1c0] sm:$0xff]  ;;  %v527_v41 = vld [vmem:[#allocation5 + $0x1c8] sm:$0xff]  ;;  %s3705_s24 = scalar_lea.vmem %s3069_s23, 128 }
  0x2b   :  { %330 = vmatprep.subr.bf16.mxu0 %v3371_v21  ;;  %403 = vmatprep.subr.bf16.mxu1 %v3373_v22  ;;  %v530_v40 = vld [vmem:[#allocation5 + $0x1e0] sm:$0xff]  ;;  %v531_v42 = vld [vmem:[#allocation5 + $0x1e8] sm:$0xff]  ;;  %p3706_p10 = scmp.ne.s32.totalorder %s3069_s23, %s3705_s24  ;;  %p3711_p12 = scmp.lt.s32.totalorder %s3705_s24, %s3705_s24 }
  0x2c   :  { %88 = vperm.xlu1 %3352, %v65_v15   ;;  %85 = vperm.xlu0 %3351, %v64_v18   ;;  %v3816_v43 = vcombine.low %v526_v39, %v530_v40  ;;  %v3399_v44 = vld [vmem:[#allocation2] ss:$16 sps:$4 sm:$0xff]   ;;  %v3400_v45 = vld [vmem:[#allocation2 + $0x8] ss:$16 sps:$4 sm:$0xff]   ;;  %v3818_v46 = vcombine.low %v527_v41, %v531_v42  ;;  %v3820_v47 = vcombine.high %v526_v39, %v530_v40 }
  0x2d   :  { %v3822_v48 = vcombine.high %v527_v41, %v531_v42  ;;  %v518_v53 = vld [vmem:[#allocation5 + $0x180] sm:$0xff]  ;;  %v519_v56 = vld [vmem:[#allocation5 + $0x188] sm:$0xff]  ;;  %p3712_p13 = por %p3711_p12, %p3710_p11 }
  0x2e   :  { %331 = vmatpush1.bf16.msra.mxu0 %v3375_v23  ;;  %404 = vmatpush1.bf16.msra.mxu1 %v3376_v24  ;;  %5662 = vst [vmem:[#allocation11_spill] sm:$0xff] %v3816_v43  ;;  %5663 = vst [vmem:[#allocation12_spill] sm:$0xff] %v3818_v46  ;;  %v522_v55 = vld [vmem:[#allocation5 + $0x1a0] sm:$0xff]  ;;  %v523_v57 = vld [vmem:[#allocation5 + $0x1a8] sm:$0xff] }
  0x2f   :  { %332 = vmatprep.subr.bf16.mxu0 %v3377_v25  ;;  %405 = vmatprep.subr.bf16.mxu1 %v3379_v26  ;;  %5664 = vst [vmem:[#allocation13_spill] sm:$0xff] %v3820_v47  ;;  %5665 = vst [vmem:[#allocation14_spill] sm:$0xff] %v3822_v48  ;;  %v3827_v58 = vcombine.high %v518_v53, %v522_v55  ;;  %v3829_v59 = vcombine.high %v519_v56, %v523_v57  ;;  %v510_v5 = vld [vmem:[#allocation5 + $0x140] sm:$0xff]  ;;  %v511_v7 = vld [vmem:[#allocation5 + $0x148] sm:$0xff]  ;;  %p3713_p0 = pnand %p3712_p13, %p3706_p10 }
  0x30   :  { %v3833_v62 = vcombine.low %v518_v53, %v522_v55  ;;  %v3837_v63 = vcombine.low %v519_v56, %v523_v57  ;;  %v514_v6 = vld [vmem:[#allocation5 + $0x160] sm:$0xff]  ;;  %v515_v9 = vld [vmem:[#allocation5 + $0x168] sm:$0xff] }
  0x31   :  { %5666 = vst [vmem:[#allocation15_spill] sm:$0xff] %v3827_v58  ;;  %5667 = vst [vmem:[#allocation16_spill] sm:$0xff] %v3829_v59  ;;  %v3849_v8 = vcombine.high %v510_v5, %v514_v6  ;;  %v3851_v10 = vcombine.high %v511_v7, %v515_v9  ;;  %v3853_v11 = vcombine.low %v510_v5, %v514_v6  ;;  %v502_v13 = vld [vmem:[#allocation5 + $0x100] sm:$0xff]  ;;  %v503_v15 = vld [vmem:[#allocation5 + $0x108] sm:$0xff] }
  0x32   :  { %333 = vmatpush1.bf16.msra.mxu0 %v3381_v27  ;;  %406 = vmatpush1.bf16.msra.mxu1 %v3382_v28  ;;  %5668 = vst [vmem:[#allocation17_spill] sm:$0xff] %v3833_v62  ;;  %5669 = vst [vmem:[#allocation18_spill] sm:$0xff] %v3837_v63  ;;  %v3855_v12 = vcombine.low %v511_v7, %v515_v9  ;;  %v506_v14 = vld [vmem:[#allocation5 + $0x120] sm:$0xff]  ;;  %v507_v17 = vld [vmem:[#allocation5 + $0x128] sm:$0xff] }
  0x33   :  { %334 = vmatprep.subr.bf16.mxu0 %v3383_v29  ;;  %407 = vmatprep.subr.bf16.mxu1 %v3385_v30  ;;  %5670 = vst [vmem:[#allocation19_spill] sm:$0xff] %v3849_v8  ;;  %5671 = vst [vmem:[#allocation20_spill] sm:$0xff] %v3851_v10  ;;  %v3861_v16 = vcombine.high %v502_v13, %v506_v14  ;;  %v3863_v18 = vcombine.high %v503_v15, %v507_v17  ;;  %v494_v21 = vld [vmem:[#allocation5 + $0xc0] sm:$0xff]  ;;  %v495_v23 = vld [vmem:[#allocation5 + $0xc8] sm:$0xff] }
  0x34   :  { %5672 = vst [vmem:[#allocation21_spill] sm:$0xff] %v3853_v11  ;;  %5673 = vst [vmem:[#allocation22_spill] sm:$0xff] %v3855_v12  ;;  %v3865_v19 = vcombine.low %v502_v13, %v506_v14  ;;  %v3867_v20 = vcombine.low %v503_v15, %v507_v17  ;;  %v498_v22 = vld [vmem:[#allocation5 + $0xe0] sm:$0xff]  ;;  %v499_v25 = vld [vmem:[#allocation5 + $0xe8] sm:$0xff] }
  0x35   :  { %5674 = vst [vmem:[#allocation23_spill] sm:$0xff] %v3861_v16  ;;  %5675 = vst [vmem:[#allocation24_spill] sm:$0xff] %v3863_v18  ;;  %v3873_v24 = vcombine.high %v494_v21, %v498_v22  ;;  %v3875_v26 = vcombine.high %v495_v23, %v499_v25  ;;  %v3877_v27 = vcombine.low %v494_v21, %v498_v22  ;;  %v486_v29 = vld [vmem:[#allocation5 + $0x80] sm:$0xff]  ;;  %v479_v39 = vld [vmem:[#allocation5 + $0x48] sm:$0xff] }
  0x36   :  { %335 = vmatpush1.bf16.msra.mxu0 %v3387_v31  ;;  %408 = vmatpush1.bf16.msra.mxu1 %v3388_v32  ;;  %5676 = vst [vmem:[#allocation25_spill] sm:$0xff] %v3865_v19  ;;  %5677 = vst [vmem:[#allocation26_spill] sm:$0xff] %v3867_v20  ;;  %v3879_v28 = vcombine.low %v495_v23, %v499_v25  ;;  %v490_v30 = vld [vmem:[#allocation5 + $0xa0] sm:$0xff]  ;;  %v487_v31 = vld [vmem:[#allocation5 + $0x88] sm:$0xff] }
  0x37   :  { %336 = vmatprep.subr.bf16.mxu0 %v3389_v33  ;;  %409 = vmatprep.subr.bf16.mxu1 %v3391_v34  ;;  %5678 = vst [vmem:[#allocation27_spill] sm:$0xff] %v3873_v24  ;;  %5679 = vst [vmem:[#allocation28_spill] sm:$0xff] %v3875_v26  ;;  %v3885_v32 = vcombine.high %v486_v29, %v490_v30  ;;  %v491_v33 = vld [vmem:[#allocation5 + $0xa8] sm:$0xff]  ;;  %v582_v7 = vld [vmem:[#allocation5 + $0x380] sm:$0xff] }
  0x38   :  { %5680 = vst [vmem:[#allocation29_spill] sm:$0xff] %v3877_v27  ;;  %5681 = vst [vmem:[#allocation30_spill] sm:$0xff] %v3879_v28  ;;  %v3887_v34 = vcombine.high %v487_v31, %v491_v33  ;;  %v483_v41 = vld [vmem:[#allocation5 + $0x68] sm:$0xff]  ;;  %v586_v9 = vld [vmem:[#allocation5 + $0x3a0] sm:$0xff] }
  0x39   :  { %5682 = vst [vmem:[#allocation31_spill] sm:$0xff] %v3885_v32  ;;  %v3899_v42 = vcombine.high %v479_v39, %v483_v41  ;;  %v583_v13 = vld [vmem:[#allocation5 + $0x388] sm:$0xff]  ;;  %v3933_v14 = vcombine.high %v582_v7, %v586_v9  ;;  %v3937_v21 = vcombine.low %v582_v7, %v586_v9  ;;  %v574_v23 = vld [vmem:[#allocation5 + $0x340] sm:$0xff] }
  0x3a   :  { %337 = vmatpush1.bf16.msra.mxu0 %v3393_v35  ;;  %410 = vmatpush1.bf16.msra.mxu1 %v3394_v36  ;;  %5683 = vst [vmem:[#allocation32_spill] sm:$0xff] %v3887_v34  ;;  %v3889_v35 = vcombine.low %v486_v29, %v490_v30  ;;  %v3891_v36 = vcombine.low %v487_v31, %v491_v33  ;;  %v587_v15 = vld [vmem:[#allocation5 + $0x3a8] sm:$0xff]  ;;  %v578_v25 = vld [vmem:[#allocation5 + $0x360] sm:$0xff] }
  0x3b   :  { %338 = vmatprep.subr.bf16.mxu0 %v3395_v37  ;;  %411 = vmatprep.subr.bf16.mxu1 %v3397_v38  ;;  %v478_v37 = vld [vmem:[#allocation5 + $0x40] sm:$0xff]  ;;  %5687 = vst [vmem:[#allocation36_spill] sm:$0xff] %v3899_v42  ;;  %5698 = vst [vmem:[#allocation47_spill] sm:$0xff] %v3933_v14  ;;  %v3935_v17 = vcombine.high %v583_v13, %v587_v15  ;;  %v3939_v22 = vcombine.low %v583_v13, %v587_v15  ;;  %v575_v29 = vld [vmem:[#allocation5 + $0x348] sm:$0xff] }
  0x3c   :  { %5684 = vst [vmem:[#allocation33_spill] sm:$0xff] %v3889_v35  ;;  %5685 = vst [vmem:[#allocation34_spill] sm:$0xff] %v3891_v36  ;;  %v482_v38 = vld [vmem:[#allocation5 + $0x60] sm:$0xff]  ;;  %v3945_v30 = vcombine.high %v574_v23, %v578_v25  ;;  %v579_v31 = vld [vmem:[#allocation5 + $0x368] sm:$0xff] }
  0x3d   :  { %v3897_v40 = vcombine.high %v478_v37, %v482_v38  ;;  %5699 = vst [vmem:[#allocation48_spill] sm:$0xff] %v3935_v17  ;;  %5700 = vst [vmem:[#allocation49_spill] sm:$0xff] %v3937_v21  ;;  %v3947_v33 = vcombine.high %v575_v29, %v579_v31  ;;  %v559_v7 = vld [vmem:[#allocation5 + $0x2c8] sm:$0xff]  ;;  %v546_v49 = vld [vmem:[#allocation5 + $0x260] sm:$0xff] }
  0x3e   :  { %339 = vmatpush1.bf16.msra.mxu0 %v3399_v44  ;;  %412 = vmatpush1.bf16.msra.mxu1 %v3400_v45  ;;  %v3901_v44 = vcombine.low %v478_v37, %v482_v38  ;;  %v3903_v45 = vcombine.low %v479_v39, %v483_v41  ;;  %5701 = vst [vmem:[#allocation50_spill] sm:$0xff] %v3939_v22  ;;  %5702 = vst [vmem:[#allocation51_spill] sm:$0xff] %v3945_v30  ;;  %v566_v39 = vld [vmem:[#allocation5 + $0x300] sm:$0xff]  ;;  %v563_v13 = vld [vmem:[#allocation5 + $0x2e8] sm:$0xff] }
  0x3f   :  { %1264 = vmatprep.subr.bf16.mxu0 %v3820_v47  ;;  %1305 = vmatprep.subr.bf16.mxu1 %v3822_v48  ;;  %5686 = vst [vmem:[#allocation35_spill] sm:$0xff] %v3897_v40  ;;  %5703 = vst [vmem:[#allocation52_spill] sm:$0xff] %v3947_v33  ;;  %v3949_v37 = vcombine.low %v574_v23, %v578_v25  ;;  %v3951_v38 = vcombine.low %v575_v29, %v579_v31  ;;  %v570_v41 = vld [vmem:[#allocation5 + $0x320] sm:$0xff] }
  0x40   :  { %5688 = vst [vmem:[#allocation37_spill] sm:$0xff] %v3901_v44  ;;  %5689 = vst [vmem:[#allocation38_spill] sm:$0xff] %v3903_v45  ;;  %v550_v23 = vld [vmem:[#allocation5 + $0x280] sm:$0xff]  ;;  %v3973_v29 = vcombine.high %v559_v7, %v563_v13  ;;  %v3975_v31 = vcombine.low %v559_v7, %v563_v13 }
  0x41   :  { %5704 = vst [vmem:[#allocation53_spill] sm:$0xff] %v3949_v37  ;;  %5705 = vst [vmem:[#allocation54_spill] sm:$0xff] %v3951_v38  ;;  %v554_v25 = vld [vmem:[#allocation5 + $0x2a0] sm:$0xff] }
  0x42   :  { %5712 = vst [vmem:[#allocation61_spill] sm:$0xff] %v3973_v29  ;;  %5713 = vst [vmem:[#allocation62_spill] sm:$0xff] %v3975_v31 }
  0x9b   :  { %v68_v50 = vpop.permute.xlu0 %67  ;;  %v74_v52 = vpop.permute.xlu1 %73 }
  0x9c   :  { %vm90_vm1 = vcmp.eq.s32.totalorder %v57_v51, %v68_v50  ;;  %vm92_vm3 = vcmp.eq.s32.totalorder %v57_v51, %v74_v52  ;;  %v470_v50 = vld [vmem:[#allocation5] sm:$0xff]  ;;  %v471_v52 = vld [vmem:[#allocation5 + $0x8] sm:$0xff] }
  0x9f   :  { %v71_v54 = vpop.permute.xlu0 %70  ;;  %v77_v61 = vpop.permute.xlu1 %76 }
  0xa0   :  { %vm91_vm0 = vcmp.eq.s32.totalorder %v57_v51, %v71_v54  ;;  %vm93_vm4 = vcmp.eq.s32.totalorder %v57_v51, %v77_v61  ;;  %v475_v54 = vld [vmem:[#allocation5 + $0x28] sm:$0xff]  ;;  %v594_v61 = vld [vmem:[#allocation5 + $0x3e0] sm:$0xff] }
  0xa1   :  { %vm3110_vm2 = vmpackc.low %vm91_vm0, %vm90_vm1  ;;  %v3911_v55 = vcombine.high %v471_v52, %v475_v54  ;;  %v3915_v57 = vcombine.low %v471_v52, %v475_v54  ;;  %v571_v52 = vld [vmem:[#allocation5 + $0x328] sm:$0xff] }
  0xa2   :  { %3111 = vmatmul.mubr.msk.bf16.vlgmr.msra.gmra.mxu0 %vm3110_vm2, %v3738_v60  ;;  %3119 = vmatmul.mubr.msk.bf16.vlgmr.msra.gmra.mxu1 %vm3110_vm2, %v3738_v60  ;;  %vm3112_vm5 = vmpackc.low %vm93_vm4, %vm92_vm3 }
  0xa3   :  { %366 = vmatprep.mubr.bf16.mxu0 %v5372_v0  ;;  %439 = vmatprep.mubr.bf16.mxu1 %v5372_v0  ;;  %v83_v1 = vpop.permute.xlu1 %82  ;;  %v80_v2 = vpop.permute.xlu0 %79  ;;  %5691 = vst [vmem:[#allocation40_spill] sm:$0xff] %v3911_v55  ;;  %5693 = vst [vmem:[#allocation42_spill] sm:$0xff] %v3915_v57 }
  0xa4   :  { %1265 = vmatpush1.bf16.msra.mxu0 %v3816_v43  ;;  %1306 = vmatpush1.bf16.msra.mxu1 %v3818_v46  ;;  %vm95_vm6 = vcmp.eq.s32.totalorder %v57_v51, %v83_v1  ;;  %vm94_vm7 = vcmp.eq.s32.totalorder %v57_v51, %v80_v2  ;;  %v591_v1 = vld [vmem:[#allocation5 + $0x3c8] sm:$0xff] }
  0xa5   :  { %1266 = vmatprep.subr.bf16.mxu0 %v3827_v58  ;;  %1307 = vmatprep.subr.bf16.mxu1 %v3829_v59  ;;  %vm3114_vm8 = vmpackc.low %vm95_vm6, %vm94_vm7 }
  0xa7   :  { %v89_v3 = vpop.permute.xlu1 %88  ;;  %v86_v4 = vpop.permute.xlu0 %85 }
  0xa8   :  { %1267 = vmatpush1.bf16.msra.mxu0 %v3833_v62  ;;  %1308 = vmatpush1.bf16.msra.mxu1 %v3837_v63  ;;  %vm97_vm9 = vcmp.eq.s32.totalorder %v57_v51, %v89_v3  ;;  %vm96_vm10 = vcmp.eq.s32.totalorder %v57_v51, %v86_v4  ;;  %v474_v51 = vld [vmem:[#allocation5 + $0x20] sm:$0xff]  ;;  %v595_v3 = vld [vmem:[#allocation5 + $0x3e8] sm:$0xff] }
  0xa9   :  { %vm3116_vm11 = vmpackc.low %vm97_vm9, %vm96_vm10  ;;  %1268 = vmatprep.subr.bf16.mxu0 %v3849_v8  ;;  %1309 = vmatprep.subr.bf16.mxu1 %v3851_v10  ;;  %v3909_v53 = vcombine.high %v470_v50, %v474_v51  ;;  %v3913_v56 = vcombine.low %v470_v50, %v474_v51  ;;  %v3923_v4 = vcombine.high %v591_v1, %v595_v3  ;;  %v567_v50 = vld [vmem:[#allocation5 + $0x308] sm:$0xff] }
  0xaa   :  { %3113 = vmatmul.mubr.msk.bf16.gmra.mxu0 %vm3112_vm5, %v3738_v60  ;;  %3121 = vmatmul.mubr.msk.bf16.gmra.mxu1 %vm3112_vm5, %v3738_v60  ;;  %v3927_v6 = vcombine.low %v591_v1, %v595_v3  ;;  %v3957_v51 = vcombine.high %v566_v39, %v570_v41  ;;  %v3959_v54 = vcombine.high %v567_v50, %v571_v52  ;;  %v558_v1 = vld [vmem:[#allocation5 + $0x2c0] sm:$0xff] }
  0xab   :  { %376 = vmatprep.mubr.bf16.mxu0 %v5372_v0  ;;  %449 = vmatprep.mubr.bf16.mxu1 %v5372_v0  ;;  %5690 = vst [vmem:[#allocation39_spill] sm:$0xff] %v3909_v53  ;;  %5692 = vst [vmem:[#allocation41_spill] sm:$0xff] %v3913_v56  ;;  %v562_v3 = vld [vmem:[#allocation5 + $0x2e0] sm:$0xff] }
  0xac   :  { %1269 = vmatpush1.bf16.msra.mxu0 %v3853_v11  ;;  %1310 = vmatpush1.bf16.msra.mxu1 %v3855_v12  ;;  %5695 = vst [vmem:[#allocation44_spill] sm:$0xff] %v3923_v4  ;;  %5697 = vst [vmem:[#allocation46_spill] sm:$0xff] %v3927_v6  ;;  %v3969_v9 = vcombine.high %v558_v1, %v562_v3  ;;  %v3971_v15 = vcombine.low %v558_v1, %v562_v3 }
  0xad   :  { %1270 = vmatprep.subr.bf16.mxu0 %v3861_v16  ;;  %1311 = vmatprep.subr.bf16.mxu1 %v3863_v18  ;;  %5706 = vst [vmem:[#allocation55_spill] sm:$0xff] %v3957_v51  ;;  %5707 = vst [vmem:[#allocation56_spill] sm:$0xff] %v3959_v54  ;;  %v3984_v1 = vcombine.low %v550_v23, %v554_v25 }
  0xae   :  { %5710 = vst [vmem:[#allocation59_spill] sm:$0xff] %v3969_v9  ;;  %5711 = vst [vmem:[#allocation60_spill] sm:$0xff] %v3971_v15 }
  0xaf   :  { %5716 = vst [vmem:[#allocation65_spill] sm:$0xff] %v3984_v1 }
  0xb0   :  { %1271 = vmatpush1.bf16.msra.mxu0 %v3865_v19  ;;  %1312 = vmatpush1.bf16.msra.mxu1 %v3867_v20 }
  0xb1   :  { %1272 = vmatprep.subr.bf16.mxu0 %v3873_v24  ;;  %1313 = vmatprep.subr.bf16.mxu1 %v3875_v26 }
  0xb2   :  { %3115 = vmatmul.mubr.msk.bf16.gmra.mxu0 %vm3114_vm8, %v3738_v60  ;;  %3123 = vmatmul.mubr.msk.bf16.gmra.mxu1 %vm3114_vm8, %v3738_v60 }
  0xb3   :  { %386 = vmatprep.mubr.bf16.mxu0 %v5372_v0  ;;  %459 = vmatprep.mubr.bf16.mxu1 %v5372_v0 }
  0xb4   :  { %1273 = vmatpush1.bf16.msra.mxu0 %v3877_v27  ;;  %1314 = vmatpush1.bf16.msra.mxu1 %v3879_v28 }
  0xb5   :  { %1274 = vmatprep.subr.bf16.mxu0 %v3885_v32  ;;  %1315 = vmatprep.subr.bf16.mxu1 %v3887_v34 }
  0xb8   :  { %1275 = vmatpush1.bf16.msra.mxu0 %v3889_v35  ;;  %1316 = vmatpush1.bf16.msra.mxu1 %v3891_v36 }
  0xb9   :  { %1276 = vmatprep.subr.bf16.mxu0 %v3897_v40  ;;  %1317 = vmatprep.subr.bf16.mxu1 %v3899_v42 }
  0xba   :  { %3117 = vmatmul.mubr.msk.bf16.gmra.mxu0 %vm3116_vm11, %v3738_v60  ;;  %3125 = vmatmul.mubr.msk.bf16.gmra.mxu1 %vm3116_vm11, %v3738_v60  ;;  %v590_v60 = vld [vmem:[#allocation5 + $0x3c0] sm:$0xff] }
  0xbb   :  { %1296 = vmatprep.mubr.bf16.mxu0 %v5372_v0  ;;  %1337 = vmatprep.mubr.bf16.mxu1 %v5372_v0  ;;  %v3921_v2 = vcombine.high %v590_v60, %v594_v61  ;;  %v3925_v5 = vcombine.low %v590_v60, %v594_v61  ;;  %v3961_v60 = vcombine.low %v566_v39, %v570_v41  ;;  %v551_v41 = vld [vmem:[#allocation5 + $0x288] sm:$0xff] }
  0xbc   :  { %1277 = vmatpush1.bf16.msra.mxu0 %v3901_v44  ;;  %1318 = vmatpush1.bf16.msra.mxu1 %v3903_v45  ;;  %v3963_v61 = vcombine.low %v567_v50, %v571_v52  ;;  %v3977_v39 = vcombine.high %v550_v23, %v554_v25  ;;  %v555_v50 = vld [vmem:[#allocation5 + $0x2a8] sm:$0xff]  ;;  %v542_v52 = vld [vmem:[#allocation5 + $0x240] sm:$0xff] }
  0xbd   :  { %1278 = vmatprep.subr.bf16.mxu0 %v3909_v53  ;;  %1319 = vmatprep.subr.bf16.mxu1 %v3911_v55  ;;  %5694 = vst [vmem:[#allocation43_spill] sm:$0xff] %v3921_v2  ;;  %5696 = vst [vmem:[#allocation45_spill] sm:$0xff] %v3925_v5  ;;  %v3980_v0 = vcombine.high %v551_v41, %v555_v50  ;;  %v3988_v3 = vcombine.low %v551_v41, %v555_v50 }
  0xbe   :  { %5708 = vst [vmem:[#allocation57_spill] sm:$0xff] %v3961_v60  ;;  %5709 = vst [vmem:[#allocation58_spill] sm:$0xff] %v3963_v61  ;;  %v3990_v7 = vcombine.high %v542_v52, %v546_v49  ;;  %v3996_v23 = vcombine.low %v542_v52, %v546_v49 }
  0xbf   :  { %5714 = vst [vmem:[#allocation63_spill] sm:$0xff] %v3977_v39  ;;  %5715 = vst [vmem:[#allocation64_spill] sm:$0xff] %v3980_v0 }
  0xc0   :  { %1279 = vmatpush1.bf16.msra.mxu0 %v3913_v56  ;;  %1320 = vmatpush1.bf16.msra.mxu1 %v3915_v57  ;;  %5717 = vst [vmem:[#allocation66_spill] sm:$0xff] %v3988_v3  ;;  %5718 = vst [vmem:[#allocation67_spill] sm:$0xff] %v3990_v7 }
  0xc1   :  { %1280 = vmatprep.subr.bf16.mxu0 %v3921_v2  ;;  %1321 = vmatprep.subr.bf16.mxu1 %v3923_v4  ;;  %5720 = vst [vmem:[#allocation69_spill] sm:$0xff] %v3996_v23 }
  0xc4   :  { %1281 = vmatpush2.bf16.msra.mxu0 %v3925_v5  ;;  %1322 = vmatpush2.bf16.msra.mxu1 %v3927_v6 }
  0xc5   :  { %1282 = vmatprep.subr.bf16.mxu0 %v3933_v14  ;;  %1323 = vmatprep.subr.bf16.mxu1 %v3935_v17 }
  0xc8   :  { %1283 = vmatpush2.bf16.msra.mxu0 %v3937_v21  ;;  %1324 = vmatpush2.bf16.msra.mxu1 %v3939_v22 }
  0xc9   :  { %1284 = vmatprep.subr.bf16.mxu0 %v3945_v30  ;;  %1325 = vmatprep.subr.bf16.mxu1 %v3947_v33 }
  0xcc   :  { %1285 = vmatpush2.bf16.msra.mxu0 %v3949_v37  ;;  %1326 = vmatpush2.bf16.msra.mxu1 %v3951_v38 }
  0xcd   :  { %1286 = vmatprep.subr.bf16.mxu0 %v3957_v51  ;;  %1327 = vmatprep.subr.bf16.mxu1 %v3959_v54  ;;  %v538_v54 = vld [vmem:[#allocation5 + $0x220] sm:$0xff]  ;;  %v535_v51 = vld [vmem:[#allocation5 + $0x208] sm:$0xff] }
  0xd0   :  { %1287 = vmatpush2.bf16.msra.mxu0 %v3961_v60  ;;  %1328 = vmatpush2.bf16.msra.mxu1 %v3963_v61  ;;  %v543_v61 = vld [vmem:[#allocation5 + $0x248] sm:$0xff] }
  0xd1   :  { %1288 = vmatprep.subr.bf16.mxu0 %v3969_v9  ;;  %v547_v60 = vld [vmem:[#allocation5 + $0x268] sm:$0xff]  ;;  %1329 = vmatprep.subr.bf16.mxu1 %v3973_v29  ;;  %v534_v9 = vld [vmem:[#allocation5 + $0x200] sm:$0xff] }
  0xd2   :  { %v3993_v13 = vcombine.high %v543_v61, %v547_v60  ;;  %v539_v29 = vld [vmem:[#allocation5 + $0x228] sm:$0xff]  ;;  %v4000_v25 = vcombine.low %v543_v61, %v547_v60  ;;  %v4002_v41 = vcombine.high %v534_v9, %v538_v54  ;;  %v4008_v49 = vcombine.low %v534_v9, %v538_v54 }
  0xd3   :  { %v4005_v50 = vcombine.high %v535_v51, %v539_v29  ;;  %v4012_v60 = vcombine.low %v535_v51, %v539_v29  ;;  %v5729_v51 = vlaneseq }
  0xd4   :  { %1289 = vmatpush2.bf16.msra.mxu0 %v3971_v15  ;;  %1330 = vmatpush2.bf16.msra.mxu1 %v3975_v31  ;;  %5719 = vst [vmem:[#allocation68_spill] sm:$0xff] %v3993_v13  ;;  %5721 = vst [vmem:[#allocation70_spill] sm:$0xff] %v4000_v25  ;;  %v529_v31 = vld [vmem:[#allocation5 + $0x1d8] sm:$0xff] }
  0xd5   :  { %1290 = vmatprep.subr.bf16.mxu0 %v3977_v39  ;;  %1331 = vmatprep.subr.bf16.mxu1 %v3980_v0  ;;  %5722 = vst [vmem:[#allocation71_spill] sm:$0xff] %v4002_v41  ;;  %5723 = vst [vmem:[#allocation72_spill] sm:$0xff] %v4005_v50  ;;  %v528_v0 = vld [vmem:[#allocation5 + $0x1d0] sm:$0xff]  ;;  %v533_v15 = vld [vmem:[#allocation5 + $0x1f8] sm:$0xff]  ;;  %v4028_v29 = vshrl.u32 %v5729_v51, 7 }
  0xd6   :  { %v532_v39 = vld [vmem:[#allocation5 + $0x1f0] sm:$0xff]  ;;  %5724 = vst [vmem:[#allocation73_spill] sm:$0xff] %v4008_v49  ;;  %5725 = vst [vmem:[#allocation74_spill] sm:$0xff] %v4012_v60  ;;  %v4017_v52 = vcombine.high %v529_v31, %v533_v15  ;;  %v4025_v9 = vcombine.low %v529_v31, %v533_v15 }
  0xd7   :  { %v4014_v61 = vcombine.high %v528_v0, %v532_v39  ;;  %v4023_v54 = vcombine.low %v528_v0, %v532_v39  ;;  %5730 = vst [vmem:[#allocation78_spill] sm:$0xff] %v4028_v29  ;;  %v5423_v31 = vsub.s32 2, %v4028_v29 }
  0xd8   :  { %1291 = vmatpush2.bf16.msra.mxu0 %v3984_v1  ;;  %1332 = vmatpush2.bf16.msra.mxu1 %v3988_v3  ;;  %5727 = vst [vmem:[#allocation76_spill] sm:$0xff] %v4017_v52  ;;  %5728 = vst [vmem:[#allocation77_spill] sm:$0xff] %v4025_v9 }
  0xd9   :  { %1292 = vmatprep.subr.bf16.mxu0 %v3990_v7  ;;  %1333 = vmatprep.subr.bf16.mxu1 %v3993_v13  ;;  %5726 = vst [vmem:[#allocation75_spill] sm:$0xff] %v4014_v61 }
  0xdc   :  { %1293 = vmatpush2.bf16.msra.mxu0 %v3996_v23  ;;  %1334 = vmatpush2.bf16.msra.mxu1 %v4000_v25 }
  0xdd   :  { %1294 = vmatprep.subr.bf16.mxu0 %v4002_v41  ;;  %1335 = vmatprep.subr.bf16.mxu1 %v4005_v50  ;;  %v5413_v41 = vsub.s32 0, %v4028_v29  ;;  %v142_v50 = vld [vmem:[%s5366_s2] sm:$0xf] }
  0xe0   :  { %1295 = vmatpush2.bf16.msra.mxu0 %v4008_v49  ;;  %1336 = vmatpush2.bf16.msra.mxu1 %v4012_v60  ;;  %v5416_v49 = vsub.s32 1, %v4028_v29 }
  0xe1   :  { %1346 = vmatprep.subr.bf16.mxu0 %v4014_v61  ;;  %1387 = vmatprep.subr.bf16.mxu1 %v4017_v52  ;;  %v4037_v61 = vrot.slane %v142_v50, %v5413_v41  ;;  %v5426_v52 = vsub.s32 3, %v4028_v29  ;;  %v4049_v41 = vrot.slane %v142_v50, %v5423_v31 }
  0xe2   :  { %v4041_v0 = vrot.slane %v142_v50, %v5416_v49 }
  0xe3   :  { %v4053_v1 = vrot.slane %v142_v50, %v5426_v52 }
  0xe4   :  { %5731 = vst [vmem:[#allocation79_spill] sm:$0xff] %v4041_v0 }
  0xe5   :  { %5732 = vst [vmem:[#allocation80_spill] sm:$0xff] %v4053_v1 }
 0x162   :  { %v358_v15 = vpop.f32.mrf.mxu0  ;;  %v431_v39 = vpop.f32.mrf.mxu1 }
 0x163   :  { %v359_v51 = vadd.f32 %v358_v15, %v4037_v61 }
 0x164   :  { %v360_v60 = vpop.f32.mrf.mxu0  ;;  %v433_v25 = vpop.f32.mrf.mxu1 }
 0x165   :  { %v3126_v23 = vmul.f32 -1.442695, %v359_v51  ;;  %v361_v13 = vadd.f32 %v360_v60, %v4041_v0 }
 0x166   :  { %v362_v7 = vpop.f32.mrf.mxu0  ;;  %v435_v49 = vpop.f32.mrf.mxu1 }
 0x167   :  { %3409 = vpow2.f32 %v3126_v23  ;;  %v3127_v3 = vmul.f32 -1.442695, %v361_v13  ;;  %v4056_v15 = vadd.f32 %v362_v7, %v4037_v61  ;;  %v4059_v38 = vadd.f32 %v435_v49, %v4049_v41 }
 0x168   :  { %v364_v51 = vpop.f32.mrf.mxu0  ;;  %v437_v60 = vpop.f32.mrf.mxu1 }
 0x169   :  { %5733 = vst [vmem:[#allocation81_spill] sm:$0xff] %v4056_v15  ;;  %5734 = vst [vmem:[#allocation82_spill] sm:$0xff] %v4059_v38  ;;  %3411 = vpow2.f32 %v3127_v3  ;;  %v4062_v31 = vadd.f32 %v364_v51, %v4041_v0  ;;  %v4065_v37 = vadd.f32 %v437_v60, %v4053_v1  ;;  %v434_v51 = vadd.f32 %v433_v25, %v4053_v1 }
 0x16a   :  { %v368_v13 = vpop.f32.mrf.mxu0  ;;  %v441_v23 = vpop.f32.mrf.mxu1 }
 0x16b   :  { %5735 = vst [vmem:[#allocation83_spill] sm:$0xff] %v4062_v31  ;;  %5736 = vst [vmem:[#allocation84_spill] sm:$0xff] %v4065_v37  ;;  %v4068_v50 = vadd.f32 %v368_v13, %v4037_v61  ;;  %v4071_v7 = vadd.f32 %v441_v23, %v4049_v41 }
 0x16c   :  { %v370_v52 = vpop.f32.mrf.mxu0  ;;  %v443_v49 = vpop.f32.mrf.mxu1 }
 0x16d   :  { %5737 = vst [vmem:[#allocation85_spill] sm:$0xff] %v4068_v50  ;;  %5738 = vst [vmem:[#allocation86_spill] sm:$0xff] %v4071_v7  ;;  %v4074_v29 = vadd.f32 %v370_v52, %v4041_v0  ;;  %v4077_v3 = vadd.f32 %v443_v49, %v4053_v1  ;;  %v3128_v49 = vmul.f32 -1.442695, %v434_v51 }
 0x16e   :  { %v372_v60 = vpop.f32.mrf.mxu0  ;;  %v445_v37 = vpop.f32.mrf.mxu1 }
 0x16f   :  { %5739 = vst [vmem:[#allocation87_spill] sm:$0xff] %v4074_v29  ;;  %5740 = vst [vmem:[#allocation88_spill] sm:$0xff] %v4077_v3  ;;  %v4081_v31 = vadd.f32 %v372_v60, %v4037_v61  ;;  %v4084_v13 = vadd.f32 %v445_v37, %v4049_v41  ;;  %v432_v37 = vadd.f32 %v431_v39, %v4049_v41  ;;  %3413 = vpow2.f32 %v3128_v49 }
 0x170   :  { %v374_v23 = vpop.f32.mrf.mxu0  ;;  %v447_v7 = vpop.f32.mrf.mxu1 }
 0x171   :  { %5741 = vst [vmem:[#allocation89_spill] sm:$0xff] %v4081_v31  ;;  %5742 = vst [vmem:[#allocation90_spill] sm:$0xff] %v4084_v13  ;;  %v4087_v50 = vadd.f32 %v374_v23, %v4041_v0  ;;  %v4090_v52 = vadd.f32 %v447_v7, %v4053_v1 }
 0x172   :  { %v378_v3 = vpop.f32.mrf.mxu0  ;;  %v451_v29 = vpop.f32.mrf.mxu1 }
 0x173   :  { %5743 = vst [vmem:[#allocation91_spill] sm:$0xff] %v4087_v50  ;;  %5744 = vst [vmem:[#allocation92_spill] sm:$0xff] %v4090_v52  ;;  %v4093_v25 = vadd.f32 %v378_v3, %v4037_v61  ;;  %v4096_v60 = vadd.f32 %v451_v29, %v4049_v41  ;;  %v509_v50 = vld [vmem:[#allocation5 + $0x138] sm:$0xff] }
 0x174   :  { %v3410_v31 = vpop.eup %3409  ;;  %v380_v13 = vpop.f32.mrf.mxu0 }
 0x175   :  { %5745 = vst [vmem:[#allocation93_spill] sm:$0xff] %v4093_v25  ;;  %5746 = vst [vmem:[#allocation94_spill] sm:$0xff] %v4096_v60  ;;  %v453_v38 = vpop.f32.mrf.mxu1  ;;  %v602_v15 = vadd.f32 1.0, %v3410_v31  ;;  %v4100_v23 = vadd.f32 %v380_v13, %v4041_v0 }
 0x176   :  { %v4103_v7 = vadd.f32 %v453_v38, %v4053_v1  ;;  %v3412_v51 = vpop.eup %3411  ;;  %v382_v52 = vpop.f32.mrf.mxu0 }
 0x177   :  { %5747 = vst [vmem:[#allocation95_spill] sm:$0xff] %v4100_v23  ;;  %v455_v3 = vpop.f32.mrf.mxu1  ;;  %3415 = vrcp.f32 %v602_v15  ;;  %v608_v25 = vadd.f32 1.0, %v3412_v51  ;;  %v4106_v29 = vadd.f32 %v382_v52, %v4037_v61 }
 0x178   :  { %5748 = vst [vmem:[#allocation96_spill] sm:$0xff] %v4103_v7  ;;  %v4109_v39 = vadd.f32 %v455_v3, %v4049_v41  ;;  %3417 = vtanh.f32 %v432_v37  ;;  %v384_v31 = vpop.f32.mrf.mxu0 }
 0x179   :  { %5749 = vst [vmem:[#allocation97_spill] sm:$0xff] %v4106_v29  ;;  %v457_v60 = vpop.f32.mrf.mxu1  ;;  %3419 = vrcp.f32 %v608_v25  ;;  %v4112_v13 = vadd.f32 %v384_v31, %v4041_v0 }
 0x17a   :  { %5750 = vst [vmem:[#allocation98_spill] sm:$0xff] %v4109_v39  ;;  %v4115_v38 = vadd.f32 %v457_v60, %v4053_v1  ;;  %v388_v49 = vpop.f32.mrf.mxu0 }
 0x17b   :  { %5751 = vst [vmem:[#allocation99_spill] sm:$0xff] %v4112_v13  ;;  %v461_v7 = vpop.f32.mrf.mxu1  ;;  %v4118_v15 = vadd.f32 %v388_v49, %v4037_v61 }
 0x17c   :  { %5752 = vst [vmem:[#allocation100_spill] sm:$0xff] %v4115_v38  ;;  %v4121_v52 = vadd.f32 %v461_v7, %v4049_v41  ;;  %v390_v51 = vpop.f32.mrf.mxu0  ;;  %v3414_v49 = vpop.eup %3413 }
 0x17d   :  { %5753 = vst [vmem:[#allocation101_spill] sm:$0xff] %v4118_v15  ;;  %v463_v3 = vpop.f32.mrf.mxu1  ;;  %v4124_v37 = vadd.f32 %v390_v51, %v4041_v0  ;;  %v615_v39 = vadd.f32 1.0, %v3414_v49 }
 0x17e   :  { %5754 = vst [vmem:[#allocation102_spill] sm:$0xff] %v4121_v52  ;;  %v4127_v25 = vadd.f32 %v463_v3, %v4053_v1  ;;  %v392_v31 = vpop.f32.mrf.mxu0  ;;  %v520_v1 = vld [vmem:[#allocation5 + $0x190] sm:$0xff] }
 0x17f   :  { %5755 = vst [vmem:[#allocation103_spill] sm:$0xff] %v4124_v37  ;;  %v465_v13 = vpop.f32.mrf.mxu1  ;;  %v4130_v60 = vadd.f32 %v392_v31, %v4037_v61  ;;  %3421 = vrcp.f32 %v615_v39  ;;  %v524_v61 = vld [vmem:[#allocation5 + $0x1b0] sm:$0xff]  ;;  %v521_v31 = vld [vmem:[#allocation5 + $0x198] sm:$0xff] }
 0x180   :  { %5756 = vst [vmem:[#allocation104_spill] sm:$0xff] %v4127_v25  ;;  %v4133_v38 = vadd.f32 %v465_v13, %v4049_v41  ;;  %v4148_v39 = vcombine.low %v520_v1, %v524_v61  ;;  %v505_v37 = vld [vmem:[#allocation5 + $0x118] sm:$0xff] }
 0x181   :  { %5757 = vst [vmem:[#allocation105_spill] sm:$0xff] %v4130_v60  ;;  %v525_v60 = vld [vmem:[#allocation5 + $0x1b8] sm:$0xff] }
 0x182   :  { %5758 = vst [vmem:[#allocation106_spill] sm:$0xff] %v4133_v38  ;;  %v4140_v38 = vcombine.high %v520_v1, %v524_v61  ;;  %v4142_v25 = vcombine.high %v521_v31, %v525_v60  ;;  %5762 = vst [vmem:[#allocation110_spill] sm:$0xff] %v4148_v39 }
 0x184   :  { %v3416_v15 = vpop.eup %3415  ;;  %5760 = vst [vmem:[#allocation108_spill] sm:$0xff] %v4140_v38  ;;  %5761 = vst [vmem:[#allocation109_spill] sm:$0xff] %v4142_v25 }
 0x185   :  { %v3418_v7 = vpop.eup %3417 }
 0x186   :  { %v3420_v52 = vpop.eup %3419  ;;  %v619_v23 = vmul.f32 %v3418_v7, %v3416_v15  ;;  %v516_v15 = vld [vmem:[#allocation5 + $0x170] sm:$0xff] }
 0x187   :  { %v618_v29 = vmul.f32 0.0, %v3420_v52  ;;  %v512_v52 = vld [vmem:[#allocation5 + $0x150] sm:$0xff] }
 0x188   :  { %v4154_v49 = vcombine.high %v512_v52, %v516_v15  ;;  %v4162_v1 = vcombine.low %v512_v52, %v516_v15  ;;  %v4176_v15 = vcombine.low %v505_v37, %v509_v50 }
 0x189   :  { %v4135_v51 = vadd.f32 %v619_v23, %v618_v29  ;;  %v513_v23 = vld [vmem:[#allocation5 + $0x158] sm:$0xff] }
 0x18a   :  { %v517_v29 = vld [vmem:[#allocation5 + $0x178] sm:$0xff]  ;;  %5764 = vst [vmem:[#allocation112_spill] sm:$0xff] %v4154_v49  ;;  %5767 = vst [vmem:[#allocation114_spill] sm:$0xff] %v4162_v1 }
 0x18b   :  { %5759 = vst [vmem:[#allocation107_spill] sm:$0xff] %v4135_v51  ;;  %3423 = vtanh.f32 %v4135_v51  ;;  %v4156_v7 = vcombine.high %v513_v23, %v517_v29  ;;  %v5766_v51 = vmov 0   ;;  %5772 = vst [vmem:[#allocation119_spill] sm:$0xff] %v4176_v15 }
 0x18c   :  { %v3422_v3 = vpop.eup %3421 }
 0x18d   :  { %5765 = vst [vmem:[#allocation113_spill] sm:$0xff] %v4156_v7 }
 0x198   :  { %v3424_v0 = vpop.eup %3423 }
 0x199   :  { %v622_v41 = vmul.f32 %v3424_v0, %v3422_v3  ;;  %v4150_v0 = vcombine.low %v521_v31, %v525_v60  ;;  %v504_v3 = vld [vmem:[#allocation5 + $0x110] sm:$0xff]  ;;  %v4164_v60 = vcombine.low %v513_v23, %v517_v29  ;;  %v4170_v31 = vcombine.high %v505_v37, %v509_v50 }
 0x19b   :  { %v4138_v13 = vpack.c.bf16 %v622_v41, %v622_v41  ;;  %5763 = vst [vmem:[#allocation111_spill] sm:$0xff] %v4150_v0  ;;  %v508_v41 = vld [vmem:[#allocation5 + $0x130] sm:$0xff]  ;;  %5768 = vst [vmem:[#allocation115_spill] sm:$0xff] %v4164_v60 }
 0x19c   :  { %v4168_v61 = vcombine.high %v504_v3, %v508_v41  ;;  %5770 = vst [vmem:[#allocation117_spill] sm:$0xff] %v4170_v31  ;;  %v4174_v52 = vcombine.low %v504_v3, %v508_v41 }
 0x19d   :  { %1297 = vmatmul.mubr.bf16.vlgmr.msra.gmra.mxu0 %v4138_v13  ;;  %1338 = vmatmul.mubr.bf16.vlgmr.msra.gmra.mxu1 %v4138_v13 }
 0x19e   :  { %1347 = vmatpush1.bf16.msra.mxu0 %v4023_v54  ;;  %1388 = vmatpush1.bf16.msra.mxu1 %v4025_v9  ;;  %5769 = vst [vmem:[#allocation116_spill] sm:$0xff] %v4168_v61  ;;  %v497_v9 = vld [vmem:[#allocation5 + $0xd8] sm:$0xff]  ;;  %5771 = vst [vmem:[#allocation118_spill] sm:$0xff] %v4174_v52 }
 0x19f   :  { %1348 = vmatprep.subr.bf16.mxu0 %v4140_v38  ;;  %1389 = vmatprep.subr.bf16.mxu1 %v4142_v25  ;;  %v496_v25 = vld [vmem:[#allocation5 + $0xd0] sm:$0xff] }
 0x1a0   :  { %1378 = vmatprep.mubr.bf16.mxu0 %v5766_v51  ;;  %1419 = vmatprep.mubr.bf16.mxu1 %v5766_v51  ;;  %v500_v38 = vld [vmem:[#allocation5 + $0xf0] sm:$0xff]  ;;  %v501_v51 = vld [vmem:[#allocation5 + $0xf8] sm:$0xff] }
 0x1a1   :  { %v4180_v23 = vcombine.high %v496_v25, %v500_v38  ;;  %v4182_v29 = vcombine.high %v497_v9, %v501_v51  ;;  %v4186_v3 = vcombine.low %v496_v25, %v500_v38  ;;  %v4188_v50 = vcombine.low %v497_v9, %v501_v51 }
 0x1a2   :  { %1349 = vmatpush1.bf16.msra.mxu0 %v4148_v39  ;;  %1390 = vmatpush1.bf16.msra.mxu1 %v4150_v0  ;;  %v489_v0 = vld [vmem:[#allocation5 + $0x98] sm:$0xff] }
 0x1a3   :  { %1350 = vmatprep.subr.bf16.mxu0 %v4154_v49  ;;  %1391 = vmatprep.subr.bf16.mxu1 %v4156_v7  ;;  %5773 = vst [vmem:[#allocation120_spill] sm:$0xff] %v4180_v23  ;;  %5774 = vst [vmem:[#allocation121_spill] sm:$0xff] %v4182_v29  ;;  %v488_v7 = vld [vmem:[#allocation5 + $0x90] sm:$0xff]  ;;  %v493_v39 = vld [vmem:[#allocation5 + $0xb8] sm:$0xff] }
 0x1a4   :  { %v492_v49 = vld [vmem:[#allocation5 + $0xb0] sm:$0xff]  ;;  %5775 = vst [vmem:[#allocation122_spill] sm:$0xff] %v4186_v3  ;;  %5776 = vst [vmem:[#allocation123_spill] sm:$0xff] %v4188_v50  ;;  %v4194_v41 = vcombine.high %v489_v0, %v493_v39  ;;  %v4200_v9 = vcombine.low %v489_v0, %v493_v39 }
 0x1a5   :  { %v4192_v37 = vcombine.high %v488_v7, %v492_v49  ;;  %v4198_v38 = vcombine.low %v488_v7, %v492_v49 }
 0x1a6   :  { %1351 = vmatpush1.bf16.msra.mxu0 %v4162_v1  ;;  %1392 = vmatpush1.bf16.msra.mxu1 %v4164_v60  ;;  %5778 = vst [vmem:[#allocation125_spill] sm:$0xff] %v4194_v41  ;;  %v481_v60 = vld [vmem:[#allocation5 + $0x58] sm:$0xff]  ;;  %5780 = vst [vmem:[#allocation127_spill] sm:$0xff] %v4200_v9 }
 0x1a7   :  { %1352 = vmatprep.subr.bf16.mxu0 %v4168_v61  ;;  %1393 = vmatprep.subr.bf16.mxu1 %v4170_v31  ;;  %5777 = vst [vmem:[#allocation124_spill] sm:$0xff] %v4192_v37  ;;  %v480_v31 = vld [vmem:[#allocation5 + $0x50] sm:$0xff]  ;;  %v485_v1 = vld [vmem:[#allocation5 + $0x78] sm:$0xff]  ;;  %5779 = vst [vmem:[#allocation126_spill] sm:$0xff] %v4198_v38 }
 0x1a8   :  { %v484_v61 = vld [vmem:[#allocation5 + $0x70] sm:$0xff]  ;;  %v4206_v51 = vcombine.high %v481_v60, %v485_v1  ;;  %v4212_v39 = vcombine.low %v481_v60, %v485_v1 }
 0x1a9   :  { %v4204_v25 = vcombine.high %v480_v31, %v484_v61  ;;  %v4210_v49 = vcombine.low %v480_v31, %v484_v61 }
 0x1aa   :  { %1353 = vmatpush1.bf16.msra.mxu0 %v4174_v52  ;;  %1394 = vmatpush1.bf16.msra.mxu1 %v4176_v15  ;;  %5782 = vst [vmem:[#allocation129_spill] sm:$0xff] %v4206_v51  ;;  %v473_v15 = vld [vmem:[#allocation5 + $0x18] sm:$0xff]  ;;  %5784 = vst [vmem:[#allocation131_spill] sm:$0xff] %v4212_v39 }
 0x1ab   :  { %1354 = vmatprep.subr.bf16.mxu0 %v4180_v23  ;;  %1395 = vmatprep.subr.bf16.mxu1 %v4182_v29  ;;  %5781 = vst [vmem:[#allocation128_spill] sm:$0xff] %v4204_v25  ;;  %v472_v29 = vld [vmem:[#allocation5 + $0x10] sm:$0xff]  ;;  %v477_v52 = vld [vmem:[#allocation5 + $0x38] sm:$0xff]  ;;  %5783 = vst [vmem:[#allocation130_spill] sm:$0xff] %v4210_v49 }
 0x1ac   :  { %v476_v23 = vld [vmem:[#allocation5 + $0x30] sm:$0xff]  ;;  %v4218_v7 = vcombine.high %v473_v15, %v477_v52  ;;  %v4224_v1 = vcombine.low %v473_v15, %v477_v52 }
 0x1ad   :  { %v4216_v0 = vcombine.high %v472_v29, %v476_v23  ;;  %v4222_v61 = vcombine.low %v472_v29, %v476_v23 }
 0x1ae   :  { %1355 = vmatpush1.bf16.msra.mxu0 %v4186_v3  ;;  %1396 = vmatpush1.bf16.msra.mxu1 %v4188_v50  ;;  %5786 = vst [vmem:[#allocation133_spill] sm:$0xff] %v4218_v7  ;;  %v593_v50 = vld [vmem:[#allocation5 + $0x3d8] sm:$0xff]  ;;  %5788 = vst [vmem:[#allocation135_spill] sm:$0xff] %v4224_v1 }
 0x1af   :  { %1356 = vmatprep.subr.bf16.mxu0 %v4192_v37  ;;  %1397 = vmatprep.subr.bf16.mxu1 %v4194_v41  ;;  %5785 = vst [vmem:[#allocation132_spill] sm:$0xff] %v4216_v0  ;;  %v592_v41 = vld [vmem:[#allocation5 + $0x3d0] sm:$0xff]  ;;  %v597_v3 = vld [vmem:[#allocation5 + $0x3f8] sm:$0xff]  ;;  %5787 = vst [vmem:[#allocation134_spill] sm:$0xff] %v4222_v61 }
 0x1b0   :  { %v596_v37 = vld [vmem:[#allocation5 + $0x3f0] sm:$0xff]  ;;  %v4230_v31 = vcombine.high %v593_v50, %v597_v3  ;;  %v4236_v52 = vcombine.low %v593_v50, %v597_v3 }
 0x1b1   :  { %v4228_v60 = vcombine.high %v592_v41, %v596_v37  ;;  %v4234_v23 = vcombine.low %v592_v41, %v596_v37 }
 0x1b2   :  { %1357 = vmatpush1.bf16.msra.mxu0 %v4198_v38  ;;  %1398 = vmatpush1.bf16.msra.mxu1 %v4200_v9  ;;  %5790 = vst [vmem:[#allocation137_spill] sm:$0xff] %v4230_v31  ;;  %v585_v9 = vld [vmem:[#allocation5 + $0x398] sm:$0xff]  ;;  %5792 = vst [vmem:[#allocation139_spill] sm:$0xff] %v4236_v52 }
 0x1b3   :  { %1358 = vmatprep.subr.bf16.mxu0 %v4204_v25  ;;  %1399 = vmatprep.subr.bf16.mxu1 %v4206_v51  ;;  %5789 = vst [vmem:[#allocation136_spill] sm:$0xff] %v4228_v60  ;;  %v584_v51 = vld [vmem:[#allocation5 + $0x390] sm:$0xff]  ;;  %v589_v38 = vld [vmem:[#allocation5 + $0x3b8] sm:$0xff]  ;;  %5791 = vst [vmem:[#allocation138_spill] sm:$0xff] %v4234_v23 }
 0x1b4   :  { %v588_v25 = vld [vmem:[#allocation5 + $0x3b0] sm:$0xff]  ;;  %v4242_v29 = vcombine.high %v585_v9, %v589_v38  ;;  %v4248_v3 = vcombine.low %v585_v9, %v589_v38 }
 0x1b5   :  { %v4240_v15 = vcombine.high %v584_v51, %v588_v25  ;;  %v4246_v37 = vcombine.low %v584_v51, %v588_v25 }
 0x1b6   :  { %1359 = vmatpush1.bf16.msra.mxu0 %v4210_v49  ;;  %1400 = vmatpush1.bf16.msra.mxu1 %v4212_v39  ;;  %5794 = vst [vmem:[#allocation141_spill] sm:$0xff] %v4242_v29  ;;  %v577_v39 = vld [vmem:[#allocation5 + $0x358] sm:$0xff]  ;;  %5796 = vst [vmem:[#allocation143_spill] sm:$0xff] %v4248_v3 }
 0x1b7   :  { %1360 = vmatprep.subr.bf16.mxu0 %v4216_v0  ;;  %1401 = vmatprep.subr.bf16.mxu1 %v4218_v7  ;;  %5793 = vst [vmem:[#allocation140_spill] sm:$0xff] %v4240_v15  ;;  %v576_v7 = vld [vmem:[#allocation5 + $0x350] sm:$0xff]  ;;  %v581_v49 = vld [vmem:[#allocation5 + $0x378] sm:$0xff]  ;;  %5795 = vst [vmem:[#allocation142_spill] sm:$0xff] %v4246_v37 }
 0x1b8   :  { %v580_v0 = vld [vmem:[#allocation5 + $0x370] sm:$0xff]  ;;  %v4254_v41 = vcombine.high %v577_v39, %v581_v49  ;;  %v4260_v38 = vcombine.low %v577_v39, %v581_v49 }
 0x1b9   :  { %v4252_v50 = vcombine.high %v576_v7, %v580_v0  ;;  %v4258_v25 = vcombine.low %v576_v7, %v580_v0 }
 0x1ba   :  { %1361 = vmatpush1.bf16.msra.mxu0 %v4222_v61  ;;  %1402 = vmatpush1.bf16.msra.mxu1 %v4224_v1  ;;  %5798 = vst [vmem:[#allocation145_spill] sm:$0xff] %v4254_v41  ;;  %v569_v1 = vld [vmem:[#allocation5 + $0x318] sm:$0xff]  ;;  %5800 = vst [vmem:[#allocation147_spill] sm:$0xff] %v4260_v38 }
 0x1bb   :  { %1362 = vmatprep.subr.bf16.mxu0 %v4228_v60  ;;  %1403 = vmatprep.subr.bf16.mxu1 %v4230_v31  ;;  %5797 = vst [vmem:[#allocation144_spill] sm:$0xff] %v4252_v50  ;;  %v568_v31 = vld [vmem:[#allocation5 + $0x310] sm:$0xff]  ;;  %v573_v61 = vld [vmem:[#allocation5 + $0x338] sm:$0xff]  ;;  %5799 = vst [vmem:[#allocation146_spill] sm:$0xff] %v4258_v25 }
 0x1bc   :  { %v572_v60 = vld [vmem:[#allocation5 + $0x330] sm:$0xff]  ;;  %v4266_v51 = vcombine.high %v569_v1, %v573_v61  ;;  %v4272_v49 = vcombine.low %v569_v1, %v573_v61 }
 0x1bd   :  { %v4264_v9 = vcombine.high %v568_v31, %v572_v60  ;;  %v4270_v0 = vcombine.low %v568_v31, %v572_v60 }
 0x1be   :  { %1363 = vmatpush2.bf16.msra.mxu0 %v4234_v23  ;;  %1404 = vmatpush2.bf16.msra.mxu1 %v4236_v52  ;;  %5802 = vst [vmem:[#allocation149_spill] sm:$0xff] %v4266_v51  ;;  %v561_v52 = vld [vmem:[#allocation5 + $0x2d8] sm:$0xff]  ;;  %5804 = vst [vmem:[#allocation151_spill] sm:$0xff] %v4272_v49 }
 0x1bf   :  { %1364 = vmatprep.subr.bf16.mxu0 %v4240_v15  ;;  %1405 = vmatprep.subr.bf16.mxu1 %v4242_v29  ;;  %5801 = vst [vmem:[#allocation148_spill] sm:$0xff] %v4264_v9  ;;  %v560_v29 = vld [vmem:[#allocation5 + $0x2d0] sm:$0xff]  ;;  %v565_v23 = vld [vmem:[#allocation5 + $0x2f8] sm:$0xff]  ;;  %5803 = vst [vmem:[#allocation150_spill] sm:$0xff] %v4270_v0 }
 0x1c0   :  { %v564_v15 = vld [vmem:[#allocation5 + $0x2f0] sm:$0xff]  ;;  %v4278_v7 = vcombine.high %v561_v52, %v565_v23  ;;  %v4284_v61 = vcombine.low %v561_v52, %v565_v23 }
 0x1c1   :  { %v4276_v39 = vcombine.high %v560_v29, %v564_v15  ;;  %v4282_v60 = vcombine.low %v560_v29, %v564_v15 }
 0x1c2   :  { %1365 = vmatpush2.bf16.msra.mxu0 %v4246_v37  ;;  %1406 = vmatpush2.bf16.msra.mxu1 %v4248_v3  ;;  %5806 = vst [vmem:[#allocation153_spill] sm:$0xff] %v4278_v7  ;;  %v553_v3 = vld [vmem:[#allocation5 + $0x298] sm:$0xff]  ;;  %5808 = vst [vmem:[#allocation155_spill] sm:$0xff] %v4284_v61 }
 0x1c3   :  { %1366 = vmatprep.subr.bf16.mxu0 %v4252_v50  ;;  %1407 = vmatprep.subr.bf16.mxu1 %v4254_v41  ;;  %5805 = vst [vmem:[#allocation152_spill] sm:$0xff] %v4276_v39  ;;  %v552_v41 = vld [vmem:[#allocation5 + $0x290] sm:$0xff]  ;;  %v557_v37 = vld [vmem:[#allocation5 + $0x2b8] sm:$0xff]  ;;  %5807 = vst [vmem:[#allocation154_spill] sm:$0xff] %v4282_v60 }
 0x1c4   :  { %v556_v50 = vld [vmem:[#allocation5 + $0x2b0] sm:$0xff]  ;;  %v4290_v31 = vcombine.high %v553_v3, %v557_v37  ;;  %v4296_v23 = vcombine.low %v553_v3, %v557_v37 }
 0x1c5   :  { %v4288_v1 = vcombine.high %v552_v41, %v556_v50  ;;  %v4294_v15 = vcombine.low %v552_v41, %v556_v50 }
 0x1c6   :  { %1367 = vmatpush2.bf16.msra.mxu0 %v4258_v25  ;;  %1408 = vmatpush2.bf16.msra.mxu1 %v4260_v38  ;;  %5810 = vst [vmem:[#allocation157_spill] sm:$0xff] %v4290_v31  ;;  %v545_v38 = vld [vmem:[#allocation5 + $0x258] sm:$0xff]  ;;  %5812 = vst [vmem:[#allocation159_spill] sm:$0xff] %v4296_v23 }
 0x1c7   :  { %1368 = vmatprep.subr.bf16.mxu0 %v4264_v9  ;;  %1409 = vmatprep.subr.bf16.mxu1 %v4266_v51  ;;  %5809 = vst [vmem:[#allocation156_spill] sm:$0xff] %v4288_v1  ;;  %v544_v51 = vld [vmem:[#allocation5 + $0x250] sm:$0xff]  ;;  %v549_v25 = vld [vmem:[#allocation5 + $0x278] sm:$0xff]  ;;  %5811 = vst [vmem:[#allocation158_spill] sm:$0xff] %v4294_v15 }
 0x1c8   :  { %v548_v9 = vld [vmem:[#allocation5 + $0x270] sm:$0xff]  ;;  %v4302_v29 = vcombine.high %v545_v38, %v549_v25  ;;  %v4308_v37 = vcombine.low %v545_v38, %v549_v25  ;;  %v5822_v25 = vld [vmem:[#allocation54_spill] sm:$0xff]  ;;  %v5823_v38 = vld [vmem:[#allocation55_spill] sm:$0xff] }
 0x1c9   :  { %v4300_v52 = vcombine.high %v544_v51, %v548_v9  ;;  %v4306_v50 = vcombine.low %v544_v51, %v548_v9  ;;  %v5824_v9 = vld [vmem:[#allocation56_spill] sm:$0xff]  ;;  %v5825_v51 = vld [vmem:[#allocation57_spill] sm:$0xff] }
 0x1ca   :  { %1369 = vmatpush2.bf16.msra.mxu0 %v4270_v0  ;;  %1410 = vmatpush2.bf16.msra.mxu1 %v4272_v49  ;;  %5814 = vst [vmem:[#allocation161_spill] sm:$0xff] %v4302_v29  ;;  %v537_v49 = vld [vmem:[#allocation5 + $0x218] sm:$0xff]  ;;  %5816 = vst [vmem:[#allocation163_spill] sm:$0xff] %v4308_v37 }
 0x1cb   :  { %1370 = vmatprep.subr.bf16.mxu0 %v4276_v39  ;;  %1411 = vmatprep.subr.bf16.mxu1 %v4278_v7  ;;  %5813 = vst [vmem:[#allocation160_spill] sm:$0xff] %v4300_v52  ;;  %v536_v7 = vld [vmem:[#allocation5 + $0x210] sm:$0xff]  ;;  %v541_v0 = vld [vmem:[#allocation5 + $0x238] sm:$0xff]  ;;  %5815 = vst [vmem:[#allocation162_spill] sm:$0xff] %v4306_v50 }
 0x1cc   :  { %v540_v39 = vld [vmem:[#allocation5 + $0x230] sm:$0xff]  ;;  %v4314_v41 = vcombine.high %v537_v49, %v541_v0 }
 0x1cd   :  { %v4312_v3 = vcombine.high %v536_v7, %v540_v39 }
 0x1ce   :  { %1371 = vmatpush2.bf16.msra.mxu0 %v4282_v60  ;;  %1412 = vmatpush2.bf16.msra.mxu1 %v4284_v61  ;;  %5818 = vst [vmem:[#allocation165_spill] sm:$0xff] %v4314_v41 }
 0x1cf   :  { %1372 = vmatprep.subr.bf16.mxu0 %v4288_v1  ;;  %1413 = vmatprep.subr.bf16.mxu1 %v4290_v31  ;;  %5817 = vst [vmem:[#allocation164_spill] sm:$0xff] %v4312_v3  ;;  %v4318_v31 = vcombine.low %v536_v7, %v540_v39  ;;  %v5828_v39 = vld [vmem:[#allocation61_spill] sm:$0xff]  ;;  %v5829_v7 = vld [vmem:[#allocation60_spill] sm:$0xff] }
 0x1d1   :  { %5819 = vst [vmem:[#allocation166_spill] sm:$0xff] %v4318_v31 }
 0x1d2   :  { %1373 = vmatpush2.bf16.msra.mxu0 %v4294_v15  ;;  %1414 = vmatpush2.bf16.msra.mxu1 %v4296_v23  ;;  %v4320_v15 = vcombine.low %v537_v49, %v541_v0  ;;  %v5826_v0 = vld [vmem:[#allocation58_spill] sm:$0xff]  ;;  %v5827_v49 = vld [vmem:[#allocation59_spill] sm:$0xff] }
 0x1d3   :  { %1374 = vmatprep.subr.bf16.mxu0 %v4300_v52  ;;  %1415 = vmatprep.subr.bf16.mxu1 %v4302_v29 }
 0x1d4   :  { %5820 = vst [vmem:[#allocation167_spill] sm:$0xff] %v4320_v15 }
 0x1d6   :  { %1375 = vmatpush2.bf16.msra.mxu0 %v4306_v50  ;;  %1416 = vmatpush2.bf16.msra.mxu1 %v4308_v37 }
 0x1d7   :  { %1376 = vmatprep.subr.bf16.mxu0 %v4312_v3  ;;  %1417 = vmatprep.subr.bf16.mxu1 %v4314_v41 }
 0x1da   :  { %1377 = vmatpush2.bf16.msra.mxu0 %v4318_v31  ;;  %1418 = vmatpush2.bf16.msra.mxu1 %v4320_v15 }
 0x1db   :  { %1507 = vmatprep.subr.bf16.mxu0 %v3820_v47  ;;  %1548 = vmatprep.subr.bf16.mxu1 %v3822_v48 }
 0x1dd   :  { %1379 = vmatmul.mubr.bf16.vlgmr.msra.gmra.mxu0 %v4138_v13  ;;  %1420 = vmatmul.mubr.bf16.vlgmr.msra.gmra.mxu1 %v4138_v13  ;;  %v5821_v13 = vld [vmem:[#allocation53_spill] sm:$0xff] }
 0x1de   :  { %1508 = vmatpush1.bf16.msra.mxu0 %v3816_v43  ;;  %1549 = vmatpush1.bf16.msra.mxu1 %v3818_v46 }
 0x1df   :  { %1509 = vmatprep.subr.bf16.mxu0 %v3827_v58  ;;  %1550 = vmatprep.subr.bf16.mxu1 %v3829_v59 }
 0x1e2   :  { %1510 = vmatpush1.bf16.msra.mxu0 %v3833_v62  ;;  %1551 = vmatpush1.bf16.msra.mxu1 %v3837_v63 }
 0x1e3   :  { %1511 = vmatprep.subr.bf16.mxu0 %v3849_v8  ;;  %1552 = vmatprep.subr.bf16.mxu1 %v3851_v10 }
 0x1e6   :  { %1512 = vmatpush1.bf16.msra.mxu0 %v3853_v11  ;;  %1553 = vmatpush1.bf16.msra.mxu1 %v3855_v12 }
 0x1e7   :  { %1513 = vmatprep.subr.bf16.mxu0 %v3861_v16  ;;  %1554 = vmatprep.subr.bf16.mxu1 %v3863_v18 }
 0x1ea   :  { %1514 = vmatpush1.bf16.msra.mxu0 %v3865_v19  ;;  %1555 = vmatpush1.bf16.msra.mxu1 %v3867_v20 }
 0x1eb   :  { %1515 = vmatprep.subr.bf16.mxu0 %v3873_v24  ;;  %1556 = vmatprep.subr.bf16.mxu1 %v3875_v26 }
 0x1ee   :  { %1516 = vmatpush1.bf16.msra.mxu0 %v3877_v27  ;;  %1557 = vmatpush1.bf16.msra.mxu1 %v3879_v28 }
 0x1ef   :  { %1517 = vmatprep.subr.bf16.mxu0 %v3885_v32  ;;  %1558 = vmatprep.subr.bf16.mxu1 %v3887_v34 }
 0x1f2   :  { %1518 = vmatpush1.bf16.msra.mxu0 %v3889_v35  ;;  %1559 = vmatpush1.bf16.msra.mxu1 %v3891_v36 }
 0x1f3   :  { %1519 = vmatprep.subr.bf16.mxu0 %v3897_v40  ;;  %1560 = vmatprep.subr.bf16.mxu1 %v3899_v42 }
 0x1f6   :  { %1520 = vmatpush1.bf16.msra.mxu0 %v3901_v44  ;;  %1561 = vmatpush1.bf16.msra.mxu1 %v3903_v45 }
 0x1f7   :  { %1521 = vmatprep.subr.bf16.mxu0 %v3909_v53  ;;  %1562 = vmatprep.subr.bf16.mxu1 %v3911_v55 }
 0x1fa   :  { %1522 = vmatpush1.bf16.msra.mxu0 %v3913_v56  ;;  %1563 = vmatpush1.bf16.msra.mxu1 %v3915_v57 }
 0x1fb   :  { %1523 = vmatprep.subr.bf16.mxu0 %v3921_v2  ;;  %1564 = vmatprep.subr.bf16.mxu1 %v3923_v4 }
 0x1fe   :  { %1524 = vmatpush2.bf16.msra.mxu0 %v3925_v5  ;;  %1565 = vmatpush2.bf16.msra.mxu1 %v3927_v6 }
 0x1ff   :  { %1525 = vmatprep.subr.bf16.mxu0 %v3933_v14  ;;  %1566 = vmatprep.subr.bf16.mxu1 %v3935_v17 }
 0x202   :  { %1526 = vmatpush2.bf16.msra.mxu0 %v3937_v21  ;;  %1567 = vmatpush2.bf16.msra.mxu1 %v3939_v22  ;;  %v5847_v22 = vld [vmem:[#allocation81_spill] sm:$0xff]  ;;  %v5848_v21 = vld [vmem:[#allocation82_spill] sm:$0xff] }
 0x203   :  { %1527 = vmatprep.subr.bf16.mxu0 %v3945_v30  ;;  %1568 = vmatprep.subr.bf16.mxu1 %v3947_v33  ;;  %v5830_v30 = vld [vmem:[#allocation62_spill] sm:$0xff]  ;;  %v5831_v33 = vld [vmem:[#allocation63_spill] sm:$0xff] }
 0x206   :  { %1528 = vmatpush2.bf16.msra.mxu0 %v5821_v13  ;;  %1569 = vmatpush2.bf16.msra.mxu1 %v5822_v25  ;;  %v5832_v13 = vld [vmem:[#allocation64_spill] sm:$0xff]  ;;  %v5833_v25 = vld [vmem:[#allocation65_spill] sm:$0xff] }
 0x207   :  { %1529 = vmatprep.subr.bf16.mxu0 %v5823_v38  ;;  %1570 = vmatprep.subr.bf16.mxu1 %v5824_v9  ;;  %v5834_v38 = vld [vmem:[#allocation66_spill] sm:$0xff]  ;;  %v5835_v9 = vld [vmem:[#allocation67_spill] sm:$0xff] }
 0x20a   :  { %1530 = vmatpush2.bf16.msra.mxu0 %v5825_v51  ;;  %1571 = vmatpush2.bf16.msra.mxu1 %v5826_v0  ;;  %v5836_v51 = vld [vmem:[#allocation68_spill] sm:$0xff]  ;;  %v5837_v0 = vld [vmem:[#allocation69_spill] sm:$0xff] }
 0x20b   :  { %1531 = vmatprep.subr.bf16.mxu0 %v5827_v49  ;;  %1572 = vmatprep.subr.bf16.mxu1 %v5828_v39  ;;  %v5838_v49 = vld [vmem:[#allocation70_spill] sm:$0xff]  ;;  %v5839_v39 = vld [vmem:[#allocation71_spill] sm:$0xff] }
 0x20e   :  { %1532 = vmatpush2.bf16.msra.mxu0 %v5829_v7  ;;  %1573 = vmatpush2.bf16.msra.mxu1 %v5830_v30  ;;  %v5840_v7 = vld [vmem:[#allocation72_spill] sm:$0xff]  ;;  %v5841_v30 = vld [vmem:[#allocation73_spill] sm:$0xff] }
 0x20f   :  { %1533 = vmatprep.subr.bf16.mxu0 %v5831_v33  ;;  %1574 = vmatprep.subr.bf16.mxu1 %v5832_v13  ;;  %v5842_v33 = vld [vmem:[#allocation74_spill] sm:$0xff]  ;;  %v5843_v13 = vld [vmem:[#allocation75_spill] sm:$0xff] }
 0x212   :  { %1534 = vmatpush2.bf16.msra.mxu0 %v5833_v25  ;;  %1575 = vmatpush2.bf16.msra.mxu1 %v5834_v38  ;;  %v5844_v25 = vld [vmem:[#allocation76_spill] sm:$0xff]  ;;  %v4394_v38 = vpop.f32.mrf.mxu0 }
 0x213   :  { %1535 = vmatprep.subr.bf16.mxu0 %v5835_v9  ;;  %1576 = vmatprep.subr.bf16.mxu1 %v5836_v51  ;;  %5845 = vst [vmem:[#allocation168_spill] sm:$0xff] %v4394_v38  ;;  %v4396_v9 = vpop.f32.mrf.mxu1 }
 0x214   :  { %5846 = vst [vmem:[#allocation169_spill] sm:$0xff] %v4396_v9 }
 0x216   :  { %1536 = vmatpush2.bf16.msra.mxu0 %v5837_v0  ;;  %1577 = vmatpush2.bf16.msra.mxu1 %v5838_v49 }
 0x217   :  { %1537 = vmatprep.subr.bf16.mxu0 %v5839_v39  ;;  %1578 = vmatprep.subr.bf16.mxu1 %v5840_v7 }
 0x21a   :  { %1538 = vmatpush2.bf16.msra.mxu0 %v5841_v30  ;;  %1579 = vmatpush2.bf16.msra.mxu1 %v5842_v33  ;;  %v5849_v30 = vld [vmem:[#allocation83_spill] sm:$0xff]  ;;  %v5850_v33 = vld [vmem:[#allocation84_spill] sm:$0xff] }
 0x21b   :  { %1589 = vmatprep.subr.bf16.mxu0 %v5843_v13  ;;  %1630 = vmatprep.subr.bf16.mxu1 %v5844_v25 }
 0x25d   :  { %v1298_v51 = vpop.f32.mrf.mxu0  ;;  %v1339_v0 = vpop.f32.mrf.mxu1 }
 0x25e   :  { %v1428_v49 = vadd.f32 %v1298_v51, %v5847_v22  ;;  %v1430_v39 = vadd.f32 %v1339_v0, %v5848_v21 }
 0x25f   :  { %v1300_v17 = vpop.f32.mrf.mxu0  ;;  %v1341_v7 = vpop.f32.mrf.mxu1 }
 0x260   :  { %v3257_v14 = vmul.f32 -1.442695, %v1428_v49  ;;  %v1429_v6 = vadd.f32 %v1300_v17, %v5849_v30  ;;  %v1431_v5 = vadd.f32 %v1341_v7, %v5850_v33  ;;  %v5851_v30 = vld [vmem:[#allocation107_spill] sm:$0xff] }
 0x261   :  { %v1302_v13 = vpop.f32.mrf.mxu0  ;;  %v1343_v4 = vpop.f32.mrf.mxu1 }
 0x262   :  { %3425 = vpow2.f32 %v3257_v14  ;;  %v3258_v25 = vmul.f32 -1.442695, %v1429_v6  ;;  %v5852_v4 = vld [vmem:[#allocation78_spill] sm:$0xff] }
 0x263   :  { %v1303_v38 = vpop.f32.mrf.mxu0  ;;  %v1344_v2 = vpop.f32.mrf.mxu1  ;;  %v5853_v6 = vsub.s32 0, %v5852_v4 }
 0x264   :  { %3427 = vpow2.f32 %v3258_v25  ;;  %v598_v2 = vld [vmem:[%s5368_s4] sm:$0xf] }
 0x265   :  { %3429 = vtanh.f32 %v1430_v39  ;;  %v4410_v14 = vrot.slane %v598_v2, %v5853_v6 }
 0x267   :  { %5854 = vst [vmem:[#allocation81_spill] sm:$0xff] %v4410_v14 }
 0x26f   :  { %v3426_v9 = vpop.eup %3425 }
 0x270   :  { %v1435_v57 = vadd.f32 1.0, %v3426_v9 }
 0x271   :  { %v3428_v56 = vpop.eup %3427 }
 0x272   :  { %3431 = vrcp.f32 %v1435_v57  ;;  %v1441_v21 = vadd.f32 1.0, %v3428_v56  ;;  %v3430_v22 = vpop.eup %3429  ;;  %v5855_v57 = vsub.s32 1, %v5852_v4 }
 0x274   :  { %3433 = vrcp.f32 %v1441_v21  ;;  %v4414_v56 = vrot.slane %v598_v2, %v5855_v57 }
 0x276   :  { %5856 = vst [vmem:[#allocation82_spill] sm:$0xff] %v4414_v56 }
 0x27f   :  { %v3432_v51 = vpop.eup %3431 }
 0x280   :  { %v1452_v0 = vmul.f32 %v3432_v51, %v3430_v22 }
 0x281   :  { %v3434_v17 = vpop.eup %3433 }
 0x282   :  { %v1451_v33 = vmul.f32 %v3434_v17, %v5851_v30 }
 0x284   :  { %v4403_v13 = vadd.f32 %v1452_v0, %v1451_v33  ;;  %v5857_v33 = vsub.s32 3, %v5852_v4 }
 0x286   :  { %v4420_v6 = vrot.slane %v598_v2, %v5857_v33 }
 0x288   :  { %5858 = vst [vmem:[#allocation83_spill] sm:$0xff] %v4420_v6 }
 0x29d   :  { %v1380_v25 = vpop.f32.mrf.mxu0  ;;  %v1421_v38 = vpop.f32.mrf.mxu1 }
 0x29e   :  { %v1478_v9 = vadd.f32 %v4410_v14, %v1380_v25  ;;  %v5859_v25 = vsub.s32 2, %v5852_v4 }
 0x29f   :  { %v1382_v49 = vpop.f32.mrf.mxu0  ;;  %v1423_v39 = vpop.f32.mrf.mxu1 }
 0x2a0   :  { %v3260_v7 = vmul.f32 -1.442695, %v1478_v9  ;;  %v1479_v21 = vadd.f32 %v4414_v56, %v1382_v49  ;;  %v1481_v57 = vadd.f32 %v4420_v6, %v1423_v39  ;;  %v4425_v14 = vrot.slane %v598_v2, %v5859_v25 }
 0x2a1   :  { %v1384_v22 = vpop.f32.mrf.mxu0  ;;  %v1425_v51 = vpop.f32.mrf.mxu1  ;;  %v3259_v9 = vmul.f32 -1.442695, %v1431_v5 }
 0x2a2   :  { %3435 = vpow2.f32 %v3260_v7  ;;  %v3261_v0 = vmul.f32 -1.442695, %v1479_v21  ;;  %5860 = vst [vmem:[#allocation84_spill] sm:$0xff] %v4425_v14  ;;  %v3262_v55 = vmul.f32 -1.442695, %v1481_v57  ;;  %v1480_v22 = vadd.f32 %v4425_v14, %v1421_v38 }
 0x2a3   :  { %v1385_v17 = vpop.f32.mrf.mxu0  ;;  %v1426_v30 = vpop.f32.mrf.mxu1 }
 0x2a4   :  { %3437 = vpow2.f32 %v3261_v0 }
 0x2a5   :  { %3439 = vpow2.f32 %v3259_v9 }
 0x2a6   :  { %3441 = vpow2.f32 %v3262_v55 }
 0x2af   :  { %v3436_v49 = vpop.eup %3435 }
 0x2b0   :  { %v1485_v7 = vadd.f32 1.0, %v3436_v49 }
 0x2b1   :  { %v3438_v21 = vpop.eup %3437 }
 0x2b2   :  { %3443 = vrcp.f32 %v1485_v7  ;;  %v1491_v51 = vadd.f32 1.0, %v3438_v21  ;;  %v3440_v0 = vpop.eup %3439 }
 0x2b3   :  { %3445 = vtanh.f32 %v1480_v22  ;;  %v3442_v17 = vpop.eup %3441  ;;  %v1448_v4 = vadd.f32 1.0, %v3440_v0  ;;  %v5861_v0 = vld [vmem:[#allocation77_spill] sm:$0xff] }
 0x2b4   :  { %3447 = vrcp.f32 %v1491_v51  ;;  %v1498_v33 = vadd.f32 1.0, %v3442_v17  ;;  %v5862_v17 = vld [vmem:[#allocation108_spill] sm:$0xff] }
 0x2b5   :  { %3449 = vtanh.f32 %v4403_v13 }
 0x2b6   :  { %3451 = vrcp.f32 %v1448_v4  ;;  %v5865_v4 = vld [vmem:[#allocation111_spill] sm:$0xff] }
 0x2b7   :  { %3453 = vrcp.f32 %v1498_v33  ;;  %v5867_v33 = vld [vmem:[#allocation113_spill] sm:$0xff] }
 0x2bf   :  { %v3444_v39 = vpop.eup %3443 }
 0x2c0   :  { %v3446_v30 = vpop.eup %3445 }
 0x2c1   :  { %v3448_v2 = vpop.eup %3447  ;;  %v1502_v57 = vmul.f32 %v3446_v30, %v3444_v39  ;;  %v5863_v39 = vld [vmem:[#allocation109_spill] sm:$0xff]  ;;  %v5864_v30 = vld [vmem:[#allocation110_spill] sm:$0xff] }
 0x2c2   :  { %v1501_v5 = vmul.f32 0.0, %v3448_v2  ;;  %v3450_v55 = vpop.eup %3449  ;;  %v5866_v2 = vld [vmem:[#allocation112_spill] sm:$0xff] }
 0x2c3   :  { %v3452_v25 = vpop.eup %3451 }
 0x2c4   :  { %v4429_v38 = vadd.f32 %v1502_v57, %v1501_v5  ;;  %v3454_v9 = vpop.eup %3453  ;;  %v1455_v22 = vmul.f32 %v3452_v25, %v3450_v55  ;;  %v5868_v5 = vld [vmem:[#allocation114_spill] sm:$0xff]  ;;  %v5869_v57 = vld [vmem:[#allocation115_spill] sm:$0xff]  ;;  %v5870_v55 = vld [vmem:[#allocation116_spill] sm:$0xff] }
 0x2c5   :  { %v5871_v25 = vld [vmem:[#allocation117_spill] sm:$0xff] }
 0x2c6   :  { %3455 = vtanh.f32 %v4429_v38  ;;  %v4432_v51 = vpack.c.bf16 %v1455_v22, %v1455_v22  ;;  %v5874_v22 = vld [vmem:[#allocation120_spill] sm:$0xff] }
 0x2d3   :  { %v3456_v49 = vpop.eup %3455 }
 0x2d4   :  { %v1505_v7 = vmul.f32 %v3456_v49, %v3454_v9  ;;  %v5872_v9 = vld [vmem:[#allocation118_spill] sm:$0xff]  ;;  %v5873_v49 = vld [vmem:[#allocation119_spill] sm:$0xff] }
 0x2d6   :  { %v1506_v21 = vpack.c.bf16 %v1505_v7, %v1505_v7  ;;  %v5875_v7 = vld [vmem:[#allocation121_spill] sm:$0xff] }
 0x2d8   :  { %1539 = vmatprep.mubr.bf16.mxu0 %v1506_v21  ;;  %1580 = vmatprep.mubr.bf16.mxu1 %v1506_v21 }
 0x2d9   :  { %1540 = vmatmul.mubr.bf16.vlgmr.msra.gmra.mxu0 %v4432_v51  ;;  %1581 = vmatmul.mubr.bf16.vlgmr.msra.gmra.mxu1 %v4432_v51 }
 0x2da   :  { %1590 = vmatpush1.bf16.msra.mxu0 %v4023_v54  ;;  %1631 = vmatpush1.bf16.msra.mxu1 %v5861_v0 }
 0x2db   :  { %1621 = vmatprep.mubr.bf16.mxu0 %v1506_v21  ;;  %1662 = vmatprep.mubr.bf16.mxu1 %v1506_v21  ;;  %v5876_v21 = vld [vmem:[#allocation122_spill] sm:$0xff] }
 0x2dc   :  { %1591 = vmatprep.subr.bf16.mxu0 %v5862_v17  ;;  %1632 = vmatprep.subr.bf16.mxu1 %v5863_v39 }
 0x2de   :  { %1592 = vmatpush1.bf16.msra.mxu0 %v5864_v30  ;;  %1633 = vmatpush1.bf16.msra.mxu1 %v5865_v4 }
 0x2df   :  { %1593 = vmatprep.subr.bf16.mxu0 %v5866_v2  ;;  %1634 = vmatprep.subr.bf16.mxu1 %v5867_v33  ;;  %v5877_v2 = vld [vmem:[#allocation123_spill] sm:$0xff]  ;;  %v5878_v33 = vld [vmem:[#allocation124_spill] sm:$0xff] }
 0x2e2   :  { %1594 = vmatpush1.bf16.msra.mxu0 %v5868_v5  ;;  %1635 = vmatpush1.bf16.msra.mxu1 %v5869_v57  ;;  %v5879_v5 = vld [vmem:[#allocation125_spill] sm:$0xff]  ;;  %v5880_v57 = vld [vmem:[#allocation126_spill] sm:$0xff] }
 0x2e3   :  { %1595 = vmatprep.subr.bf16.mxu0 %v5870_v55  ;;  %1636 = vmatprep.subr.bf16.mxu1 %v5871_v25  ;;  %v5881_v55 = vld [vmem:[#allocation127_spill] sm:$0xff]  ;;  %v5882_v25 = vld [vmem:[#allocation128_spill] sm:$0xff] }
 0x2e6   :  { %1596 = vmatpush1.bf16.msra.mxu0 %v5872_v9  ;;  %1637 = vmatpush1.bf16.msra.mxu1 %v5873_v49  ;;  %v5883_v9 = vld [vmem:[#allocation129_spill] sm:$0xff]  ;;  %v5884_v49 = vld [vmem:[#allocation130_spill] sm:$0xff] }
 0x2e7   :  { %1597 = vmatprep.subr.bf16.mxu0 %v5874_v22  ;;  %1638 = vmatprep.subr.bf16.mxu1 %v5875_v7  ;;  %v5885_v22 = vld [vmem:[#allocation131_spill] sm:$0xff]  ;;  %v5886_v7 = vld [vmem:[#allocation132_spill] sm:$0xff] }
 0x2ea   :  { %1598 = vmatpush1.bf16.msra.mxu0 %v5876_v21  ;;  %1639 = vmatpush1.bf16.msra.mxu1 %v5877_v2  ;;  %v5887_v21 = vld [vmem:[#allocation133_spill] sm:$0xff]  ;;  %v5888_v2 = vld [vmem:[#allocation134_spill] sm:$0xff] }
 0x2eb   :  { %1599 = vmatprep.subr.bf16.mxu0 %v5878_v33  ;;  %1640 = vmatprep.subr.bf16.mxu1 %v5879_v5  ;;  %v5889_v33 = vld [vmem:[#allocation135_spill] sm:$0xff]  ;;  %v5890_v5 = vld [vmem:[#allocation136_spill] sm:$0xff] }
 0x2ee   :  { %1600 = vmatpush1.bf16.msra.mxu0 %v5880_v57  ;;  %1641 = vmatpush1.bf16.msra.mxu1 %v5881_v55  ;;  %v5891_v57 = vld [vmem:[#allocation137_spill] sm:$0xff]  ;;  %v5892_v55 = vld [vmem:[#allocation138_spill] sm:$0xff] }
 0x2ef   :  { %1601 = vmatprep.subr.bf16.mxu0 %v5882_v25  ;;  %1642 = vmatprep.subr.bf16.mxu1 %v5883_v9  ;;  %v5893_v25 = vld [vmem:[#allocation139_spill] sm:$0xff]  ;;  %v5894_v9 = vld [vmem:[#allocation140_spill] sm:$0xff] }
 0x2f2   :  { %1602 = vmatpush1.bf16.msra.mxu0 %v5884_v49  ;;  %1643 = vmatpush1.bf16.msra.mxu1 %v5885_v22  ;;  %v5895_v49 = vld [vmem:[#allocation141_spill] sm:$0xff]  ;;  %v5896_v22 = vld [vmem:[#allocation142_spill] sm:$0xff] }
 0x2f3   :  { %1603 = vmatprep.subr.bf16.mxu0 %v5886_v7  ;;  %1644 = vmatprep.subr.bf16.mxu1 %v5887_v21  ;;  %v5897_v7 = vld [vmem:[#allocation143_spill] sm:$0xff]  ;;  %v5898_v21 = vld [vmem:[#allocation144_spill] sm:$0xff] }
 0x2f6   :  { %1604 = vmatpush1.bf16.msra.mxu0 %v5888_v2  ;;  %1645 = vmatpush1.bf16.msra.mxu1 %v5889_v33  ;;  %v5899_v2 = vld [vmem:[#allocation145_spill] sm:$0xff]  ;;  %v5900_v33 = vld [vmem:[#allocation146_spill] sm:$0xff] }
 0x2f7   :  { %1605 = vmatprep.subr.bf16.mxu0 %v5890_v5  ;;  %1646 = vmatprep.subr.bf16.mxu1 %v5891_v57  ;;  %v5901_v5 = vld [vmem:[#allocation147_spill] sm:$0xff]  ;;  %v5902_v57 = vld [vmem:[#allocation148_spill] sm:$0xff] }
 0x2fa   :  { %1606 = vmatpush2.bf16.msra.mxu0 %v5892_v55  ;;  %1647 = vmatpush2.bf16.msra.mxu1 %v5893_v25  ;;  %v5903_v55 = vld [vmem:[#allocation149_spill] sm:$0xff]  ;;  %v5904_v25 = vld [vmem:[#allocation150_spill] sm:$0xff] }
 0x2fb   :  { %1607 = vmatprep.subr.bf16.mxu0 %v5894_v9  ;;  %1648 = vmatprep.subr.bf16.mxu1 %v5895_v49  ;;  %v5905_v9 = vld [vmem:[#allocation151_spill] sm:$0xff]  ;;  %v5906_v49 = vld [vmem:[#allocation152_spill] sm:$0xff] }
 0x2fe   :  { %1608 = vmatpush2.bf16.msra.mxu0 %v5896_v22  ;;  %1649 = vmatpush2.bf16.msra.mxu1 %v5897_v7  ;;  %v5907_v22 = vld [vmem:[#allocation153_spill] sm:$0xff] }
 0x2ff   :  { %1609 = vmatprep.subr.bf16.mxu0 %v5898_v21  ;;  %1650 = vmatprep.subr.bf16.mxu1 %v5899_v2 }
 0x302   :  { %1610 = vmatpush2.bf16.msra.mxu0 %v5900_v33  ;;  %1651 = vmatpush2.bf16.msra.mxu1 %v5901_v5  ;;  %v5908_v33 = vld [vmem:[#allocation157_spill] sm:$0xff]  ;;  %v5909_v5 = vld [vmem:[#allocation158_spill] sm:$0xff] }
 0x303   :  { %1611 = vmatprep.subr.bf16.mxu0 %v5902_v57  ;;  %1652 = vmatprep.subr.bf16.mxu1 %v5903_v55 }
 0x306   :  { %1612 = vmatpush2.bf16.msra.mxu0 %v5904_v25  ;;  %1653 = vmatpush2.bf16.msra.mxu1 %v5905_v9 }
 0x307   :  { %1613 = vmatprep.subr.bf16.mxu0 %v5906_v49  ;;  %1654 = vmatprep.subr.bf16.mxu1 %v5907_v22 }
 0x30a   :  { %1614 = vmatpush2.bf16.msra.mxu0 %v4282_v60  ;;  %1655 = vmatpush2.bf16.msra.mxu1 %v4284_v61 }
 0x30b   :  { %1615 = vmatprep.subr.bf16.mxu0 %v4288_v1  ;;  %1656 = vmatprep.subr.bf16.mxu1 %v5908_v33 }
 0x30e   :  { %1616 = vmatpush2.bf16.msra.mxu0 %v5909_v5  ;;  %1657 = vmatpush2.bf16.msra.mxu1 %v4296_v23 }
 0x30f   :  { %1617 = vmatprep.subr.bf16.mxu0 %v4300_v52  ;;  %1658 = vmatprep.subr.bf16.mxu1 %v4302_v29 }
 0x312   :  { %1618 = vmatpush2.bf16.msra.mxu0 %v4306_v50  ;;  %1659 = vmatpush2.bf16.msra.mxu1 %v4308_v37 }
 0x313   :  { %1619 = vmatprep.subr.bf16.mxu0 %v4312_v3  ;;  %1660 = vmatprep.subr.bf16.mxu1 %v4314_v41 }
 0x316   :  { %1620 = vmatpush2.bf16.msra.mxu0 %v4318_v31  ;;  %1661 = vmatpush2.bf16.msra.mxu1 %v4320_v15 }
 0x317   :  { %1729 = vmatprep.subr.bf16.mxu0 %v3820_v47  ;;  %1770 = vmatprep.subr.bf16.mxu1 %v3822_v48 }
 0x319   :  { %1622 = vmatmul.mubr.bf16.vlgmr.msra.gmra.mxu0 %v4432_v51  ;;  %1663 = vmatmul.mubr.bf16.vlgmr.msra.gmra.mxu1 %v4432_v51  ;;  %v5910_v51 = vld [vmem:[#allocation40_spill] sm:$0xff] }
 0x31a   :  { %1730 = vmatpush1.bf16.msra.mxu0 %v3816_v43  ;;  %1771 = vmatpush1.bf16.msra.mxu1 %v3818_v46 }
 0x31b   :  { %1731 = vmatprep.subr.bf16.mxu0 %v3827_v58  ;;  %1772 = vmatprep.subr.bf16.mxu1 %v3829_v59 }
 0x31e   :  { %1732 = vmatpush1.bf16.msra.mxu0 %v3833_v62  ;;  %1773 = vmatpush1.bf16.msra.mxu1 %v3837_v63 }
 0x31f   :  { %1733 = vmatprep.subr.bf16.mxu0 %v3849_v8  ;;  %1774 = vmatprep.subr.bf16.mxu1 %v3851_v10 }
 0x322   :  { %1734 = vmatpush1.bf16.msra.mxu0 %v3853_v11  ;;  %1775 = vmatpush1.bf16.msra.mxu1 %v3855_v12 }
 0x323   :  { %1735 = vmatprep.subr.bf16.mxu0 %v3861_v16  ;;  %1776 = vmatprep.subr.bf16.mxu1 %v3863_v18 }
 0x326   :  { %1736 = vmatpush1.bf16.msra.mxu0 %v3865_v19  ;;  %1777 = vmatpush1.bf16.msra.mxu1 %v3867_v20 }
 0x327   :  { %1737 = vmatprep.subr.bf16.mxu0 %v3873_v24  ;;  %1778 = vmatprep.subr.bf16.mxu1 %v3875_v26  ;;  %v5948_v26 = vld [vmem:[#allocation86_spill] sm:$0xff] }
 0x32a   :  { %1738 = vmatpush1.bf16.msra.mxu0 %v3877_v27  ;;  %1779 = vmatpush1.bf16.msra.mxu1 %v3879_v28  ;;  %v5911_v28 = vld [vmem:[#allocation41_spill] sm:$0xff] }
 0x32b   :  { %1739 = vmatprep.subr.bf16.mxu0 %v3885_v32  ;;  %1780 = vmatprep.subr.bf16.mxu1 %v3887_v34  ;;  %v5912_v32 = vld [vmem:[#allocation42_spill] sm:$0xff]  ;;  %v5913_v34 = vld [vmem:[#allocation43_spill] sm:$0xff]  ;;  %v5947_v27 = vld [vmem:[#allocation85_spill] sm:$0xff] }
 0x32e   :  { %1740 = vmatpush1.bf16.msra.mxu0 %v3889_v35  ;;  %1781 = vmatpush1.bf16.msra.mxu1 %v3891_v36  ;;  %v5914_v35 = vld [vmem:[#allocation44_spill] sm:$0xff]  ;;  %v5915_v36 = vld [vmem:[#allocation45_spill] sm:$0xff] }
 0x32f   :  { %1741 = vmatprep.subr.bf16.mxu0 %v3897_v40  ;;  %1782 = vmatprep.subr.bf16.mxu1 %v3899_v42  ;;  %v5916_v40 = vld [vmem:[#allocation46_spill] sm:$0xff]  ;;  %v5917_v42 = vld [vmem:[#allocation47_spill] sm:$0xff] }
 0x332   :  { %1742 = vmatpush1.bf16.msra.mxu0 %v3901_v44  ;;  %1783 = vmatpush1.bf16.msra.mxu1 %v3903_v45  ;;  %v5918_v44 = vld [vmem:[#allocation48_spill] sm:$0xff]  ;;  %v5919_v45 = vld [vmem:[#allocation49_spill] sm:$0xff] }
 0x333   :  { %1743 = vmatprep.subr.bf16.mxu0 %v3909_v53  ;;  %1784 = vmatprep.subr.bf16.mxu1 %v5910_v51  ;;  %v5920_v53 = vld [vmem:[#allocation50_spill] sm:$0xff]  ;;  %v5921_v51 = vld [vmem:[#allocation51_spill] sm:$0xff] }
 0x336   :  { %1744 = vmatpush1.bf16.msra.mxu0 %v5911_v28  ;;  %1785 = vmatpush1.bf16.msra.mxu1 %v5912_v32  ;;  %v5922_v28 = vld [vmem:[#allocation52_spill] sm:$0xff]  ;;  %v5923_v32 = vld [vmem:[#allocation53_spill] sm:$0xff] }
 0x337   :  { %1745 = vmatprep.subr.bf16.mxu0 %v5913_v34  ;;  %1786 = vmatprep.subr.bf16.mxu1 %v5914_v35  ;;  %v5924_v34 = vld [vmem:[#allocation54_spill] sm:$0xff]  ;;  %v5925_v35 = vld [vmem:[#allocation55_spill] sm:$0xff] }
 0x33a   :  { %1746 = vmatpush2.bf16.msra.mxu0 %v5915_v36  ;;  %1787 = vmatpush2.bf16.msra.mxu1 %v5916_v40  ;;  %v5926_v36 = vld [vmem:[#allocation56_spill] sm:$0xff]  ;;  %v5927_v40 = vld [vmem:[#allocation57_spill] sm:$0xff] }
 0x33b   :  { %1747 = vmatprep.subr.bf16.mxu0 %v5917_v42  ;;  %1788 = vmatprep.subr.bf16.mxu1 %v5918_v44  ;;  %v5928_v42 = vld [vmem:[#allocation58_spill] sm:$0xff]  ;;  %v5929_v44 = vld [vmem:[#allocation59_spill] sm:$0xff] }
 0x33e   :  { %1748 = vmatpush2.bf16.msra.mxu0 %v5919_v45  ;;  %1789 = vmatpush2.bf16.msra.mxu1 %v5920_v53  ;;  %v5930_v45 = vld [vmem:[#allocation61_spill] sm:$0xff]  ;;  %v5931_v53 = vld [vmem:[#allocation60_spill] sm:$0xff] }
 0x33f   :  { %1749 = vmatprep.subr.bf16.mxu0 %v5921_v51  ;;  %1790 = vmatprep.subr.bf16.mxu1 %v5922_v28  ;;  %v5932_v51 = vld [vmem:[#allocation62_spill] sm:$0xff]  ;;  %v5933_v28 = vld [vmem:[#allocation63_spill] sm:$0xff] }
 0x342   :  { %1750 = vmatpush2.bf16.msra.mxu0 %v5923_v32  ;;  %1791 = vmatpush2.bf16.msra.mxu1 %v5924_v34  ;;  %v5934_v32 = vld [vmem:[#allocation64_spill] sm:$0xff]  ;;  %v5935_v34 = vld [vmem:[#allocation65_spill] sm:$0xff] }
 0x343   :  { %1751 = vmatprep.subr.bf16.mxu0 %v5925_v35  ;;  %1792 = vmatprep.subr.bf16.mxu1 %v5926_v36  ;;  %v5936_v35 = vld [vmem:[#allocation66_spill] sm:$0xff]  ;;  %v5937_v36 = vld [vmem:[#allocation67_spill] sm:$0xff] }
 0x346   :  { %1752 = vmatpush2.bf16.msra.mxu0 %v5927_v40  ;;  %1793 = vmatpush2.bf16.msra.mxu1 %v5928_v42  ;;  %v5938_v40 = vld [vmem:[#allocation68_spill] sm:$0xff]  ;;  %v5939_v42 = vld [vmem:[#allocation69_spill] sm:$0xff] }
 0x347   :  { %1753 = vmatprep.subr.bf16.mxu0 %v5929_v44  ;;  %1794 = vmatprep.subr.bf16.mxu1 %v5930_v45  ;;  %v5940_v44 = vld [vmem:[#allocation70_spill] sm:$0xff]  ;;  %v5941_v45 = vld [vmem:[#allocation71_spill] sm:$0xff] }
 0x34a   :  { %1754 = vmatpush2.bf16.msra.mxu0 %v5931_v53  ;;  %1795 = vmatpush2.bf16.msra.mxu1 %v5932_v51  ;;  %v5942_v53 = vld [vmem:[#allocation72_spill] sm:$0xff]  ;;  %v5943_v51 = vld [vmem:[#allocation73_spill] sm:$0xff] }
 0x34b   :  { %1755 = vmatprep.subr.bf16.mxu0 %v5933_v28  ;;  %1796 = vmatprep.subr.bf16.mxu1 %v5934_v32  ;;  %v5944_v28 = vld [vmem:[#allocation74_spill] sm:$0xff]  ;;  %v5945_v32 = vld [vmem:[#allocation75_spill] sm:$0xff] }
 0x34e   :  { %1756 = vmatpush2.bf16.msra.mxu0 %v5935_v34  ;;  %1797 = vmatpush2.bf16.msra.mxu1 %v5936_v35  ;;  %v5946_v34 = vld [vmem:[#allocation76_spill] sm:$0xff] }
 0x34f   :  { %1757 = vmatprep.subr.bf16.mxu0 %v5937_v36  ;;  %1798 = vmatprep.subr.bf16.mxu1 %v5938_v40 }
 0x352   :  { %1758 = vmatpush2.bf16.msra.mxu0 %v5939_v42  ;;  %1799 = vmatpush2.bf16.msra.mxu1 %v5940_v44 }
 0x353   :  { %1759 = vmatprep.subr.bf16.mxu0 %v5941_v45  ;;  %1800 = vmatprep.subr.bf16.mxu1 %v5942_v53  ;;  %v5949_v45 = vld [vmem:[#allocation87_spill] sm:$0xff]  ;;  %v5950_v53 = vld [vmem:[#allocation88_spill] sm:$0xff] }
 0x356   :  { %1760 = vmatpush2.bf16.msra.mxu0 %v5943_v51  ;;  %1801 = vmatpush2.bf16.msra.mxu1 %v5944_v28 }
 0x357   :  { %1811 = vmatprep.subr.bf16.mxu0 %v5945_v32  ;;  %1852 = vmatprep.subr.bf16.mxu1 %v5946_v34 }
 0x399   :  { %v1541_v35 = vpop.f32.mrf.mxu0  ;;  %v1582_v36 = vpop.f32.mrf.mxu1 }
 0x39a   :  { %v1671_v40 = vadd.f32 %v1541_v35, %v5947_v27  ;;  %v1673_v42 = vadd.f32 %v1582_v36, %v5948_v26 }
 0x39b   :  { %v1543_v24 = vpop.f32.mrf.mxu0  ;;  %v1584_v44 = vpop.f32.mrf.mxu1 }
 0x39c   :  { %v3263_v20 = vmul.f32 -1.442695, %v1671_v40  ;;  %v1672_v19 = vadd.f32 %v1543_v24, %v5949_v45  ;;  %v1674_v18 = vadd.f32 %v1584_v44, %v5950_v53 }
 0x39d   :  { %v1545_v51 = vpop.f32.mrf.mxu0  ;;  %v1586_v16 = vpop.f32.mrf.mxu1 }
 0x39e   :  { %3457 = vpow2.f32 %v3263_v20  ;;  %v3264_v28 = vmul.f32 -1.442695, %v1672_v19  ;;  %v5951_v20 = vld [vmem:[#allocation81_spill] sm:$0xff] }
 0x39f   :  { %v1546_v32 = vpop.f32.mrf.mxu0  ;;  %v1587_v12 = vpop.f32.mrf.mxu1 }
 0x3a0   :  { %3459 = vpow2.f32 %v3264_v28 }
 0x3a1   :  { %3461 = vtanh.f32 %v1673_v42 }
 0x3ab   :  { %v3458_v34 = vpop.eup %3457 }
 0x3ac   :  { %v1678_v11 = vadd.f32 1.0, %v3458_v34 }
 0x3ad   :  { %v3460_v10 = vpop.eup %3459 }
 0x3ae   :  { %3463 = vrcp.f32 %v1678_v11  ;;  %v1684_v26 = vadd.f32 1.0, %v3460_v10  ;;  %v3462_v27 = vpop.eup %3461 }
 0x3b0   :  { %3465 = vrcp.f32 %v1684_v26  ;;  %v3265_v26 = vmul.f32 -1.442695, %v1674_v18 }
 0x3bb   :  { %v3464_v35 = vpop.eup %3463 }
 0x3bc   :  { %v1695_v36 = vmul.f32 %v3464_v35, %v3462_v27 }
 0x3bd   :  { %v3466_v24 = vpop.eup %3465 }
 0x3be   :  { %v1694_v40 = vmul.f32 %v3466_v24, %v4403_v13 }
 0x3c0   :  { %v4571_v44 = vadd.f32 %v1695_v36, %v1694_v40 }
 0x3d9   :  { %v1623_v16 = vpop.f32.mrf.mxu0  ;;  %v1664_v19 = vpop.f32.mrf.mxu1 }
 0x3da   :  { %v1700_v12 = vadd.f32 %v1623_v16, %v5951_v20  ;;  %v1702_v36 = vadd.f32 %v1664_v19, %v4425_v14 }
 0x3db   :  { %v1625_v28 = vpop.f32.mrf.mxu0  ;;  %v1666_v32 = vpop.f32.mrf.mxu1 }
 0x3dc   :  { %v3266_v34 = vmul.f32 -1.442695, %v1700_v12  ;;  %v1701_v42 = vadd.f32 %v1625_v28, %v4414_v56  ;;  %v1703_v13 = vadd.f32 %v1666_v32, %v4420_v6 }
 0x3dd   :  { %v1627_v11 = vpop.f32.mrf.mxu0  ;;  %v1668_v10 = vpop.f32.mrf.mxu1 }
 0x3de   :  { %3467 = vpow2.f32 %v3266_v34  ;;  %v3267_v45 = vmul.f32 -1.442695, %v1701_v42  ;;  %v3268_v27 = vmul.f32 -1.442695, %v1703_v13 }
 0x3df   :  { %v1628_v53 = vpop.f32.mrf.mxu0  ;;  %v1669_v51 = vpop.f32.mrf.mxu1 }
 0x3e0   :  { %3469 = vpow2.f32 %v3267_v45 }
 0x3e1   :  { %3471 = vpow2.f32 %v3265_v26 }
 0x3e2   :  { %3473 = vpow2.f32 %v3268_v27 }
 0x3eb   :  { %v3468_v35 = vpop.eup %3467 }
 0x3ec   :  { %v1707_v24 = vadd.f32 1.0, %v3468_v35 }
 0x3ed   :  { %v3470_v40 = vpop.eup %3469 }
 0x3ee   :  { %3475 = vrcp.f32 %v1707_v24  ;;  %v1713_v16 = vadd.f32 1.0, %v3470_v40  ;;  %v3472_v12 = vpop.eup %3471  ;;  %v5953_v40 = vld [vmem:[#allocation113_spill] sm:$0xff] }
 0x3ef   :  { %3477 = vtanh.f32 %v1702_v36  ;;  %v3474_v28 = vpop.eup %3473  ;;  %v1691_v11 = vadd.f32 1.0, %v3472_v12  ;;  %v5955_v12 = vld [vmem:[#allocation115_spill] sm:$0xff] }
 0x3f0   :  { %3479 = vrcp.f32 %v1713_v16  ;;  %v1720_v32 = vadd.f32 1.0, %v3474_v28  ;;  %v5954_v16 = vld [vmem:[#allocation114_spill] sm:$0xff]  ;;  %v5956_v28 = vld [vmem:[#allocation116_spill] sm:$0xff] }
 0x3f1   :  { %3481 = vtanh.f32 %v4571_v44 }
 0x3f2   :  { %3483 = vrcp.f32 %v1691_v11  ;;  %v5959_v11 = vld [vmem:[#allocation119_spill] sm:$0xff] }
 0x3f3   :  { %3485 = vrcp.f32 %v1720_v32  ;;  %v5961_v32 = vld [vmem:[#allocation121_spill] sm:$0xff] }
 0x3fb   :  { %v3476_v34 = vpop.eup %3475 }
 0x3fc   :  { %v3478_v42 = vpop.eup %3477 }
 0x3fd   :  { %v3480_v10 = vpop.eup %3479  ;;  %v1724_v18 = vmul.f32 %v3478_v42, %v3476_v34  ;;  %v5957_v34 = vld [vmem:[#allocation117_spill] sm:$0xff]  ;;  %v5958_v42 = vld [vmem:[#allocation118_spill] sm:$0xff] }
 0x3fe   :  { %v1723_v45 = vmul.f32 %v3480_v10, %v4429_v38  ;;  %v3482_v53 = vpop.eup %3481  ;;  %v5952_v38 = vld [vmem:[#allocation112_spill] sm:$0xff] }
 0x3ff   :  { %v3484_v51 = vpop.eup %3483  ;;  %v5960_v10 = vld [vmem:[#allocation120_spill] sm:$0xff] }
 0x400   :  { %v4579_v19 = vadd.f32 %v1724_v18, %v1723_v45  ;;  %v3486_v13 = vpop.eup %3485  ;;  %v1698_v27 = vmul.f32 %v3484_v51, %v3482_v53  ;;  %v5962_v18 = vld [vmem:[#allocation122_spill] sm:$0xff]  ;;  %v5963_v45 = vld [vmem:[#allocation123_spill] sm:$0xff]  ;;  %v5964_v53 = vld [vmem:[#allocation124_spill] sm:$0xff] }
 0x401   :  { %v5965_v51 = vld [vmem:[#allocation125_spill] sm:$0xff] }
 0x402   :  { %3487 = vtanh.f32 %v4579_v19  ;;  %v4582_v24 = vpack.c.bf16 %v1698_v27, %v1698_v27  ;;  %v5968_v27 = vld [vmem:[#allocation128_spill] sm:$0xff] }
 0x40f   :  { %v3488_v26 = vpop.eup %3487 }
 0x410   :  { %v1727_v35 = vmul.f32 %v3488_v26, %v3486_v13  ;;  %v5966_v13 = vld [vmem:[#allocation126_spill] sm:$0xff]  ;;  %v5967_v26 = vld [vmem:[#allocation127_spill] sm:$0xff] }
 0x412   :  { %v1728_v36 = vpack.c.bf16 %v1727_v35, %v1727_v35  ;;  %v5969_v35 = vld [vmem:[#allocation129_spill] sm:$0xff] }
 0x414   :  { %1761 = vmatprep.mubr.bf16.mxu0 %v1728_v36  ;;  %1802 = vmatprep.mubr.bf16.mxu1 %v1728_v36 }
 0x415   :  { %1762 = vmatmul.mubr.bf16.vlgmr.msra.gmra.mxu0 %v4582_v24  ;;  %1803 = vmatmul.mubr.bf16.vlgmr.msra.gmra.mxu1 %v4582_v24 }
 0x416   :  { %1812 = vmatpush1.bf16.msra.mxu0 %v4023_v54  ;;  %1853 = vmatpush1.bf16.msra.mxu1 %v5861_v0 }
 0x417   :  { %1843 = vmatprep.mubr.bf16.mxu0 %v1728_v36  ;;  %1884 = vmatprep.mubr.bf16.mxu1 %v1728_v36  ;;  %v5970_v36 = vld [vmem:[#allocation130_spill] sm:$0xff] }
 0x418   :  { %1813 = vmatprep.subr.bf16.mxu0 %v5862_v17  ;;  %1854 = vmatprep.subr.bf16.mxu1 %v5863_v39 }
 0x41a   :  { %1814 = vmatpush1.bf16.msra.mxu0 %v5864_v30  ;;  %1855 = vmatpush1.bf16.msra.mxu1 %v5865_v4 }
 0x41b   :  { %1815 = vmatprep.subr.bf16.mxu0 %v5952_v38  ;;  %1856 = vmatprep.subr.bf16.mxu1 %v5953_v40 }
 0x41e   :  { %1816 = vmatpush1.bf16.msra.mxu0 %v5954_v16  ;;  %1857 = vmatpush1.bf16.msra.mxu1 %v5955_v12 }
 0x41f   :  { %1817 = vmatprep.subr.bf16.mxu0 %v5956_v28  ;;  %1858 = vmatprep.subr.bf16.mxu1 %v5957_v34 }
 0x422   :  { %1818 = vmatpush1.bf16.msra.mxu0 %v5958_v42  ;;  %1859 = vmatpush1.bf16.msra.mxu1 %v5959_v11 }
 0x423   :  { %1819 = vmatprep.subr.bf16.mxu0 %v5960_v10  ;;  %1860 = vmatprep.subr.bf16.mxu1 %v5961_v32  ;;  %v5971_v10 = vld [vmem:[#allocation131_spill] sm:$0xff]  ;;  %v5972_v32 = vld [vmem:[#allocation132_spill] sm:$0xff] }
 0x426   :  { %1820 = vmatpush1.bf16.msra.mxu0 %v5962_v18  ;;  %1861 = vmatpush1.bf16.msra.mxu1 %v5963_v45  ;;  %v5973_v18 = vld [vmem:[#allocation133_spill] sm:$0xff]  ;;  %v5974_v45 = vld [vmem:[#allocation134_spill] sm:$0xff] }
 0x427   :  { %1821 = vmatprep.subr.bf16.mxu0 %v5964_v53  ;;  %1862 = vmatprep.subr.bf16.mxu1 %v5965_v51  ;;  %v5975_v53 = vld [vmem:[#allocation135_spill] sm:$0xff]  ;;  %v5976_v51 = vld [vmem:[#allocation136_spill] sm:$0xff] }
 0x42a   :  { %1822 = vmatpush1.bf16.msra.mxu0 %v5966_v13  ;;  %1863 = vmatpush1.bf16.msra.mxu1 %v5967_v26  ;;  %v5977_v13 = vld [vmem:[#allocation137_spill] sm:$0xff]  ;;  %v5978_v26 = vld [vmem:[#allocation138_spill] sm:$0xff] }
 0x42b   :  { %1823 = vmatprep.subr.bf16.mxu0 %v5968_v27  ;;  %1864 = vmatprep.subr.bf16.mxu1 %v5969_v35  ;;  %v5979_v27 = vld [vmem:[#allocation139_spill] sm:$0xff]  ;;  %v5980_v35 = vld [vmem:[#allocation140_spill] sm:$0xff] }
 0x42e   :  { %1824 = vmatpush1.bf16.msra.mxu0 %v5970_v36  ;;  %1865 = vmatpush1.bf16.msra.mxu1 %v5971_v10  ;;  %v5981_v36 = vld [vmem:[#allocation141_spill] sm:$0xff]  ;;  %v5982_v10 = vld [vmem:[#allocation142_spill] sm:$0xff] }
 0x42f   :  { %1825 = vmatprep.subr.bf16.mxu0 %v5972_v32  ;;  %1866 = vmatprep.subr.bf16.mxu1 %v5973_v18 }
 0x432   :  { %1826 = vmatpush1.bf16.msra.mxu0 %v5974_v45  ;;  %1867 = vmatpush1.bf16.msra.mxu1 %v5975_v53  ;;  %v5983_v53 = vld [vmem:[#allocation146_spill] sm:$0xff] }
 0x433   :  { %1827 = vmatprep.subr.bf16.mxu0 %v5976_v51  ;;  %1868 = vmatprep.subr.bf16.mxu1 %v5977_v13  ;;  %v5984_v51 = vld [vmem:[#allocation147_spill] sm:$0xff] }
 0x436   :  { %1828 = vmatpush2.bf16.msra.mxu0 %v5978_v26  ;;  %1869 = vmatpush2.bf16.msra.mxu1 %v5979_v27 }
 0x437   :  { %1829 = vmatprep.subr.bf16.mxu0 %v5980_v35  ;;  %1870 = vmatprep.subr.bf16.mxu1 %v5981_v36 }
 0x43a   :  { %1830 = vmatpush2.bf16.msra.mxu0 %v5982_v10  ;;  %1871 = vmatpush2.bf16.msra.mxu1 %v5897_v7 }
 0x43b   :  { %1831 = vmatprep.subr.bf16.mxu0 %v5898_v21  ;;  %1872 = vmatprep.subr.bf16.mxu1 %v5899_v2 }
 0x43e   :  { %1832 = vmatpush2.bf16.msra.mxu0 %v5983_v53  ;;  %1873 = vmatpush2.bf16.msra.mxu1 %v5984_v51 }
 0x43f   :  { %1833 = vmatprep.subr.bf16.mxu0 %v5902_v57  ;;  %1874 = vmatprep.subr.bf16.mxu1 %v5903_v55 }
 0x442   :  { %1834 = vmatpush2.bf16.msra.mxu0 %v5904_v25  ;;  %1875 = vmatpush2.bf16.msra.mxu1 %v5905_v9 }
 0x443   :  { %1835 = vmatprep.subr.bf16.mxu0 %v5906_v49  ;;  %1876 = vmatprep.subr.bf16.mxu1 %v5907_v22 }
 0x446   :  { %1836 = vmatpush2.bf16.msra.mxu0 %v4282_v60  ;;  %1877 = vmatpush2.bf16.msra.mxu1 %v4284_v61 }
 0x447   :  { %1837 = vmatprep.subr.bf16.mxu0 %v4288_v1  ;;  %1878 = vmatprep.subr.bf16.mxu1 %v5908_v33 }
 0x44a   :  { %1838 = vmatpush2.bf16.msra.mxu0 %v5909_v5  ;;  %1879 = vmatpush2.bf16.msra.mxu1 %v4296_v23 }
 0x44b   :  { %1839 = vmatprep.subr.bf16.mxu0 %v4300_v52  ;;  %1880 = vmatprep.subr.bf16.mxu1 %v4302_v29 }
 0x44e   :  { %1840 = vmatpush2.bf16.msra.mxu0 %v4306_v50  ;;  %1881 = vmatpush2.bf16.msra.mxu1 %v4308_v37 }
 0x44f   :  { %1841 = vmatprep.subr.bf16.mxu0 %v4312_v3  ;;  %1882 = vmatprep.subr.bf16.mxu1 %v4314_v41  ;;  %v6043_v41 = vld [vmem:[#allocation90_spill] sm:$0xff] }
 0x452   :  { %1842 = vmatpush2.bf16.msra.mxu0 %v4318_v31  ;;  %1883 = vmatpush2.bf16.msra.mxu1 %v4320_v15  ;;  %v5987_v15 = vld [vmem:[#allocation22_spill] sm:$0xff]  ;;  %v6042_v31 = vld [vmem:[#allocation89_spill] sm:$0xff] }
 0x453   :  { %1951 = vmatprep.subr.bf16.mxu0 %v3820_v47  ;;  %1992 = vmatprep.subr.bf16.mxu1 %v3822_v48  ;;  %v5985_v47 = vld [vmem:[#allocation20_spill] sm:$0xff]  ;;  %v5986_v48 = vld [vmem:[#allocation21_spill] sm:$0xff] }
 0x455   :  { %1844 = vmatmul.mubr.bf16.vlgmr.msra.gmra.mxu0 %v4582_v24  ;;  %1885 = vmatmul.mubr.bf16.vlgmr.msra.gmra.mxu1 %v4582_v24  ;;  %v5988_v24 = vld [vmem:[#allocation23_spill] sm:$0xff] }
 0x456   :  { %1952 = vmatpush1.bf16.msra.mxu0 %v3816_v43  ;;  %1993 = vmatpush1.bf16.msra.mxu1 %v3818_v46  ;;  %v5989_v43 = vld [vmem:[#allocation24_spill] sm:$0xff]  ;;  %v5990_v46 = vld [vmem:[#allocation25_spill] sm:$0xff] }
 0x457   :  { %1953 = vmatprep.subr.bf16.mxu0 %v3827_v58  ;;  %1994 = vmatprep.subr.bf16.mxu1 %v3829_v59  ;;  %v5991_v58 = vld [vmem:[#allocation26_spill] sm:$0xff]  ;;  %v5992_v59 = vld [vmem:[#allocation27_spill] sm:$0xff] }
 0x45a   :  { %1954 = vmatpush1.bf16.msra.mxu0 %v3833_v62  ;;  %1995 = vmatpush1.bf16.msra.mxu1 %v3837_v63  ;;  %v5993_v62 = vld [vmem:[#allocation28_spill] sm:$0xff]  ;;  %v5994_v63 = vld [vmem:[#allocation29_spill] sm:$0xff] }
 0x45b   :  { %1955 = vmatprep.subr.bf16.mxu0 %v3849_v8  ;;  %1996 = vmatprep.subr.bf16.mxu1 %v5985_v47  ;;  %v5995_v8 = vld [vmem:[#allocation30_spill] sm:$0xff]  ;;  %v5996_v47 = vld [vmem:[#allocation31_spill] sm:$0xff] }
 0x45e   :  { %1956 = vmatpush1.bf16.msra.mxu0 %v5986_v48  ;;  %1997 = vmatpush1.bf16.msra.mxu1 %v5987_v15  ;;  %v5997_v48 = vld [vmem:[#allocation32_spill] sm:$0xff]  ;;  %v5998_v15 = vld [vmem:[#allocation33_spill] sm:$0xff] }
 0x45f   :  { %1957 = vmatprep.subr.bf16.mxu0 %v5988_v24  ;;  %1998 = vmatprep.subr.bf16.mxu1 %v5989_v43  ;;  %v5999_v24 = vld [vmem:[#allocation34_spill] sm:$0xff]  ;;  %v6000_v43 = vld [vmem:[#allocation35_spill] sm:$0xff] }
 0x462   :  { %1958 = vmatpush1.bf16.msra.mxu0 %v5990_v46  ;;  %1999 = vmatpush1.bf16.msra.mxu1 %v5991_v58  ;;  %v6001_v46 = vld [vmem:[#allocation36_spill] sm:$0xff]  ;;  %v6002_v58 = vld [vmem:[#allocation37_spill] sm:$0xff] }
 0x463   :  { %1959 = vmatprep.subr.bf16.mxu0 %v5992_v59  ;;  %2000 = vmatprep.subr.bf16.mxu1 %v5993_v62  ;;  %v6003_v59 = vld [vmem:[#allocation38_spill] sm:$0xff]  ;;  %v6004_v62 = vld [vmem:[#allocation39_spill] sm:$0xff] }
 0x466   :  { %1960 = vmatpush1.bf16.msra.mxu0 %v5994_v63  ;;  %2001 = vmatpush1.bf16.msra.mxu1 %v5995_v8  ;;  %v6005_v63 = vld [vmem:[#allocation40_spill] sm:$0xff]  ;;  %v6006_v8 = vld [vmem:[#allocation41_spill] sm:$0xff] }
 0x467   :  { %1961 = vmatprep.subr.bf16.mxu0 %v5996_v47  ;;  %2002 = vmatprep.subr.bf16.mxu1 %v5997_v48  ;;  %v6007_v47 = vld [vmem:[#allocation42_spill] sm:$0xff]  ;;  %v6008_v48 = vld [vmem:[#allocation43_spill] sm:$0xff] }
 0x46a   :  { %1962 = vmatpush1.bf16.msra.mxu0 %v5998_v15  ;;  %2003 = vmatpush1.bf16.msra.mxu1 %v5999_v24  ;;  %v6009_v15 = vld [vmem:[#allocation44_spill] sm:$0xff]  ;;  %v6010_v24 = vld [vmem:[#allocation45_spill] sm:$0xff] }
 0x46b   :  { %1963 = vmatprep.subr.bf16.mxu0 %v6000_v43  ;;  %2004 = vmatprep.subr.bf16.mxu1 %v6001_v46  ;;  %v6011_v43 = vld [vmem:[#allocation46_spill] sm:$0xff]  ;;  %v6012_v46 = vld [vmem:[#allocation47_spill] sm:$0xff] }
 0x46e   :  { %1964 = vmatpush1.bf16.msra.mxu0 %v6002_v58  ;;  %2005 = vmatpush1.bf16.msra.mxu1 %v6003_v59  ;;  %v6013_v58 = vld [vmem:[#allocation48_spill] sm:$0xff]  ;;  %v6014_v59 = vld [vmem:[#allocation49_spill] sm:$0xff] }
 0x46f   :  { %1965 = vmatprep.subr.bf16.mxu0 %v6004_v62  ;;  %2006 = vmatprep.subr.bf16.mxu1 %v6005_v63  ;;  %v6015_v62 = vld [vmem:[#allocation50_spill] sm:$0xff]  ;;  %v6016_v63 = vld [vmem:[#allocation51_spill] sm:$0xff] }
 0x472   :  { %1966 = vmatpush1.bf16.msra.mxu0 %v6006_v8  ;;  %2007 = vmatpush1.bf16.msra.mxu1 %v6007_v47  ;;  %v6017_v8 = vld [vmem:[#allocation52_spill] sm:$0xff]  ;;  %v6018_v47 = vld [vmem:[#allocation53_spill] sm:$0xff] }
 0x473   :  { %1967 = vmatprep.subr.bf16.mxu0 %v6008_v48  ;;  %2008 = vmatprep.subr.bf16.mxu1 %v6009_v15  ;;  %v6019_v48 = vld [vmem:[#allocation54_spill] sm:$0xff]  ;;  %v6020_v15 = vld [vmem:[#allocation55_spill] sm:$0xff] }
 0x476   :  { %1968 = vmatpush2.bf16.msra.mxu0 %v6010_v24  ;;  %2009 = vmatpush2.bf16.msra.mxu1 %v6011_v43  ;;  %v6021_v24 = vld [vmem:[#allocation56_spill] sm:$0xff]  ;;  %v6022_v43 = vld [vmem:[#allocation57_spill] sm:$0xff] }
 0x477   :  { %1969 = vmatprep.subr.bf16.mxu0 %v6012_v46  ;;  %2010 = vmatprep.subr.bf16.mxu1 %v6013_v58  ;;  %v6023_v46 = vld [vmem:[#allocation58_spill] sm:$0xff]  ;;  %v6024_v58 = vld [vmem:[#allocation59_spill] sm:$0xff] }
 0x47a   :  { %1970 = vmatpush2.bf16.msra.mxu0 %v6014_v59  ;;  %2011 = vmatpush2.bf16.msra.mxu1 %v6015_v62  ;;  %v6025_v59 = vld [vmem:[#allocation61_spill] sm:$0xff]  ;;  %v6026_v62 = vld [vmem:[#allocation60_spill] sm:$0xff] }
 0x47b   :  { %1971 = vmatprep.subr.bf16.mxu0 %v6016_v63  ;;  %2012 = vmatprep.subr.bf16.mxu1 %v6017_v8  ;;  %v6027_v63 = vld [vmem:[#allocation62_spill] sm:$0xff]  ;;  %v6028_v8 = vld [vmem:[#allocation63_spill] sm:$0xff] }
 0x47e   :  { %1972 = vmatpush2.bf16.msra.mxu0 %v6018_v47  ;;  %2013 = vmatpush2.bf16.msra.mxu1 %v6019_v48  ;;  %v6029_v47 = vld [vmem:[#allocation64_spill] sm:$0xff]  ;;  %v6030_v48 = vld [vmem:[#allocation65_spill] sm:$0xff] }
 0x47f   :  { %1973 = vmatprep.subr.bf16.mxu0 %v6020_v15  ;;  %2014 = vmatprep.subr.bf16.mxu1 %v6021_v24  ;;  %v6031_v15 = vld [vmem:[#allocation66_spill] sm:$0xff]  ;;  %v6032_v24 = vld [vmem:[#allocation67_spill] sm:$0xff] }
 0x482   :  { %1974 = vmatpush2.bf16.msra.mxu0 %v6022_v43  ;;  %2015 = vmatpush2.bf16.msra.mxu1 %v6023_v46  ;;  %v6033_v43 = vld [vmem:[#allocation68_spill] sm:$0xff]  ;;  %v6034_v46 = vld [vmem:[#allocation69_spill] sm:$0xff] }
 0x483   :  { %1975 = vmatprep.subr.bf16.mxu0 %v6024_v58  ;;  %2016 = vmatprep.subr.bf16.mxu1 %v6025_v59  ;;  %v6035_v58 = vld [vmem:[#allocation70_spill] sm:$0xff]  ;;  %v6036_v59 = vld [vmem:[#allocation71_spill] sm:$0xff] }
 0x486   :  { %1976 = vmatpush2.bf16.msra.mxu0 %v6026_v62  ;;  %2017 = vmatpush2.bf16.msra.mxu1 %v6027_v63  ;;  %v6037_v62 = vld [vmem:[#allocation72_spill] sm:$0xff]  ;;  %v6038_v63 = vld [vmem:[#allocation73_spill] sm:$0xff] }
 0x487   :  { %1977 = vmatprep.subr.bf16.mxu0 %v6028_v8  ;;  %2018 = vmatprep.subr.bf16.mxu1 %v6029_v47  ;;  %v6039_v8 = vld [vmem:[#allocation74_spill] sm:$0xff]  ;;  %v6040_v47 = vld [vmem:[#allocation75_spill] sm:$0xff] }
 0x48a   :  { %1978 = vmatpush2.bf16.msra.mxu0 %v6030_v48  ;;  %2019 = vmatpush2.bf16.msra.mxu1 %v6031_v15  ;;  %v6041_v48 = vld [vmem:[#allocation76_spill] sm:$0xff] }
 0x48b   :  { %1979 = vmatprep.subr.bf16.mxu0 %v6032_v24  ;;  %2020 = vmatprep.subr.bf16.mxu1 %v6033_v43 }
 0x48e   :  { %1980 = vmatpush2.bf16.msra.mxu0 %v6034_v46  ;;  %2021 = vmatpush2.bf16.msra.mxu1 %v6035_v58 }
 0x48f   :  { %1981 = vmatprep.subr.bf16.mxu0 %v6036_v59  ;;  %2022 = vmatprep.subr.bf16.mxu1 %v6037_v62  ;;  %v6044_v59 = vld [vmem:[#allocation91_spill] sm:$0xff]  ;;  %v6045_v62 = vld [vmem:[#allocation92_spill] sm:$0xff] }
 0x492   :  { %1982 = vmatpush2.bf16.msra.mxu0 %v6038_v63  ;;  %2023 = vmatpush2.bf16.msra.mxu1 %v6039_v8 }
 0x493   :  { %2033 = vmatprep.subr.bf16.mxu0 %v6040_v47  ;;  %2074 = vmatprep.subr.bf16.mxu1 %v6041_v48 }
 0x4d5   :  { %v1763_v15 = vpop.f32.mrf.mxu0  ;;  %v1804_v24 = vpop.f32.mrf.mxu1 }
 0x4d6   :  { %v1893_v43 = vadd.f32 %v1763_v15, %v6042_v31  ;;  %v1895_v46 = vadd.f32 %v1804_v24, %v6043_v41 }
 0x4d7   :  { %v1765_v3 = vpop.f32.mrf.mxu0  ;;  %v1806_v58 = vpop.f32.mrf.mxu1 }
 0x4d8   :  { %v3269_v37 = vmul.f32 -1.442695, %v1893_v43  ;;  %v1894_v50 = vadd.f32 %v1765_v3, %v6044_v59  ;;  %v1896_v29 = vadd.f32 %v1806_v58, %v6045_v62 }
 0x4d9   :  { %v1767_v63 = vpop.f32.mrf.mxu0  ;;  %v1808_v52 = vpop.f32.mrf.mxu1 }
 0x4da   :  { %3489 = vpow2.f32 %v3269_v37  ;;  %v3270_v8 = vmul.f32 -1.442695, %v1894_v50  ;;  %v3271_v24 = vmul.f32 -1.442695, %v1896_v29 }
 0x4db   :  { %v1768_v47 = vpop.f32.mrf.mxu0  ;;  %v1809_v23 = vpop.f32.mrf.mxu1 }
 0x4dc   :  { %3491 = vpow2.f32 %v3270_v8 }
 0x4dd   :  { %3493 = vtanh.f32 %v1895_v46 }
 0x4e7   :  { %v3490_v48 = vpop.eup %3489 }
 0x4e8   :  { %v1900_v5 = vadd.f32 1.0, %v3490_v48 }
 0x4e9   :  { %v3492_v33 = vpop.eup %3491 }
 0x4ea   :  { %3495 = vrcp.f32 %v1900_v5  ;;  %v1906_v31 = vadd.f32 1.0, %v3492_v33  ;;  %v3494_v15 = vpop.eup %3493 }
 0x4ec   :  { %3497 = vrcp.f32 %v1906_v31 }
 0x4f7   :  { %v3496_v43 = vpop.eup %3495 }
 0x4f8   :  { %v1917_v41 = vmul.f32 %v3496_v43, %v3494_v15 }
 0x4f9   :  { %v3498_v59 = vpop.eup %3497 }
 0x4fa   :  { %v1916_v58 = vmul.f32 %v3498_v59, %v4571_v44 }
 0x4fc   :  { %v4721_v62 = vadd.f32 %v1917_v41, %v1916_v58 }
 0x515   :  { %v1845_v63 = vpop.f32.mrf.mxu0  ;;  %v1886_v52 = vpop.f32.mrf.mxu1 }
 0x516   :  { %v1922_v47 = vadd.f32 %v1845_v63, %v5951_v20  ;;  %v1924_v43 = vadd.f32 %v1886_v52, %v4425_v14 }
 0x517   :  { %v1847_v8 = vpop.f32.mrf.mxu0  ;;  %v1888_v23 = vpop.f32.mrf.mxu1 }
 0x518   :  { %v3272_v48 = vmul.f32 -1.442695, %v1922_v47  ;;  %v1923_v46 = vadd.f32 %v1847_v8, %v4414_v56  ;;  %v1925_v44 = vadd.f32 %v1888_v23, %v4420_v6 }
 0x519   :  { %v1849_v50 = vpop.f32.mrf.mxu0  ;;  %v1890_v37 = vpop.f32.mrf.mxu1 }
 0x51a   :  { %3499 = vpow2.f32 %v3272_v48  ;;  %v3273_v3 = vmul.f32 -1.442695, %v1923_v46  ;;  %v3274_v31 = vmul.f32 -1.442695, %v1925_v44 }
 0x51b   :  { %v1850_v33 = vpop.f32.mrf.mxu0  ;;  %v1891_v5 = vpop.f32.mrf.mxu1 }
 0x51c   :  { %3501 = vpow2.f32 %v3273_v3 }
 0x51d   :  { %3503 = vpow2.f32 %v3271_v24 }
 0x51e   :  { %3505 = vpow2.f32 %v3274_v31 }
 0x527   :  { %v3500_v15 = vpop.eup %3499 }
 0x528   :  { %v1929_v41 = vadd.f32 1.0, %v3500_v15 }
 0x529   :  { %v3502_v59 = vpop.eup %3501 }
 0x52a   :  { %3507 = vrcp.f32 %v1929_v41  ;;  %v1935_v58 = vadd.f32 1.0, %v3502_v59  ;;  %v3504_v63 = vpop.eup %3503  ;;  %v6047_v41 = vld [vmem:[#allocation121_spill] sm:$0xff]  ;;  %v6048_v59 = vld [vmem:[#allocation122_spill] sm:$0xff] }
 0x52b   :  { %3509 = vtanh.f32 %v1924_v43  ;;  %v3506_v47 = vpop.eup %3505  ;;  %v1913_v46 = vadd.f32 1.0, %v3504_v63  ;;  %v6050_v63 = vld [vmem:[#allocation124_spill] sm:$0xff] }
 0x52c   :  { %3511 = vrcp.f32 %v1935_v58  ;;  %v1942_v23 = vadd.f32 1.0, %v3506_v47  ;;  %v6049_v58 = vld [vmem:[#allocation123_spill] sm:$0xff]  ;;  %v6051_v47 = vld [vmem:[#allocation125_spill] sm:$0xff] }
 0x52d   :  { %3513 = vtanh.f32 %v4721_v62 }
 0x52e   :  { %3515 = vrcp.f32 %v1913_v46  ;;  %v6054_v46 = vld [vmem:[#allocation128_spill] sm:$0xff] }
 0x52f   :  { %3517 = vrcp.f32 %v1942_v23  ;;  %v6056_v23 = vld [vmem:[#allocation130_spill] sm:$0xff] }
 0x537   :  { %v3508_v8 = vpop.eup %3507 }
 0x538   :  { %v3510_v48 = vpop.eup %3509 }
 0x539   :  { %v3512_v50 = vpop.eup %3511  ;;  %v1946_v29 = vmul.f32 %v3510_v48, %v3508_v8  ;;  %v6052_v8 = vld [vmem:[#allocation126_spill] sm:$0xff]  ;;  %v6053_v48 = vld [vmem:[#allocation127_spill] sm:$0xff] }
 0x53a   :  { %v1945_v37 = vmul.f32 %v3512_v50, %v4579_v19  ;;  %v3514_v3 = vpop.eup %3513  ;;  %v6046_v19 = vld [vmem:[#allocation120_spill] sm:$0xff]  ;;  %v6055_v50 = vld [vmem:[#allocation129_spill] sm:$0xff] }
 0x53b   :  { %v3516_v33 = vpop.eup %3515 }
 0x53c   :  { %v4729_v52 = vadd.f32 %v1946_v29, %v1945_v37  ;;  %v3518_v5 = vpop.eup %3517  ;;  %v1920_v24 = vmul.f32 %v3516_v33, %v3514_v3  ;;  %v6057_v29 = vld [vmem:[#allocation131_spill] sm:$0xff]  ;;  %v6059_v3 = vld [vmem:[#allocation136_spill] sm:$0xff]  ;;  %v6060_v33 = vld [vmem:[#allocation157_spill] sm:$0xff] }
 0x53d   :  { %v6058_v37 = vld [vmem:[#allocation135_spill] sm:$0xff] }
 0x53e   :  { %3519 = vtanh.f32 %v4729_v52  ;;  %v4732_v43 = vpack.c.bf16 %v1920_v24, %v1920_v24  ;;  %v6063_v24 = vld [vmem:[#allocation160_spill] sm:$0xff] }
 0x54b   :  { %v3520_v44 = vpop.eup %3519 }
 0x54c   :  { %v1949_v31 = vmul.f32 %v3520_v44, %v3518_v5  ;;  %v6061_v5 = vld [vmem:[#allocation158_spill] sm:$0xff]  ;;  %v6062_v44 = vld [vmem:[#allocation159_spill] sm:$0xff] }
 0x54e   :  { %v1950_v15 = vpack.c.bf16 %v1949_v31, %v1949_v31  ;;  %v6064_v31 = vld [vmem:[#allocation161_spill] sm:$0xff] }
 0x550   :  { %1983 = vmatprep.mubr.bf16.mxu0 %v1950_v15  ;;  %2024 = vmatprep.mubr.bf16.mxu1 %v1950_v15 }
 0x551   :  { %1984 = vmatmul.mubr.bf16.vlgmr.msra.gmra.mxu0 %v4732_v43  ;;  %2025 = vmatmul.mubr.bf16.vlgmr.msra.gmra.mxu1 %v4732_v43 }
 0x552   :  { %2034 = vmatpush1.bf16.msra.mxu0 %v4023_v54  ;;  %2075 = vmatpush1.bf16.msra.mxu1 %v5861_v0 }
 0x553   :  { %2065 = vmatprep.mubr.bf16.mxu0 %v1950_v15  ;;  %2106 = vmatprep.mubr.bf16.mxu1 %v1950_v15  ;;  %v6065_v15 = vld [vmem:[#allocation162_spill] sm:$0xff] }
 0x554   :  { %2035 = vmatprep.subr.bf16.mxu0 %v5862_v17  ;;  %2076 = vmatprep.subr.bf16.mxu1 %v5863_v39 }
 0x556   :  { %2036 = vmatpush1.bf16.msra.mxu0 %v5864_v30  ;;  %2077 = vmatpush1.bf16.msra.mxu1 %v5865_v4 }
 0x557   :  { %2037 = vmatprep.subr.bf16.mxu0 %v5952_v38  ;;  %2078 = vmatprep.subr.bf16.mxu1 %v5953_v40 }
 0x55a   :  { %2038 = vmatpush1.bf16.msra.mxu0 %v5954_v16  ;;  %2079 = vmatpush1.bf16.msra.mxu1 %v5955_v12 }
 0x55b   :  { %2039 = vmatprep.subr.bf16.mxu0 %v5956_v28  ;;  %2080 = vmatprep.subr.bf16.mxu1 %v5957_v34 }
 0x55e   :  { %2040 = vmatpush1.bf16.msra.mxu0 %v5958_v42  ;;  %2081 = vmatpush1.bf16.msra.mxu1 %v5959_v11 }
 0x55f   :  { %2041 = vmatprep.subr.bf16.mxu0 %v6046_v19  ;;  %2082 = vmatprep.subr.bf16.mxu1 %v6047_v41 }
 0x562   :  { %2042 = vmatpush1.bf16.msra.mxu0 %v6048_v59  ;;  %2083 = vmatpush1.bf16.msra.mxu1 %v6049_v58 }
 0x563   :  { %2043 = vmatprep.subr.bf16.mxu0 %v6050_v63  ;;  %2084 = vmatprep.subr.bf16.mxu1 %v6051_v47 }
 0x566   :  { %2044 = vmatpush1.bf16.msra.mxu0 %v6052_v8  ;;  %2085 = vmatpush1.bf16.msra.mxu1 %v6053_v48 }
 0x567   :  { %2045 = vmatprep.subr.bf16.mxu0 %v6054_v46  ;;  %2086 = vmatprep.subr.bf16.mxu1 %v6055_v50 }
 0x56a   :  { %2046 = vmatpush1.bf16.msra.mxu0 %v6056_v23  ;;  %2087 = vmatpush1.bf16.msra.mxu1 %v6057_v29 }
 0x56b   :  { %2047 = vmatprep.subr.bf16.mxu0 %v5972_v32  ;;  %2088 = vmatprep.subr.bf16.mxu1 %v5973_v18 }
 0x56e   :  { %2048 = vmatpush1.bf16.msra.mxu0 %v5974_v45  ;;  %2089 = vmatpush1.bf16.msra.mxu1 %v6058_v37 }
 0x56f   :  { %2049 = vmatprep.subr.bf16.mxu0 %v6059_v3  ;;  %2090 = vmatprep.subr.bf16.mxu1 %v5977_v13 }
 0x572   :  { %2050 = vmatpush2.bf16.msra.mxu0 %v5978_v26  ;;  %2091 = vmatpush2.bf16.msra.mxu1 %v5979_v27 }
 0x573   :  { %2051 = vmatprep.subr.bf16.mxu0 %v5980_v35  ;;  %2092 = vmatprep.subr.bf16.mxu1 %v5981_v36 }
 0x576   :  { %2052 = vmatpush2.bf16.msra.mxu0 %v5982_v10  ;;  %2093 = vmatpush2.bf16.msra.mxu1 %v5897_v7 }
 0x577   :  { %2053 = vmatprep.subr.bf16.mxu0 %v5898_v21  ;;  %2094 = vmatprep.subr.bf16.mxu1 %v5899_v2 }
 0x57a   :  { %2054 = vmatpush2.bf16.msra.mxu0 %v5983_v53  ;;  %2095 = vmatpush2.bf16.msra.mxu1 %v5984_v51 }
 0x57b   :  { %2055 = vmatprep.subr.bf16.mxu0 %v5902_v57  ;;  %2096 = vmatprep.subr.bf16.mxu1 %v5903_v55 }
 0x57e   :  { %2056 = vmatpush2.bf16.msra.mxu0 %v5904_v25  ;;  %2097 = vmatpush2.bf16.msra.mxu1 %v5905_v9  ;;  %v6138_v9 = vld [vmem:[#allocation94_spill] sm:$0xff] }
 0x57f   :  { %2057 = vmatprep.subr.bf16.mxu0 %v5906_v49  ;;  %2098 = vmatprep.subr.bf16.mxu1 %v5907_v22  ;;  %v6066_v49 = vld [vmem:[#allocation163_spill] sm:$0xff]  ;;  %v6067_v22 = vld [vmem:[#allocation164_spill] sm:$0xff] }
 0x582   :  { %2058 = vmatpush2.bf16.msra.mxu0 %v4282_v60  ;;  %2099 = vmatpush2.bf16.msra.mxu1 %v4284_v61  ;;  %v6068_v60 = vld [vmem:[#allocation165_spill] sm:$0xff]  ;;  %v6069_v61 = vld [vmem:[#allocation166_spill] sm:$0xff] }
 0x583   :  { %2059 = vmatprep.subr.bf16.mxu0 %v4288_v1  ;;  %2100 = vmatprep.subr.bf16.mxu1 %v6060_v33  ;;  %v6070_v1 = vld [vmem:[#allocation167_spill] sm:$0xff]  ;;  %v6071_v33 = vld [vmem:[#allocation13_spill] sm:$0xff] }
 0x586   :  { %2060 = vmatpush2.bf16.msra.mxu0 %v6061_v5  ;;  %2101 = vmatpush2.bf16.msra.mxu1 %v6062_v44  ;;  %v6072_v5 = vld [vmem:[#allocation14_spill] sm:$0xff]  ;;  %v6137_v44 = vld [vmem:[#allocation93_spill] sm:$0xff] }
 0x587   :  { %2061 = vmatprep.subr.bf16.mxu0 %v6063_v24  ;;  %2102 = vmatprep.subr.bf16.mxu1 %v6064_v31  ;;  %v6073_v31 = vld [vmem:[#allocation11_spill] sm:$0xff]  ;;  %v6082_v24 = vld [vmem:[#allocation22_spill] sm:$0xff] }
 0x58a   :  { %2062 = vmatpush2.bf16.msra.mxu0 %v6065_v15  ;;  %2103 = vmatpush2.bf16.msra.mxu1 %v6066_v49  ;;  %v6074_v15 = vld [vmem:[#allocation12_spill] sm:$0xff]  ;;  %v6075_v49 = vld [vmem:[#allocation15_spill] sm:$0xff] }
 0x58b   :  { %2063 = vmatprep.subr.bf16.mxu0 %v6067_v22  ;;  %2104 = vmatprep.subr.bf16.mxu1 %v6068_v60  ;;  %v6076_v22 = vld [vmem:[#allocation16_spill] sm:$0xff]  ;;  %v6077_v60 = vld [vmem:[#allocation17_spill] sm:$0xff] }
 0x58e   :  { %2064 = vmatpush2.bf16.msra.mxu0 %v6069_v61  ;;  %2105 = vmatpush2.bf16.msra.mxu1 %v6070_v1  ;;  %v6078_v61 = vld [vmem:[#allocation18_spill] sm:$0xff]  ;;  %v6079_v1 = vld [vmem:[#allocation19_spill] sm:$0xff] }
 0x58f   :  { %2173 = vmatprep.subr.bf16.mxu0 %v6071_v33  ;;  %2214 = vmatprep.subr.bf16.mxu1 %v6072_v5  ;;  %v6080_v33 = vld [vmem:[#allocation20_spill] sm:$0xff]  ;;  %v6081_v5 = vld [vmem:[#allocation21_spill] sm:$0xff] }
 0x591   :  { %2066 = vmatmul.mubr.bf16.vlgmr.msra.gmra.mxu0 %v4732_v43  ;;  %2107 = vmatmul.mubr.bf16.vlgmr.msra.gmra.mxu1 %v4732_v43  ;;  %v6083_v43 = vld [vmem:[#allocation23_spill] sm:$0xff] }
 0x592   :  { %2174 = vmatpush1.bf16.msra.mxu0 %v6073_v31  ;;  %2215 = vmatpush1.bf16.msra.mxu1 %v6074_v15  ;;  %v6084_v31 = vld [vmem:[#allocation24_spill] sm:$0xff]  ;;  %v6085_v15 = vld [vmem:[#allocation25_spill] sm:$0xff] }
 0x593   :  { %2175 = vmatprep.subr.bf16.mxu0 %v6075_v49  ;;  %2216 = vmatprep.subr.bf16.mxu1 %v6076_v22  ;;  %v6086_v49 = vld [vmem:[#allocation26_spill] sm:$0xff]  ;;  %v6087_v22 = vld [vmem:[#allocation27_spill] sm:$0xff] }
 0x596   :  { %2176 = vmatpush1.bf16.msra.mxu0 %v6077_v60  ;;  %2217 = vmatpush1.bf16.msra.mxu1 %v6078_v61  ;;  %v6088_v60 = vld [vmem:[#allocation28_spill] sm:$0xff]  ;;  %v6089_v61 = vld [vmem:[#allocation29_spill] sm:$0xff] }
 0x597   :  { %2177 = vmatprep.subr.bf16.mxu0 %v6079_v1  ;;  %2218 = vmatprep.subr.bf16.mxu1 %v6080_v33  ;;  %v6090_v1 = vld [vmem:[#allocation30_spill] sm:$0xff]  ;;  %v6091_v33 = vld [vmem:[#allocation31_spill] sm:$0xff] }
 0x59a   :  { %2178 = vmatpush1.bf16.msra.mxu0 %v6081_v5  ;;  %2219 = vmatpush1.bf16.msra.mxu1 %v6082_v24  ;;  %v6092_v5 = vld [vmem:[#allocation32_spill] sm:$0xff]  ;;  %v6093_v24 = vld [vmem:[#allocation33_spill] sm:$0xff] }
 0x59b   :  { %2179 = vmatprep.subr.bf16.mxu0 %v6083_v43  ;;  %2220 = vmatprep.subr.bf16.mxu1 %v6084_v31  ;;  %v6094_v43 = vld [vmem:[#allocation34_spill] sm:$0xff]  ;;  %v6095_v31 = vld [vmem:[#allocation35_spill] sm:$0xff] }
 0x59e   :  { %2180 = vmatpush1.bf16.msra.mxu0 %v6085_v15  ;;  %2221 = vmatpush1.bf16.msra.mxu1 %v6086_v49  ;;  %v6096_v15 = vld [vmem:[#allocation36_spill] sm:$0xff]  ;;  %v6097_v49 = vld [vmem:[#allocation37_spill] sm:$0xff] }
 0x59f   :  { %2181 = vmatprep.subr.bf16.mxu0 %v6087_v22  ;;  %2222 = vmatprep.subr.bf16.mxu1 %v6088_v60  ;;  %v6098_v22 = vld [vmem:[#allocation38_spill] sm:$0xff]  ;;  %v6099_v60 = vld [vmem:[#allocation39_spill] sm:$0xff] }
 0x5a2   :  { %2182 = vmatpush1.bf16.msra.mxu0 %v6089_v61  ;;  %2223 = vmatpush1.bf16.msra.mxu1 %v6090_v1  ;;  %v6100_v61 = vld [vmem:[#allocation40_spill] sm:$0xff]  ;;  %v6101_v1 = vld [vmem:[#allocation41_spill] sm:$0xff] }
 0x5a3   :  { %2183 = vmatprep.subr.bf16.mxu0 %v6091_v33  ;;  %2224 = vmatprep.subr.bf16.mxu1 %v6092_v5  ;;  %v6102_v33 = vld [vmem:[#allocation42_spill] sm:$0xff]  ;;  %v6103_v5 = vld [vmem:[#allocation43_spill] sm:$0xff] }
 0x5a6   :  { %2184 = vmatpush1.bf16.msra.mxu0 %v6093_v24  ;;  %2225 = vmatpush1.bf16.msra.mxu1 %v6094_v43  ;;  %v6104_v24 = vld [vmem:[#allocation44_spill] sm:$0xff]  ;;  %v6105_v43 = vld [vmem:[#allocation45_spill] sm:$0xff] }
 0x5a7   :  { %2185 = vmatprep.subr.bf16.mxu0 %v6095_v31  ;;  %2226 = vmatprep.subr.bf16.mxu1 %v6096_v15  ;;  %v6106_v31 = vld [vmem:[#allocation46_spill] sm:$0xff]  ;;  %v6107_v15 = vld [vmem:[#allocation47_spill] sm:$0xff] }
 0x5aa   :  { %2186 = vmatpush1.bf16.msra.mxu0 %v6097_v49  ;;  %2227 = vmatpush1.bf16.msra.mxu1 %v6098_v22  ;;  %v6108_v49 = vld [vmem:[#allocation48_spill] sm:$0xff]  ;;  %v6109_v22 = vld [vmem:[#allocation49_spill] sm:$0xff] }
 0x5ab   :  { %2187 = vmatprep.subr.bf16.mxu0 %v6099_v60  ;;  %2228 = vmatprep.subr.bf16.mxu1 %v6100_v61  ;;  %v6110_v60 = vld [vmem:[#allocation50_spill] sm:$0xff]  ;;  %v6111_v61 = vld [vmem:[#allocation51_spill] sm:$0xff] }
 0x5ae   :  { %2188 = vmatpush1.bf16.msra.mxu0 %v6101_v1  ;;  %2229 = vmatpush1.bf16.msra.mxu1 %v6102_v33  ;;  %v6112_v1 = vld [vmem:[#allocation52_spill] sm:$0xff]  ;;  %v6113_v33 = vld [vmem:[#allocation53_spill] sm:$0xff] }
 0x5af   :  { %2189 = vmatprep.subr.bf16.mxu0 %v6103_v5  ;;  %2230 = vmatprep.subr.bf16.mxu1 %v6104_v24  ;;  %v6114_v5 = vld [vmem:[#allocation54_spill] sm:$0xff]  ;;  %v6115_v24 = vld [vmem:[#allocation55_spill] sm:$0xff] }
 0x5b2   :  { %2190 = vmatpush2.bf16.msra.mxu0 %v6105_v43  ;;  %2231 = vmatpush2.bf16.msra.mxu1 %v6106_v31  ;;  %v6116_v43 = vld [vmem:[#allocation56_spill] sm:$0xff]  ;;  %v6117_v31 = vld [vmem:[#allocation57_spill] sm:$0xff] }
 0x5b3   :  { %2191 = vmatprep.subr.bf16.mxu0 %v6107_v15  ;;  %2232 = vmatprep.subr.bf16.mxu1 %v6108_v49  ;;  %v6118_v15 = vld [vmem:[#allocation58_spill] sm:$0xff]  ;;  %v6119_v49 = vld [vmem:[#allocation59_spill] sm:$0xff] }
 0x5b6   :  { %2192 = vmatpush2.bf16.msra.mxu0 %v6109_v22  ;;  %2233 = vmatpush2.bf16.msra.mxu1 %v6110_v60  ;;  %v6120_v22 = vld [vmem:[#allocation61_spill] sm:$0xff]  ;;  %v6121_v60 = vld [vmem:[#allocation60_spill] sm:$0xff] }
 0x5b7   :  { %2193 = vmatprep.subr.bf16.mxu0 %v6111_v61  ;;  %2234 = vmatprep.subr.bf16.mxu1 %v6112_v1  ;;  %v6122_v61 = vld [vmem:[#allocation62_spill] sm:$0xff]  ;;  %v6123_v1 = vld [vmem:[#allocation63_spill] sm:$0xff] }
 0x5ba   :  { %2194 = vmatpush2.bf16.msra.mxu0 %v6113_v33  ;;  %2235 = vmatpush2.bf16.msra.mxu1 %v6114_v5  ;;  %v6124_v33 = vld [vmem:[#allocation64_spill] sm:$0xff]  ;;  %v6125_v5 = vld [vmem:[#allocation65_spill] sm:$0xff] }
 0x5bb   :  { %2195 = vmatprep.subr.bf16.mxu0 %v6115_v24  ;;  %2236 = vmatprep.subr.bf16.mxu1 %v6116_v43  ;;  %v6126_v24 = vld [vmem:[#allocation66_spill] sm:$0xff]  ;;  %v6127_v43 = vld [vmem:[#allocation67_spill] sm:$0xff] }
 0x5be   :  { %2196 = vmatpush2.bf16.msra.mxu0 %v6117_v31  ;;  %2237 = vmatpush2.bf16.msra.mxu1 %v6118_v15  ;;  %v6128_v31 = vld [vmem:[#allocation68_spill] sm:$0xff]  ;;  %v6129_v15 = vld [vmem:[#allocation69_spill] sm:$0xff] }
 0x5bf   :  { %2197 = vmatprep.subr.bf16.mxu0 %v6119_v49  ;;  %2238 = vmatprep.subr.bf16.mxu1 %v6120_v22  ;;  %v6130_v49 = vld [vmem:[#allocation70_spill] sm:$0xff]  ;;  %v6131_v22 = vld [vmem:[#allocation71_spill] sm:$0xff] }
 0x5c2   :  { %2198 = vmatpush2.bf16.msra.mxu0 %v6121_v60  ;;  %2239 = vmatpush2.bf16.msra.mxu1 %v6122_v61  ;;  %v6132_v60 = vld [vmem:[#allocation72_spill] sm:$0xff]  ;;  %v6133_v61 = vld [vmem:[#allocation73_spill] sm:$0xff] }
 0x5c3   :  { %2199 = vmatprep.subr.bf16.mxu0 %v6123_v1  ;;  %2240 = vmatprep.subr.bf16.mxu1 %v6124_v33  ;;  %v6134_v1 = vld [vmem:[#allocation74_spill] sm:$0xff]  ;;  %v6135_v33 = vld [vmem:[#allocation75_spill] sm:$0xff] }
 0x5c6   :  { %2200 = vmatpush2.bf16.msra.mxu0 %v6125_v5  ;;  %2241 = vmatpush2.bf16.msra.mxu1 %v6126_v24  ;;  %v6136_v5 = vld [vmem:[#allocation76_spill] sm:$0xff] }
 0x5c7   :  { %2201 = vmatprep.subr.bf16.mxu0 %v6127_v43  ;;  %2242 = vmatprep.subr.bf16.mxu1 %v6128_v31 }
 0x5ca   :  { %2202 = vmatpush2.bf16.msra.mxu0 %v6129_v15  ;;  %2243 = vmatpush2.bf16.msra.mxu1 %v6130_v49 }
 0x5cb   :  { %2203 = vmatprep.subr.bf16.mxu0 %v6131_v22  ;;  %2244 = vmatprep.subr.bf16.mxu1 %v6132_v60  ;;  %v6139_v22 = vld [vmem:[#allocation95_spill] sm:$0xff]  ;;  %v6140_v60 = vld [vmem:[#allocation96_spill] sm:$0xff] }
 0x5ce   :  { %2204 = vmatpush2.bf16.msra.mxu0 %v6133_v61  ;;  %2245 = vmatpush2.bf16.msra.mxu1 %v6134_v1 }
 0x5cf   :  { %2255 = vmatprep.subr.bf16.mxu0 %v6135_v33  ;;  %2296 = vmatprep.subr.bf16.mxu1 %v6136_v5 }
 0x611   :  { %v1985_v24 = vpop.f32.mrf.mxu0  ;;  %v2026_v43 = vpop.f32.mrf.mxu1 }
 0x612   :  { %v2115_v31 = vadd.f32 %v1985_v24, %v6137_v44  ;;  %v2117_v15 = vadd.f32 %v2026_v43, %v6138_v9 }
 0x613   :  { %v1987_v25 = vpop.f32.mrf.mxu0  ;;  %v2028_v49 = vpop.f32.mrf.mxu1 }
 0x614   :  { %v3275_v55 = vmul.f32 -1.442695, %v2115_v31  ;;  %v2116_v57 = vadd.f32 %v1987_v25, %v6139_v22  ;;  %v2118_v51 = vadd.f32 %v2028_v49, %v6140_v60 }
 0x615   :  { %v1989_v61 = vpop.f32.mrf.mxu0  ;;  %v2030_v53 = vpop.f32.mrf.mxu1 }
 0x616   :  { %3521 = vpow2.f32 %v3275_v55  ;;  %v3276_v1 = vmul.f32 -1.442695, %v2116_v57  ;;  %v3277_v43 = vmul.f32 -1.442695, %v2118_v51 }
 0x617   :  { %v1990_v33 = vpop.f32.mrf.mxu0  ;;  %v2031_v2 = vpop.f32.mrf.mxu1 }
 0x618   :  { %3523 = vpow2.f32 %v3276_v1 }
 0x619   :  { %3525 = vtanh.f32 %v2117_v15 }
 0x623   :  { %v3522_v5 = vpop.eup %3521 }
 0x624   :  { %v2122_v21 = vadd.f32 1.0, %v3522_v5 }
 0x625   :  { %v3524_v7 = vpop.eup %3523 }
 0x626   :  { %3527 = vrcp.f32 %v2122_v21  ;;  %v2128_v9 = vadd.f32 1.0, %v3524_v7  ;;  %v3526_v44 = vpop.eup %3525 }
 0x628   :  { %3529 = vrcp.f32 %v2128_v9 }
 0x633   :  { %v3528_v24 = vpop.eup %3527 }
 0x634   :  { %v2139_v31 = vmul.f32 %v3528_v24, %v3526_v44 }
 0x635   :  { %v3530_v25 = vpop.eup %3529 }
 0x636   :  { %v2138_v60 = vmul.f32 %v3530_v25, %v4721_v62 }
 0x638   :  { %v4871_v61 = vadd.f32 %v2139_v31, %v2138_v60 }
 0x651   :  { %v2067_v55 = vpop.f32.mrf.mxu0  ;;  %v2108_v57 = vpop.f32.mrf.mxu1 }
 0x652   :  { %v2144_v2 = vadd.f32 %v2067_v55, %v5951_v20  ;;  %v2146_v24 = vadd.f32 %v2108_v57, %v4425_v14 }
 0x653   :  { %v2069_v1 = vpop.f32.mrf.mxu0  ;;  %v2110_v49 = vpop.f32.mrf.mxu1 }
 0x654   :  { %v3278_v22 = vmul.f32 -1.442695, %v2144_v2  ;;  %v2145_v53 = vadd.f32 %v2069_v1, %v4414_v56  ;;  %v2147_v62 = vadd.f32 %v2110_v49, %v4420_v6 }
 0x655   :  { %v2071_v21 = vpop.f32.mrf.mxu0  ;;  %v2112_v7 = vpop.f32.mrf.mxu1 }
 0x656   :  { %3531 = vpow2.f32 %v3278_v22  ;;  %v3279_v33 = vmul.f32 -1.442695, %v2145_v53  ;;  %v3280_v9 = vmul.f32 -1.442695, %v2147_v62 }
 0x657   :  { %v2072_v5 = vpop.f32.mrf.mxu0  ;;  %v2113_v15 = vpop.f32.mrf.mxu1 }
 0x658   :  { %3533 = vpow2.f32 %v3279_v33 }
 0x659   :  { %3535 = vpow2.f32 %v3277_v43 }
 0x65a   :  { %3537 = vpow2.f32 %v3280_v9 }
 0x663   :  { %v3532_v44 = vpop.eup %3531 }
 0x664   :  { %v2151_v31 = vadd.f32 1.0, %v3532_v44 }
 0x665   :  { %v3534_v25 = vpop.eup %3533 }
 0x666   :  { %3539 = vrcp.f32 %v2151_v31  ;;  %v2157_v60 = vadd.f32 1.0, %v3534_v25  ;;  %v3536_v55 = vpop.eup %3535  ;;  %v6142_v31 = vld [vmem:[#allocation144_spill] sm:$0xff]  ;;  %v6143_v25 = vld [vmem:[#allocation145_spill] sm:$0xff] }
 0x667   :  { %3541 = vtanh.f32 %v2146_v24  ;;  %v3538_v2 = vpop.eup %3537  ;;  %v2135_v53 = vadd.f32 1.0, %v3536_v55  ;;  %v6145_v55 = vld [vmem:[#allocation147_spill] sm:$0xff] }
 0x668   :  { %3543 = vrcp.f32 %v2157_v60  ;;  %v2164_v49 = vadd.f32 1.0, %v3538_v2  ;;  %v6144_v60 = vld [vmem:[#allocation146_spill] sm:$0xff]  ;;  %v6146_v2 = vld [vmem:[#allocation148_spill] sm:$0xff] }
 0x669   :  { %3545 = vtanh.f32 %v4871_v61 }
 0x66a   :  { %3547 = vrcp.f32 %v2135_v53  ;;  %v6149_v53 = vld [vmem:[#allocation151_spill] sm:$0xff] }
 0x66b   :  { %3549 = vrcp.f32 %v2164_v49  ;;  %v6151_v49 = vld [vmem:[#allocation153_spill] sm:$0xff] }
 0x673   :  { %v3540_v1 = vpop.eup %3539 }
 0x674   :  { %v3542_v22 = vpop.eup %3541 }
 0x675   :  { %v3544_v21 = vpop.eup %3543  ;;  %v2168_v51 = vmul.f32 %v3542_v22, %v3540_v1  ;;  %v6147_v1 = vld [vmem:[#allocation149_spill] sm:$0xff]  ;;  %v6148_v22 = vld [vmem:[#allocation150_spill] sm:$0xff] }
 0x676   :  { %v2167_v7 = vmul.f32 %v3544_v21, %v4729_v52  ;;  %v3546_v33 = vpop.eup %3545  ;;  %v6141_v52 = vld [vmem:[#allocation143_spill] sm:$0xff]  ;;  %v6150_v21 = vld [vmem:[#allocation152_spill] sm:$0xff] }
 0x677   :  { %v3548_v5 = vpop.eup %3547 }
 0x678   :  { %v4879_v57 = vadd.f32 %v2168_v51, %v2167_v7  ;;  %v3550_v15 = vpop.eup %3549  ;;  %v2142_v43 = vmul.f32 %v3548_v5, %v3546_v33  ;;  %v6152_v51 = vld [vmem:[#allocation154_spill] sm:$0xff]  ;;  %v6153_v7 = vld [vmem:[#allocation155_spill] sm:$0xff]  ;;  %v6154_v33 = vld [vmem:[#allocation156_spill] sm:$0xff] }
 0x679   :  { %v6155_v5 = vld [vmem:[#allocation157_spill] sm:$0xff] }
 0x67a   :  { %3551 = vtanh.f32 %v4879_v57  ;;  %v4882_v24 = vpack.c.bf16 %v2142_v43, %v2142_v43  ;;  %v6158_v43 = vld [vmem:[#allocation160_spill] sm:$0xff] }
 0x687   :  { %v3552_v62 = vpop.eup %3551 }
 0x688   :  { %v2171_v9 = vmul.f32 %v3552_v62, %v3550_v15  ;;  %v6156_v15 = vld [vmem:[#allocation158_spill] sm:$0xff]  ;;  %v6157_v62 = vld [vmem:[#allocation159_spill] sm:$0xff] }
 0x68a   :  { %v2172_v44 = vpack.c.bf16 %v2171_v9, %v2171_v9  ;;  %v6159_v9 = vld [vmem:[#allocation161_spill] sm:$0xff] }
 0x68c   :  { %2205 = vmatprep.mubr.bf16.mxu0 %v2172_v44  ;;  %2246 = vmatprep.mubr.bf16.mxu1 %v2172_v44 }
 0x68d   :  { %2206 = vmatmul.mubr.bf16.vlgmr.msra.gmra.mxu0 %v4882_v24  ;;  %2247 = vmatmul.mubr.bf16.vlgmr.msra.gmra.mxu1 %v4882_v24 }
 0x68e   :  { %2256 = vmatpush1.bf16.msra.mxu0 %v4023_v54  ;;  %2297 = vmatpush1.bf16.msra.mxu1 %v5861_v0 }
 0x68f   :  { %2287 = vmatprep.mubr.bf16.mxu0 %v2172_v44  ;;  %2328 = vmatprep.mubr.bf16.mxu1 %v2172_v44  ;;  %v6160_v44 = vld [vmem:[#allocation162_spill] sm:$0xff] }
 0x690   :  { %2257 = vmatprep.subr.bf16.mxu0 %v5862_v17  ;;  %2298 = vmatprep.subr.bf16.mxu1 %v5863_v39 }
 0x692   :  { %2258 = vmatpush1.bf16.msra.mxu0 %v5864_v30  ;;  %2299 = vmatpush1.bf16.msra.mxu1 %v5865_v4 }
 0x693   :  { %2259 = vmatprep.subr.bf16.mxu0 %v5952_v38  ;;  %2300 = vmatprep.subr.bf16.mxu1 %v5953_v40 }
 0x696   :  { %2260 = vmatpush1.bf16.msra.mxu0 %v5954_v16  ;;  %2301 = vmatpush1.bf16.msra.mxu1 %v5955_v12 }
 0x697   :  { %2261 = vmatprep.subr.bf16.mxu0 %v5956_v28  ;;  %2302 = vmatprep.subr.bf16.mxu1 %v5957_v34 }
 0x69a   :  { %2262 = vmatpush1.bf16.msra.mxu0 %v5958_v42  ;;  %2303 = vmatpush1.bf16.msra.mxu1 %v5959_v11 }
 0x69b   :  { %2263 = vmatprep.subr.bf16.mxu0 %v6046_v19  ;;  %2304 = vmatprep.subr.bf16.mxu1 %v6047_v41 }
 0x69e   :  { %2264 = vmatpush1.bf16.msra.mxu0 %v6048_v59  ;;  %2305 = vmatpush1.bf16.msra.mxu1 %v6049_v58 }
 0x69f   :  { %2265 = vmatprep.subr.bf16.mxu0 %v6050_v63  ;;  %2306 = vmatprep.subr.bf16.mxu1 %v6051_v47 }
 0x6a2   :  { %2266 = vmatpush1.bf16.msra.mxu0 %v6052_v8  ;;  %2307 = vmatpush1.bf16.msra.mxu1 %v6053_v48 }
 0x6a3   :  { %2267 = vmatprep.subr.bf16.mxu0 %v6054_v46  ;;  %2308 = vmatprep.subr.bf16.mxu1 %v6055_v50 }
 0x6a6   :  { %2268 = vmatpush1.bf16.msra.mxu0 %v6056_v23  ;;  %2309 = vmatpush1.bf16.msra.mxu1 %v6057_v29 }
 0x6a7   :  { %2269 = vmatprep.subr.bf16.mxu0 %v5972_v32  ;;  %2310 = vmatprep.subr.bf16.mxu1 %v5973_v18 }
 0x6aa   :  { %2270 = vmatpush1.bf16.msra.mxu0 %v5974_v45  ;;  %2311 = vmatpush1.bf16.msra.mxu1 %v6058_v37 }
 0x6ab   :  { %2271 = vmatprep.subr.bf16.mxu0 %v6059_v3  ;;  %2312 = vmatprep.subr.bf16.mxu1 %v5977_v13 }
 0x6ae   :  { %2272 = vmatpush2.bf16.msra.mxu0 %v5978_v26  ;;  %2313 = vmatpush2.bf16.msra.mxu1 %v5979_v27 }
 0x6af   :  { %2273 = vmatprep.subr.bf16.mxu0 %v5980_v35  ;;  %2314 = vmatprep.subr.bf16.mxu1 %v5981_v36 }
 0x6b2   :  { %2274 = vmatpush2.bf16.msra.mxu0 %v5982_v10  ;;  %2315 = vmatpush2.bf16.msra.mxu1 %v6141_v52 }
 0x6b3   :  { %2275 = vmatprep.subr.bf16.mxu0 %v6142_v31  ;;  %2316 = vmatprep.subr.bf16.mxu1 %v6143_v25 }
 0x6b6   :  { %2276 = vmatpush2.bf16.msra.mxu0 %v6144_v60  ;;  %2317 = vmatpush2.bf16.msra.mxu1 %v6145_v55 }
 0x6b7   :  { %2277 = vmatprep.subr.bf16.mxu0 %v6146_v2  ;;  %2318 = vmatprep.subr.bf16.mxu1 %v6147_v1 }
 0x6ba   :  { %2278 = vmatpush2.bf16.msra.mxu0 %v6148_v22  ;;  %2319 = vmatpush2.bf16.msra.mxu1 %v6149_v53  ;;  %v6233_v53 = vld [vmem:[#allocation98_spill] sm:$0xff] }
 0x6bb   :  { %2279 = vmatprep.subr.bf16.mxu0 %v6150_v21  ;;  %2320 = vmatprep.subr.bf16.mxu1 %v6151_v49  ;;  %v6161_v21 = vld [vmem:[#allocation163_spill] sm:$0xff]  ;;  %v6162_v49 = vld [vmem:[#allocation164_spill] sm:$0xff] }
 0x6be   :  { %2280 = vmatpush2.bf16.msra.mxu0 %v6152_v51  ;;  %2321 = vmatpush2.bf16.msra.mxu1 %v6153_v7  ;;  %v6163_v51 = vld [vmem:[#allocation165_spill] sm:$0xff]  ;;  %v6164_v7 = vld [vmem:[#allocation166_spill] sm:$0xff] }
 0x6bf   :  { %2281 = vmatprep.subr.bf16.mxu0 %v6154_v33  ;;  %2322 = vmatprep.subr.bf16.mxu1 %v6155_v5  ;;  %v6165_v33 = vld [vmem:[#allocation167_spill] sm:$0xff]  ;;  %v6166_v5 = vld [vmem:[#allocation13_spill] sm:$0xff] }
 0x6c2   :  { %2282 = vmatpush2.bf16.msra.mxu0 %v6156_v15  ;;  %2323 = vmatpush2.bf16.msra.mxu1 %v6157_v62  ;;  %v6167_v15 = vld [vmem:[#allocation14_spill] sm:$0xff]  ;;  %v6232_v62 = vld [vmem:[#allocation97_spill] sm:$0xff] }
 0x6c3   :  { %2283 = vmatprep.subr.bf16.mxu0 %v6158_v43  ;;  %2324 = vmatprep.subr.bf16.mxu1 %v6159_v9  ;;  %v6168_v9 = vld [vmem:[#allocation11_spill] sm:$0xff]  ;;  %v6177_v43 = vld [vmem:[#allocation22_spill] sm:$0xff] }
 0x6c6   :  { %2284 = vmatpush2.bf16.msra.mxu0 %v6160_v44  ;;  %2325 = vmatpush2.bf16.msra.mxu1 %v6161_v21  ;;  %v6169_v44 = vld [vmem:[#allocation12_spill] sm:$0xff]  ;;  %v6170_v21 = vld [vmem:[#allocation15_spill] sm:$0xff] }
 0x6c7   :  { %2285 = vmatprep.subr.bf16.mxu0 %v6162_v49  ;;  %2326 = vmatprep.subr.bf16.mxu1 %v6163_v51  ;;  %v6171_v49 = vld [vmem:[#allocation16_spill] sm:$0xff]  ;;  %v6172_v51 = vld [vmem:[#allocation17_spill] sm:$0xff] }
 0x6ca   :  { %2286 = vmatpush2.bf16.msra.mxu0 %v6164_v7  ;;  %2327 = vmatpush2.bf16.msra.mxu1 %v6165_v33  ;;  %v6173_v7 = vld [vmem:[#allocation18_spill] sm:$0xff]  ;;  %v6174_v33 = vld [vmem:[#allocation19_spill] sm:$0xff] }
 0x6cb   :  { %2395 = vmatprep.subr.bf16.mxu0 %v6166_v5  ;;  %2436 = vmatprep.subr.bf16.mxu1 %v6167_v15  ;;  %v6175_v5 = vld [vmem:[#allocation20_spill] sm:$0xff]  ;;  %v6176_v15 = vld [vmem:[#allocation21_spill] sm:$0xff] }
 0x6cd   :  { %2288 = vmatmul.mubr.bf16.vlgmr.msra.gmra.mxu0 %v4882_v24  ;;  %2329 = vmatmul.mubr.bf16.vlgmr.msra.gmra.mxu1 %v4882_v24  ;;  %v6178_v24 = vld [vmem:[#allocation23_spill] sm:$0xff] }
 0x6ce   :  { %2396 = vmatpush1.bf16.msra.mxu0 %v6168_v9  ;;  %2437 = vmatpush1.bf16.msra.mxu1 %v6169_v44  ;;  %v6179_v9 = vld [vmem:[#allocation24_spill] sm:$0xff]  ;;  %v6180_v44 = vld [vmem:[#allocation25_spill] sm:$0xff] }
 0x6cf   :  { %2397 = vmatprep.subr.bf16.mxu0 %v6170_v21  ;;  %2438 = vmatprep.subr.bf16.mxu1 %v6171_v49  ;;  %v6181_v21 = vld [vmem:[#allocation26_spill] sm:$0xff]  ;;  %v6182_v49 = vld [vmem:[#allocation27_spill] sm:$0xff] }
 0x6d2   :  { %2398 = vmatpush1.bf16.msra.mxu0 %v6172_v51  ;;  %2439 = vmatpush1.bf16.msra.mxu1 %v6173_v7  ;;  %v6183_v51 = vld [vmem:[#allocation28_spill] sm:$0xff]  ;;  %v6184_v7 = vld [vmem:[#allocation29_spill] sm:$0xff] }
 0x6d3   :  { %2399 = vmatprep.subr.bf16.mxu0 %v6174_v33  ;;  %2440 = vmatprep.subr.bf16.mxu1 %v6175_v5  ;;  %v6185_v33 = vld [vmem:[#allocation30_spill] sm:$0xff]  ;;  %v6186_v5 = vld [vmem:[#allocation31_spill] sm:$0xff] }
 0x6d6   :  { %2400 = vmatpush1.bf16.msra.mxu0 %v6176_v15  ;;  %2441 = vmatpush1.bf16.msra.mxu1 %v6177_v43  ;;  %v6187_v15 = vld [vmem:[#allocation32_spill] sm:$0xff]  ;;  %v6188_v43 = vld [vmem:[#allocation33_spill] sm:$0xff] }
 0x6d7   :  { %2401 = vmatprep.subr.bf16.mxu0 %v6178_v24  ;;  %2442 = vmatprep.subr.bf16.mxu1 %v6179_v9  ;;  %v6189_v24 = vld [vmem:[#allocation34_spill] sm:$0xff]  ;;  %v6190_v9 = vld [vmem:[#allocation35_spill] sm:$0xff] }
 0x6da   :  { %2402 = vmatpush1.bf16.msra.mxu0 %v6180_v44  ;;  %2443 = vmatpush1.bf16.msra.mxu1 %v6181_v21  ;;  %v6191_v44 = vld [vmem:[#allocation36_spill] sm:$0xff]  ;;  %v6192_v21 = vld [vmem:[#allocation37_spill] sm:$0xff] }
 0x6db   :  { %2403 = vmatprep.subr.bf16.mxu0 %v6182_v49  ;;  %2444 = vmatprep.subr.bf16.mxu1 %v6183_v51  ;;  %v6193_v49 = vld [vmem:[#allocation38_spill] sm:$0xff]  ;;  %v6194_v51 = vld [vmem:[#allocation39_spill] sm:$0xff] }
 0x6de   :  { %2404 = vmatpush1.bf16.msra.mxu0 %v6184_v7  ;;  %2445 = vmatpush1.bf16.msra.mxu1 %v6185_v33  ;;  %v6195_v7 = vld [vmem:[#allocation40_spill] sm:$0xff]  ;;  %v6196_v33 = vld [vmem:[#allocation41_spill] sm:$0xff] }
 0x6df   :  { %2405 = vmatprep.subr.bf16.mxu0 %v6186_v5  ;;  %2446 = vmatprep.subr.bf16.mxu1 %v6187_v15  ;;  %v6197_v5 = vld [vmem:[#allocation42_spill] sm:$0xff]  ;;  %v6198_v15 = vld [vmem:[#allocation43_spill] sm:$0xff] }
 0x6e2   :  { %2406 = vmatpush1.bf16.msra.mxu0 %v6188_v43  ;;  %2447 = vmatpush1.bf16.msra.mxu1 %v6189_v24  ;;  %v6199_v43 = vld [vmem:[#allocation44_spill] sm:$0xff]  ;;  %v6200_v24 = vld [vmem:[#allocation45_spill] sm:$0xff] }
 0x6e3   :  { %2407 = vmatprep.subr.bf16.mxu0 %v6190_v9  ;;  %2448 = vmatprep.subr.bf16.mxu1 %v6191_v44  ;;  %v6201_v9 = vld [vmem:[#allocation46_spill] sm:$0xff]  ;;  %v6202_v44 = vld [vmem:[#allocation47_spill] sm:$0xff] }
 0x6e6   :  { %2408 = vmatpush1.bf16.msra.mxu0 %v6192_v21  ;;  %2449 = vmatpush1.bf16.msra.mxu1 %v6193_v49  ;;  %v6203_v21 = vld [vmem:[#allocation48_spill] sm:$0xff]  ;;  %v6204_v49 = vld [vmem:[#allocation49_spill] sm:$0xff] }
 0x6e7   :  { %2409 = vmatprep.subr.bf16.mxu0 %v6194_v51  ;;  %2450 = vmatprep.subr.bf16.mxu1 %v6195_v7  ;;  %v6205_v51 = vld [vmem:[#allocation50_spill] sm:$0xff]  ;;  %v6206_v7 = vld [vmem:[#allocation51_spill] sm:$0xff] }
 0x6ea   :  { %2410 = vmatpush1.bf16.msra.mxu0 %v6196_v33  ;;  %2451 = vmatpush1.bf16.msra.mxu1 %v6197_v5  ;;  %v6207_v33 = vld [vmem:[#allocation52_spill] sm:$0xff]  ;;  %v6208_v5 = vld [vmem:[#allocation53_spill] sm:$0xff] }
 0x6eb   :  { %2411 = vmatprep.subr.bf16.mxu0 %v6198_v15  ;;  %2452 = vmatprep.subr.bf16.mxu1 %v6199_v43  ;;  %v6209_v15 = vld [vmem:[#allocation54_spill] sm:$0xff]  ;;  %v6210_v43 = vld [vmem:[#allocation55_spill] sm:$0xff] }
 0x6ee   :  { %2412 = vmatpush2.bf16.msra.mxu0 %v6200_v24  ;;  %2453 = vmatpush2.bf16.msra.mxu1 %v6201_v9  ;;  %v6211_v24 = vld [vmem:[#allocation56_spill] sm:$0xff]  ;;  %v6212_v9 = vld [vmem:[#allocation57_spill] sm:$0xff] }
 0x6ef   :  { %2413 = vmatprep.subr.bf16.mxu0 %v6202_v44  ;;  %2454 = vmatprep.subr.bf16.mxu1 %v6203_v21  ;;  %v6213_v44 = vld [vmem:[#allocation58_spill] sm:$0xff]  ;;  %v6214_v21 = vld [vmem:[#allocation59_spill] sm:$0xff] }
 0x6f2   :  { %2414 = vmatpush2.bf16.msra.mxu0 %v6204_v49  ;;  %2455 = vmatpush2.bf16.msra.mxu1 %v6205_v51  ;;  %v6215_v49 = vld [vmem:[#allocation61_spill] sm:$0xff]  ;;  %v6216_v51 = vld [vmem:[#allocation60_spill] sm:$0xff] }
 0x6f3   :  { %2415 = vmatprep.subr.bf16.mxu0 %v6206_v7  ;;  %2456 = vmatprep.subr.bf16.mxu1 %v6207_v33  ;;  %v6217_v7 = vld [vmem:[#allocation62_spill] sm:$0xff]  ;;  %v6218_v33 = vld [vmem:[#allocation63_spill] sm:$0xff] }
 0x6f6   :  { %2416 = vmatpush2.bf16.msra.mxu0 %v6208_v5  ;;  %2457 = vmatpush2.bf16.msra.mxu1 %v6209_v15  ;;  %v6219_v5 = vld [vmem:[#allocation64_spill] sm:$0xff]  ;;  %v6220_v15 = vld [vmem:[#allocation65_spill] sm:$0xff] }
 0x6f7   :  { %2417 = vmatprep.subr.bf16.mxu0 %v6210_v43  ;;  %2458 = vmatprep.subr.bf16.mxu1 %v6211_v24  ;;  %v6221_v43 = vld [vmem:[#allocation66_spill] sm:$0xff]  ;;  %v6222_v24 = vld [vmem:[#allocation67_spill] sm:$0xff] }
 0x6fa   :  { %2418 = vmatpush2.bf16.msra.mxu0 %v6212_v9  ;;  %2459 = vmatpush2.bf16.msra.mxu1 %v6213_v44  ;;  %v6223_v9 = vld [vmem:[#allocation68_spill] sm:$0xff]  ;;  %v6224_v44 = vld [vmem:[#allocation69_spill] sm:$0xff] }
 0x6fb   :  { %2419 = vmatprep.subr.bf16.mxu0 %v6214_v21  ;;  %2460 = vmatprep.subr.bf16.mxu1 %v6215_v49  ;;  %v6225_v21 = vld [vmem:[#allocation70_spill] sm:$0xff]  ;;  %v6226_v49 = vld [vmem:[#allocation71_spill] sm:$0xff] }
 0x6fe   :  { %2420 = vmatpush2.bf16.msra.mxu0 %v6216_v51  ;;  %2461 = vmatpush2.bf16.msra.mxu1 %v6217_v7  ;;  %v6227_v51 = vld [vmem:[#allocation72_spill] sm:$0xff]  ;;  %v6228_v7 = vld [vmem:[#allocation73_spill] sm:$0xff] }
 0x6ff   :  { %2421 = vmatprep.subr.bf16.mxu0 %v6218_v33  ;;  %2462 = vmatprep.subr.bf16.mxu1 %v6219_v5  ;;  %v6229_v33 = vld [vmem:[#allocation74_spill] sm:$0xff]  ;;  %v6230_v5 = vld [vmem:[#allocation75_spill] sm:$0xff] }
 0x702   :  { %2422 = vmatpush2.bf16.msra.mxu0 %v6220_v15  ;;  %2463 = vmatpush2.bf16.msra.mxu1 %v6221_v43  ;;  %v6231_v15 = vld [vmem:[#allocation76_spill] sm:$0xff] }
 0x703   :  { %2423 = vmatprep.subr.bf16.mxu0 %v6222_v24  ;;  %2464 = vmatprep.subr.bf16.mxu1 %v6223_v9 }
 0x706   :  { %2424 = vmatpush2.bf16.msra.mxu0 %v6224_v44  ;;  %2465 = vmatpush2.bf16.msra.mxu1 %v6225_v21 }
 0x707   :  { %2425 = vmatprep.subr.bf16.mxu0 %v6226_v49  ;;  %2466 = vmatprep.subr.bf16.mxu1 %v6227_v51  ;;  %v6234_v49 = vld [vmem:[#allocation99_spill] sm:$0xff]  ;;  %v6235_v51 = vld [vmem:[#allocation100_spill] sm:$0xff] }
 0x70a   :  { %2426 = vmatpush2.bf16.msra.mxu0 %v6228_v7  ;;  %2467 = vmatpush2.bf16.msra.mxu1 %v6229_v33 }
 0x70b   :  { %2477 = vmatprep.subr.bf16.mxu0 %v6230_v5  ;;  %2518 = vmatprep.subr.bf16.mxu1 %v6231_v15 }
 0x74d   :  { %v2207_v43 = vpop.f32.mrf.mxu0  ;;  %v2248_v24 = vpop.f32.mrf.mxu1 }
 0x74e   :  { %v2337_v9 = vadd.f32 %v2207_v43, %v6232_v62  ;;  %v2339_v44 = vadd.f32 %v2248_v24, %v6233_v53 }
 0x74f   :  { %v2209_v22 = vpop.f32.mrf.mxu0  ;;  %v2250_v21 = vpop.f32.mrf.mxu1 }
 0x750   :  { %v3281_v1 = vmul.f32 -1.442695, %v2337_v9  ;;  %v2338_v2 = vadd.f32 %v2209_v22, %v6234_v49  ;;  %v2340_v55 = vadd.f32 %v2250_v21, %v6235_v51 }
 0x751   :  { %v2211_v7 = vpop.f32.mrf.mxu0  ;;  %v2252_v60 = vpop.f32.mrf.mxu1 }
 0x752   :  { %3553 = vpow2.f32 %v3281_v1  ;;  %v3282_v33 = vmul.f32 -1.442695, %v2338_v2  ;;  %v3283_v24 = vmul.f32 -1.442695, %v2340_v55 }
 0x753   :  { %v2212_v5 = vpop.f32.mrf.mxu0  ;;  %v2253_v25 = vpop.f32.mrf.mxu1 }
 0x754   :  { %3555 = vpow2.f32 %v3282_v33 }
 0x755   :  { %3557 = vtanh.f32 %v2339_v44 }
 0x75f   :  { %v3554_v15 = vpop.eup %3553 }
 0x760   :  { %v2344_v31 = vadd.f32 1.0, %v3554_v15 }
 0x761   :  { %v3556_v52 = vpop.eup %3555 }
 0x762   :  { %3559 = vrcp.f32 %v2344_v31  ;;  %v2350_v53 = vadd.f32 1.0, %v3556_v52  ;;  %v3558_v62 = vpop.eup %3557 }
 0x764   :  { %3561 = vrcp.f32 %v2350_v53 }
 0x76f   :  { %v3560_v43 = vpop.eup %3559 }
 0x770   :  { %v2361_v9 = vmul.f32 %v3560_v43, %v3558_v62 }
 0x771   :  { %v3562_v22 = vpop.eup %3561 }
 0x772   :  { %v2360_v21 = vmul.f32 %v3562_v22, %v4871_v61 }
 0x774   :  { %v5021_v49 = vadd.f32 %v2361_v9, %v2360_v21 }
 0x78d   :  { %v2289_v60 = vpop.f32.mrf.mxu0  ;;  %v2330_v2 = vpop.f32.mrf.mxu1 }
 0x78e   :  { %v2366_v25 = vadd.f32 %v2289_v60, %v5951_v20  ;;  %v2368_v43 = vadd.f32 %v2330_v2, %v4425_v14 }
 0x78f   :  { %v2291_v1 = vpop.f32.mrf.mxu0  ;;  %v2332_v51 = vpop.f32.mrf.mxu1 }
 0x790   :  { %v3284_v7 = vmul.f32 -1.442695, %v2366_v25  ;;  %v2367_v33 = vadd.f32 %v2291_v1, %v4414_v56  ;;  %v2369_v61 = vadd.f32 %v2332_v51, %v4420_v6 }
 0x791   :  { %v2293_v31 = vpop.f32.mrf.mxu0  ;;  %v2334_v52 = vpop.f32.mrf.mxu1 }
 0x792   :  { %3563 = vpow2.f32 %v3284_v7  ;;  %v3285_v5 = vmul.f32 -1.442695, %v2367_v33  ;;  %v3286_v53 = vmul.f32 -1.442695, %v2369_v61 }
 0x793   :  { %v2294_v15 = vpop.f32.mrf.mxu0  ;;  %v2335_v44 = vpop.f32.mrf.mxu1 }
 0x794   :  { %3565 = vpow2.f32 %v3285_v5 }
 0x795   :  { %3567 = vpow2.f32 %v3283_v24 }
 0x796   :  { %3569 = vpow2.f32 %v3286_v53 }
 0x79f   :  { %v3564_v62 = vpop.eup %3563 }
 0x7a0   :  { %v2373_v9 = vadd.f32 1.0, %v3564_v62 }
 0x7a1   :  { %v3566_v22 = vpop.eup %3565 }
 0x7a2   :  { %3571 = vrcp.f32 %v2373_v9  ;;  %v2379_v21 = vadd.f32 1.0, %v3566_v22  ;;  %v3568_v60 = vpop.eup %3567  ;;  %v6237_v9 = vld [vmem:[#allocation144_spill] sm:$0xff]  ;;  %v6238_v22 = vld [vmem:[#allocation145_spill] sm:$0xff] }
 0x7a3   :  { %3573 = vtanh.f32 %v2368_v43  ;;  %v3570_v25 = vpop.eup %3569  ;;  %v2357_v33 = vadd.f32 1.0, %v3568_v60  ;;  %v6240_v60 = vld [vmem:[#allocation147_spill] sm:$0xff] }
 0x7a4   :  { %3575 = vrcp.f32 %v2379_v21  ;;  %v2386_v51 = vadd.f32 1.0, %v3570_v25  ;;  %v6239_v21 = vld [vmem:[#allocation146_spill] sm:$0xff]  ;;  %v6241_v25 = vld [vmem:[#allocation148_spill] sm:$0xff] }
 0x7a5   :  { %3577 = vtanh.f32 %v5021_v49 }
 0x7a6   :  { %3579 = vrcp.f32 %v2357_v33  ;;  %v6244_v33 = vld [vmem:[#allocation151_spill] sm:$0xff] }
 0x7a7   :  { %3581 = vrcp.f32 %v2386_v51  ;;  %v6246_v51 = vld [vmem:[#allocation153_spill] sm:$0xff] }
 0x7af   :  { %v3572_v1 = vpop.eup %3571 }
 0x7b0   :  { %v3574_v7 = vpop.eup %3573 }
 0x7b1   :  { %v3576_v31 = vpop.eup %3575  ;;  %v2390_v55 = vmul.f32 %v3574_v7, %v3572_v1  ;;  %v6242_v1 = vld [vmem:[#allocation149_spill] sm:$0xff]  ;;  %v6243_v7 = vld [vmem:[#allocation150_spill] sm:$0xff] }
 0x7b2   :  { %v2389_v52 = vmul.f32 %v3576_v31, %v4879_v57  ;;  %v3578_v5 = vpop.eup %3577  ;;  %v6236_v57 = vld [vmem:[#allocation143_spill] sm:$0xff]  ;;  %v6245_v31 = vld [vmem:[#allocation152_spill] sm:$0xff] }
 0x7b3   :  { %v3580_v15 = vpop.eup %3579 }
 0x7b4   :  { %v5029_v2 = vadd.f32 %v2390_v55, %v2389_v52  ;;  %v3582_v44 = vpop.eup %3581  ;;  %v2364_v24 = vmul.f32 %v3580_v15, %v3578_v5  ;;  %v6247_v55 = vld [vmem:[#allocation154_spill] sm:$0xff]  ;;  %v6248_v52 = vld [vmem:[#allocation155_spill] sm:$0xff]  ;;  %v6249_v5 = vld [vmem:[#allocation156_spill] sm:$0xff] }
 0x7b5   :  { %v6250_v15 = vld [vmem:[#allocation157_spill] sm:$0xff] }
 0x7b6   :  { %3583 = vtanh.f32 %v5029_v2  ;;  %v5032_v43 = vpack.c.bf16 %v2364_v24, %v2364_v24  ;;  %v6253_v24 = vld [vmem:[#allocation160_spill] sm:$0xff] }
 0x7c3   :  { %v3584_v61 = vpop.eup %3583 }
 0x7c4   :  { %v2393_v53 = vmul.f32 %v3584_v61, %v3582_v44  ;;  %v6251_v44 = vld [vmem:[#allocation158_spill] sm:$0xff]  ;;  %v6252_v61 = vld [vmem:[#allocation159_spill] sm:$0xff] }
 0x7c6   :  { %v2394_v62 = vpack.c.bf16 %v2393_v53, %v2393_v53  ;;  %v6254_v53 = vld [vmem:[#allocation161_spill] sm:$0xff] }
 0x7c8   :  { %2427 = vmatprep.mubr.bf16.mxu0 %v2394_v62  ;;  %2468 = vmatprep.mubr.bf16.mxu1 %v2394_v62 }
 0x7c9   :  { %2428 = vmatmul.mubr.bf16.vlgmr.msra.gmra.mxu0 %v5032_v43  ;;  %2469 = vmatmul.mubr.bf16.vlgmr.msra.gmra.mxu1 %v5032_v43 }
 0x7ca   :  { %2478 = vmatpush1.bf16.msra.mxu0 %v4023_v54  ;;  %2519 = vmatpush1.bf16.msra.mxu1 %v5861_v0 }
 0x7cb   :  { %2509 = vmatprep.mubr.bf16.mxu0 %v2394_v62  ;;  %2550 = vmatprep.mubr.bf16.mxu1 %v2394_v62  ;;  %v6255_v62 = vld [vmem:[#allocation162_spill] sm:$0xff] }
 0x7cc   :  { %2479 = vmatprep.subr.bf16.mxu0 %v5862_v17  ;;  %2520 = vmatprep.subr.bf16.mxu1 %v5863_v39 }
 0x7ce   :  { %2480 = vmatpush1.bf16.msra.mxu0 %v5864_v30  ;;  %2521 = vmatpush1.bf16.msra.mxu1 %v5865_v4 }
 0x7cf   :  { %2481 = vmatprep.subr.bf16.mxu0 %v5952_v38  ;;  %2522 = vmatprep.subr.bf16.mxu1 %v5953_v40 }
 0x7d2   :  { %2482 = vmatpush1.bf16.msra.mxu0 %v5954_v16  ;;  %2523 = vmatpush1.bf16.msra.mxu1 %v5955_v12 }
 0x7d3   :  { %2483 = vmatprep.subr.bf16.mxu0 %v5956_v28  ;;  %2524 = vmatprep.subr.bf16.mxu1 %v5957_v34 }
 0x7d6   :  { %2484 = vmatpush1.bf16.msra.mxu0 %v5958_v42  ;;  %2525 = vmatpush1.bf16.msra.mxu1 %v5959_v11 }
 0x7d7   :  { %2485 = vmatprep.subr.bf16.mxu0 %v6046_v19  ;;  %2526 = vmatprep.subr.bf16.mxu1 %v6047_v41 }
 0x7da   :  { %2486 = vmatpush1.bf16.msra.mxu0 %v6048_v59  ;;  %2527 = vmatpush1.bf16.msra.mxu1 %v6049_v58 }
 0x7db   :  { %2487 = vmatprep.subr.bf16.mxu0 %v6050_v63  ;;  %2528 = vmatprep.subr.bf16.mxu1 %v6051_v47 }
 0x7de   :  { %2488 = vmatpush1.bf16.msra.mxu0 %v6052_v8  ;;  %2529 = vmatpush1.bf16.msra.mxu1 %v6053_v48 }
 0x7df   :  { %2489 = vmatprep.subr.bf16.mxu0 %v6054_v46  ;;  %2530 = vmatprep.subr.bf16.mxu1 %v6055_v50 }
 0x7e2   :  { %2490 = vmatpush1.bf16.msra.mxu0 %v6056_v23  ;;  %2531 = vmatpush1.bf16.msra.mxu1 %v6057_v29 }
 0x7e3   :  { %2491 = vmatprep.subr.bf16.mxu0 %v5972_v32  ;;  %2532 = vmatprep.subr.bf16.mxu1 %v5973_v18 }
 0x7e6   :  { %2492 = vmatpush1.bf16.msra.mxu0 %v5974_v45  ;;  %2533 = vmatpush1.bf16.msra.mxu1 %v6058_v37 }
 0x7e7   :  { %2493 = vmatprep.subr.bf16.mxu0 %v6059_v3  ;;  %2534 = vmatprep.subr.bf16.mxu1 %v5977_v13 }
 0x7ea   :  { %2494 = vmatpush2.bf16.msra.mxu0 %v5978_v26  ;;  %2535 = vmatpush2.bf16.msra.mxu1 %v5979_v27 }
 0x7eb   :  { %2495 = vmatprep.subr.bf16.mxu0 %v5980_v35  ;;  %2536 = vmatprep.subr.bf16.mxu1 %v5981_v36 }
 0x7ee   :  { %2496 = vmatpush2.bf16.msra.mxu0 %v5982_v10  ;;  %2537 = vmatpush2.bf16.msra.mxu1 %v6236_v57 }
 0x7ef   :  { %2497 = vmatprep.subr.bf16.mxu0 %v6237_v9  ;;  %2538 = vmatprep.subr.bf16.mxu1 %v6238_v22 }
 0x7f2   :  { %2498 = vmatpush2.bf16.msra.mxu0 %v6239_v21  ;;  %2539 = vmatpush2.bf16.msra.mxu1 %v6240_v60 }
 0x7f3   :  { %2499 = vmatprep.subr.bf16.mxu0 %v6241_v25  ;;  %2540 = vmatprep.subr.bf16.mxu1 %v6242_v1 }
 0x7f6   :  { %2500 = vmatpush2.bf16.msra.mxu0 %v6243_v7  ;;  %2541 = vmatpush2.bf16.msra.mxu1 %v6244_v33  ;;  %v6328_v33 = vld [vmem:[#allocation102_spill] sm:$0xff] }
 0x7f7   :  { %2501 = vmatprep.subr.bf16.mxu0 %v6245_v31  ;;  %2542 = vmatprep.subr.bf16.mxu1 %v6246_v51  ;;  %v6256_v31 = vld [vmem:[#allocation163_spill] sm:$0xff]  ;;  %v6257_v51 = vld [vmem:[#allocation164_spill] sm:$0xff] }
 0x7fa   :  { %2502 = vmatpush2.bf16.msra.mxu0 %v6247_v55  ;;  %2543 = vmatpush2.bf16.msra.mxu1 %v6248_v52  ;;  %v6258_v55 = vld [vmem:[#allocation165_spill] sm:$0xff]  ;;  %v6259_v52 = vld [vmem:[#allocation166_spill] sm:$0xff] }
 0x7fb   :  { %2503 = vmatprep.subr.bf16.mxu0 %v6249_v5  ;;  %2544 = vmatprep.subr.bf16.mxu1 %v6250_v15  ;;  %v6260_v5 = vld [vmem:[#allocation167_spill] sm:$0xff]  ;;  %v6261_v15 = vld [vmem:[#allocation13_spill] sm:$0xff] }
 0x7fe   :  { %2504 = vmatpush2.bf16.msra.mxu0 %v6251_v44  ;;  %2545 = vmatpush2.bf16.msra.mxu1 %v6252_v61  ;;  %v6262_v44 = vld [vmem:[#allocation14_spill] sm:$0xff]  ;;  %v6327_v61 = vld [vmem:[#allocation101_spill] sm:$0xff] }
 0x7ff   :  { %2505 = vmatprep.subr.bf16.mxu0 %v6253_v24  ;;  %2546 = vmatprep.subr.bf16.mxu1 %v6254_v53  ;;  %v6263_v53 = vld [vmem:[#allocation11_spill] sm:$0xff]  ;;  %v6272_v24 = vld [vmem:[#allocation22_spill] sm:$0xff] }
 0x802   :  { %2506 = vmatpush2.bf16.msra.mxu0 %v6255_v62  ;;  %2547 = vmatpush2.bf16.msra.mxu1 %v6256_v31  ;;  %v6264_v62 = vld [vmem:[#allocation12_spill] sm:$0xff]  ;;  %v6265_v31 = vld [vmem:[#allocation15_spill] sm:$0xff] }
 0x803   :  { %2507 = vmatprep.subr.bf16.mxu0 %v6257_v51  ;;  %2548 = vmatprep.subr.bf16.mxu1 %v6258_v55  ;;  %v6266_v51 = vld [vmem:[#allocation16_spill] sm:$0xff]  ;;  %v6267_v55 = vld [vmem:[#allocation17_spill] sm:$0xff] }
 0x806   :  { %2508 = vmatpush2.bf16.msra.mxu0 %v6259_v52  ;;  %2549 = vmatpush2.bf16.msra.mxu1 %v6260_v5  ;;  %v6268_v52 = vld [vmem:[#allocation18_spill] sm:$0xff]  ;;  %v6269_v5 = vld [vmem:[#allocation19_spill] sm:$0xff] }
 0x807   :  { %2617 = vmatprep.subr.bf16.mxu0 %v6261_v15  ;;  %2658 = vmatprep.subr.bf16.mxu1 %v6262_v44  ;;  %v6270_v15 = vld [vmem:[#allocation20_spill] sm:$0xff]  ;;  %v6271_v44 = vld [vmem:[#allocation21_spill] sm:$0xff] }
 0x809   :  { %2510 = vmatmul.mubr.bf16.vlgmr.msra.gmra.mxu0 %v5032_v43  ;;  %2551 = vmatmul.mubr.bf16.vlgmr.msra.gmra.mxu1 %v5032_v43  ;;  %v6273_v43 = vld [vmem:[#allocation23_spill] sm:$0xff] }
 0x80a   :  { %2618 = vmatpush1.bf16.msra.mxu0 %v6263_v53  ;;  %2659 = vmatpush1.bf16.msra.mxu1 %v6264_v62  ;;  %v6274_v53 = vld [vmem:[#allocation24_spill] sm:$0xff]  ;;  %v6275_v62 = vld [vmem:[#allocation25_spill] sm:$0xff] }
 0x80b   :  { %2619 = vmatprep.subr.bf16.mxu0 %v6265_v31  ;;  %2660 = vmatprep.subr.bf16.mxu1 %v6266_v51  ;;  %v6276_v31 = vld [vmem:[#allocation26_spill] sm:$0xff]  ;;  %v6277_v51 = vld [vmem:[#allocation27_spill] sm:$0xff] }
 0x80e   :  { %2620 = vmatpush1.bf16.msra.mxu0 %v6267_v55  ;;  %2661 = vmatpush1.bf16.msra.mxu1 %v6268_v52  ;;  %v6278_v55 = vld [vmem:[#allocation28_spill] sm:$0xff]  ;;  %v6279_v52 = vld [vmem:[#allocation29_spill] sm:$0xff] }
 0x80f   :  { %2621 = vmatprep.subr.bf16.mxu0 %v6269_v5  ;;  %2662 = vmatprep.subr.bf16.mxu1 %v6270_v15  ;;  %v6280_v5 = vld [vmem:[#allocation30_spill] sm:$0xff]  ;;  %v6281_v15 = vld [vmem:[#allocation31_spill] sm:$0xff] }
 0x812   :  { %2622 = vmatpush1.bf16.msra.mxu0 %v6271_v44  ;;  %2663 = vmatpush1.bf16.msra.mxu1 %v6272_v24  ;;  %v6282_v44 = vld [vmem:[#allocation32_spill] sm:$0xff]  ;;  %v6283_v24 = vld [vmem:[#allocation33_spill] sm:$0xff] }
 0x813   :  { %2623 = vmatprep.subr.bf16.mxu0 %v6273_v43  ;;  %2664 = vmatprep.subr.bf16.mxu1 %v6274_v53  ;;  %v6284_v43 = vld [vmem:[#allocation34_spill] sm:$0xff]  ;;  %v6285_v53 = vld [vmem:[#allocation35_spill] sm:$0xff] }
 0x816   :  { %2624 = vmatpush1.bf16.msra.mxu0 %v6275_v62  ;;  %2665 = vmatpush1.bf16.msra.mxu1 %v6276_v31  ;;  %v6286_v62 = vld [vmem:[#allocation36_spill] sm:$0xff]  ;;  %v6287_v31 = vld [vmem:[#allocation37_spill] sm:$0xff] }
 0x817   :  { %2625 = vmatprep.subr.bf16.mxu0 %v6277_v51  ;;  %2666 = vmatprep.subr.bf16.mxu1 %v6278_v55  ;;  %v6288_v51 = vld [vmem:[#allocation38_spill] sm:$0xff]  ;;  %v6289_v55 = vld [vmem:[#allocation39_spill] sm:$0xff] }
 0x81a   :  { %2626 = vmatpush1.bf16.msra.mxu0 %v6279_v52  ;;  %2667 = vmatpush1.bf16.msra.mxu1 %v6280_v5  ;;  %v6290_v52 = vld [vmem:[#allocation40_spill] sm:$0xff]  ;;  %v6291_v5 = vld [vmem:[#allocation41_spill] sm:$0xff] }
 0x81b   :  { %2627 = vmatprep.subr.bf16.mxu0 %v6281_v15  ;;  %2668 = vmatprep.subr.bf16.mxu1 %v6282_v44  ;;  %v6292_v15 = vld [vmem:[#allocation42_spill] sm:$0xff]  ;;  %v6293_v44 = vld [vmem:[#allocation43_spill] sm:$0xff] }
 0x81e   :  { %2628 = vmatpush1.bf16.msra.mxu0 %v6283_v24  ;;  %2669 = vmatpush1.bf16.msra.mxu1 %v6284_v43  ;;  %v6294_v24 = vld [vmem:[#allocation44_spill] sm:$0xff]  ;;  %v6295_v43 = vld [vmem:[#allocation45_spill] sm:$0xff] }
 0x81f   :  { %2629 = vmatprep.subr.bf16.mxu0 %v6285_v53  ;;  %2670 = vmatprep.subr.bf16.mxu1 %v6286_v62  ;;  %v6296_v53 = vld [vmem:[#allocation46_spill] sm:$0xff]  ;;  %v6297_v62 = vld [vmem:[#allocation47_spill] sm:$0xff] }
 0x822   :  { %2630 = vmatpush1.bf16.msra.mxu0 %v6287_v31  ;;  %2671 = vmatpush1.bf16.msra.mxu1 %v6288_v51  ;;  %v6298_v31 = vld [vmem:[#allocation48_spill] sm:$0xff]  ;;  %v6299_v51 = vld [vmem:[#allocation49_spill] sm:$0xff] }
 0x823   :  { %2631 = vmatprep.subr.bf16.mxu0 %v6289_v55  ;;  %2672 = vmatprep.subr.bf16.mxu1 %v6290_v52  ;;  %v6300_v55 = vld [vmem:[#allocation50_spill] sm:$0xff]  ;;  %v6301_v52 = vld [vmem:[#allocation51_spill] sm:$0xff] }
 0x826   :  { %2632 = vmatpush1.bf16.msra.mxu0 %v6291_v5  ;;  %2673 = vmatpush1.bf16.msra.mxu1 %v6292_v15  ;;  %v6302_v5 = vld [vmem:[#allocation52_spill] sm:$0xff]  ;;  %v6303_v15 = vld [vmem:[#allocation53_spill] sm:$0xff] }
 0x827   :  { %2633 = vmatprep.subr.bf16.mxu0 %v6293_v44  ;;  %2674 = vmatprep.subr.bf16.mxu1 %v6294_v24  ;;  %v6304_v44 = vld [vmem:[#allocation54_spill] sm:$0xff]  ;;  %v6305_v24 = vld [vmem:[#allocation55_spill] sm:$0xff] }
 0x82a   :  { %2634 = vmatpush2.bf16.msra.mxu0 %v6295_v43  ;;  %2675 = vmatpush2.bf16.msra.mxu1 %v6296_v53  ;;  %v6306_v43 = vld [vmem:[#allocation56_spill] sm:$0xff]  ;;  %v6307_v53 = vld [vmem:[#allocation57_spill] sm:$0xff] }
 0x82b   :  { %2635 = vmatprep.subr.bf16.mxu0 %v6297_v62  ;;  %2676 = vmatprep.subr.bf16.mxu1 %v6298_v31  ;;  %v6308_v62 = vld [vmem:[#allocation58_spill] sm:$0xff]  ;;  %v6309_v31 = vld [vmem:[#allocation59_spill] sm:$0xff] }
 0x82e   :  { %2636 = vmatpush2.bf16.msra.mxu0 %v6299_v51  ;;  %2677 = vmatpush2.bf16.msra.mxu1 %v6300_v55  ;;  %v6310_v51 = vld [vmem:[#allocation61_spill] sm:$0xff]  ;;  %v6311_v55 = vld [vmem:[#allocation60_spill] sm:$0xff] }
 0x82f   :  { %2637 = vmatprep.subr.bf16.mxu0 %v6301_v52  ;;  %2678 = vmatprep.subr.bf16.mxu1 %v6302_v5  ;;  %v6312_v52 = vld [vmem:[#allocation62_spill] sm:$0xff]  ;;  %v6313_v5 = vld [vmem:[#allocation63_spill] sm:$0xff] }
 0x832   :  { %2638 = vmatpush2.bf16.msra.mxu0 %v6303_v15  ;;  %2679 = vmatpush2.bf16.msra.mxu1 %v6304_v44  ;;  %v6314_v15 = vld [vmem:[#allocation64_spill] sm:$0xff]  ;;  %v6315_v44 = vld [vmem:[#allocation65_spill] sm:$0xff] }
 0x833   :  { %2639 = vmatprep.subr.bf16.mxu0 %v6305_v24  ;;  %2680 = vmatprep.subr.bf16.mxu1 %v6306_v43  ;;  %v6316_v24 = vld [vmem:[#allocation66_spill] sm:$0xff]  ;;  %v6317_v43 = vld [vmem:[#allocation67_spill] sm:$0xff] }
 0x836   :  { %2640 = vmatpush2.bf16.msra.mxu0 %v6307_v53  ;;  %2681 = vmatpush2.bf16.msra.mxu1 %v6308_v62  ;;  %v6318_v53 = vld [vmem:[#allocation68_spill] sm:$0xff]  ;;  %v6319_v62 = vld [vmem:[#allocation69_spill] sm:$0xff] }
 0x837   :  { %2641 = vmatprep.subr.bf16.mxu0 %v6309_v31  ;;  %2682 = vmatprep.subr.bf16.mxu1 %v6310_v51  ;;  %v6320_v31 = vld [vmem:[#allocation70_spill] sm:$0xff]  ;;  %v6321_v51 = vld [vmem:[#allocation71_spill] sm:$0xff] }
 0x83a   :  { %2642 = vmatpush2.bf16.msra.mxu0 %v6311_v55  ;;  %2683 = vmatpush2.bf16.msra.mxu1 %v6312_v52  ;;  %v6322_v55 = vld [vmem:[#allocation72_spill] sm:$0xff]  ;;  %v6323_v52 = vld [vmem:[#allocation73_spill] sm:$0xff] }
 0x83b   :  { %2643 = vmatprep.subr.bf16.mxu0 %v6313_v5  ;;  %2684 = vmatprep.subr.bf16.mxu1 %v6314_v15  ;;  %v6324_v5 = vld [vmem:[#allocation74_spill] sm:$0xff]  ;;  %v6325_v15 = vld [vmem:[#allocation75_spill] sm:$0xff] }
 0x83e   :  { %2644 = vmatpush2.bf16.msra.mxu0 %v6315_v44  ;;  %2685 = vmatpush2.bf16.msra.mxu1 %v6316_v24  ;;  %v6326_v44 = vld [vmem:[#allocation76_spill] sm:$0xff] }
 0x83f   :  { %2645 = vmatprep.subr.bf16.mxu0 %v6317_v43  ;;  %2686 = vmatprep.subr.bf16.mxu1 %v6318_v53 }
 0x842   :  { %2646 = vmatpush2.bf16.msra.mxu0 %v6319_v62  ;;  %2687 = vmatpush2.bf16.msra.mxu1 %v6320_v31 }
 0x843   :  { %2647 = vmatprep.subr.bf16.mxu0 %v6321_v51  ;;  %2688 = vmatprep.subr.bf16.mxu1 %v6322_v55  ;;  %v6329_v51 = vld [vmem:[#allocation103_spill] sm:$0xff]  ;;  %v6330_v55 = vld [vmem:[#allocation104_spill] sm:$0xff] }
 0x846   :  { %2648 = vmatpush2.bf16.msra.mxu0 %v6323_v52  ;;  %2689 = vmatpush2.bf16.msra.mxu1 %v6324_v5 }
 0x847   :  { %2699 = vmatprep.subr.bf16.mxu0 %v6325_v15  ;;  %2740 = vmatprep.subr.bf16.mxu1 %v6326_v44 }
 0x889   :  { %v2429_v24 = vpop.f32.mrf.mxu0  ;;  %v2470_v43 = vpop.f32.mrf.mxu1 }
 0x88a   :  { %v2559_v53 = vadd.f32 %v2429_v24, %v6327_v61  ;;  %v2561_v62 = vadd.f32 %v2470_v43, %v6328_v33 }
 0x88b   :  { %v2431_v7 = vpop.f32.mrf.mxu0  ;;  %v2472_v31 = vpop.f32.mrf.mxu1 }
 0x88c   :  { %v3287_v1 = vmul.f32 -1.442695, %v2559_v53  ;;  %v2560_v25 = vadd.f32 %v2431_v7, %v6329_v51  ;;  %v2562_v60 = vadd.f32 %v2472_v31, %v6330_v55 }
 0x88d   :  { %v2433_v52 = vpop.f32.mrf.mxu0  ;;  %v2474_v21 = vpop.f32.mrf.mxu1 }
 0x88e   :  { %3585 = vpow2.f32 %v3287_v1  ;;  %v3288_v5 = vmul.f32 -1.442695, %v2560_v25 }
 0x88f   :  { %v2434_v15 = vpop.f32.mrf.mxu0  ;;  %v2475_v22 = vpop.f32.mrf.mxu1 }
 0x890   :  { %3587 = vpow2.f32 %v3288_v5  ;;  %v3289_v5 = vmul.f32 -1.442695, %v2562_v60 }
 0x891   :  { %3589 = vtanh.f32 %v2561_v62 }
 0x89b   :  { %v3586_v44 = vpop.eup %3585 }
 0x89c   :  { %v2566_v9 = vadd.f32 1.0, %v3586_v44 }
 0x89d   :  { %v3588_v57 = vpop.eup %3587 }
 0x89e   :  { %3591 = vrcp.f32 %v2566_v9  ;;  %v2572_v33 = vadd.f32 1.0, %v3588_v57  ;;  %v3590_v61 = vpop.eup %3589 }
 0x8a0   :  { %3593 = vrcp.f32 %v2572_v33 }
 0x8ab   :  { %v3592_v24 = vpop.eup %3591 }
 0x8ac   :  { %v2583_v43 = vmul.f32 %v3592_v24, %v3590_v61 }
 0x8ad   :  { %v3594_v7 = vpop.eup %3593 }
 0x8ae   :  { %v2582_v53 = vmul.f32 %v3594_v7, %v5021_v49 }
 0x8b0   :  { %v5171_v31 = vadd.f32 %v2583_v43, %v2582_v53 }
 0x8b2   :  { %6331 = vst [vmem:[#allocation107_spill] sm:$0xff] %v5171_v31 }
 0x8c9   :  { %v2511_v21 = vpop.f32.mrf.mxu0  ;;  %v2552_v25 = vpop.f32.mrf.mxu1 }
 0x8ca   :  { %v2588_v22 = vadd.f32 %v2511_v21, %v5951_v20  ;;  %v2590_v24 = vadd.f32 %v2552_v25, %v4425_v14  ;;  %v6354_v14 = vld [vmem:[#allocation164_spill] sm:$0xff]  ;;  %v6357_v20 = vld [vmem:[#allocation167_spill] sm:$0xff] }
 0x8cb   :  { %v2513_v1 = vpop.f32.mrf.mxu0  ;;  %v2554_v15 = vpop.f32.mrf.mxu1 }
 0x8cc   :  { %v3290_v44 = vmul.f32 -1.442695, %v2588_v22  ;;  %v2589_v62 = vadd.f32 %v2513_v1, %v4414_v56  ;;  %v2591_v49 = vadd.f32 %v2554_v15, %v4420_v6  ;;  %v6355_v6 = vld [vmem:[#allocation165_spill] sm:$0xff]  ;;  %v6356_v56 = vld [vmem:[#allocation166_spill] sm:$0xff] }
 0x8cd   :  { %v2515_v9 = vpop.f32.mrf.mxu0  ;;  %v2556_v57 = vpop.f32.mrf.mxu1 }
 0x8ce   :  { %3595 = vpow2.f32 %v3290_v44  ;;  %v3291_v51 = vmul.f32 -1.442695, %v2589_v62  ;;  %v3292_v33 = vmul.f32 -1.442695, %v2591_v49 }
 0x8cf   :  { %v2516_v55 = vpop.f32.mrf.mxu0  ;;  %v2557_v52 = vpop.f32.mrf.mxu1 }
 0x8d0   :  { %3597 = vpow2.f32 %v3291_v51 }
 0x8d1   :  { %3599 = vpow2.f32 %v3289_v5 }
 0x8d2   :  { %3601 = vpow2.f32 %v3292_v33 }
 0x8db   :  { %v3596_v61 = vpop.eup %3595 }
 0x8dc   :  { %v2595_v43 = vadd.f32 1.0, %v3596_v61 }
 0x8dd   :  { %v3598_v7 = vpop.eup %3597 }
 0x8de   :  { %3603 = vrcp.f32 %v2595_v43  ;;  %v2601_v53 = vadd.f32 1.0, %v3598_v7  ;;  %v3600_v21 = vpop.eup %3599  ;;  %v6334_v43 = vld [vmem:[#allocation144_spill] sm:$0xff]  ;;  %v6335_v7 = vld [vmem:[#allocation145_spill] sm:$0xff] }
 0x8df   :  { %3605 = vtanh.f32 %v2590_v24  ;;  %v3602_v22 = vpop.eup %3601  ;;  %v2579_v62 = vadd.f32 1.0, %v3600_v21  ;;  %v6337_v21 = vld [vmem:[#allocation147_spill] sm:$0xff] }
 0x8e0   :  { %3607 = vrcp.f32 %v2601_v53  ;;  %v2608_v15 = vadd.f32 1.0, %v3602_v22  ;;  %v6336_v53 = vld [vmem:[#allocation146_spill] sm:$0xff]  ;;  %v6338_v22 = vld [vmem:[#allocation148_spill] sm:$0xff] }
 0x8e1   :  { %3609 = vtanh.f32 %v5171_v31  ;;  %v6358_v31 = vld [vmem:[#allocation75_spill] sm:$0xff] }
 0x8e2   :  { %3611 = vrcp.f32 %v2579_v62  ;;  %v6341_v62 = vld [vmem:[#allocation151_spill] sm:$0xff] }
 0x8e3   :  { %3613 = vrcp.f32 %v2608_v15  ;;  %v6343_v15 = vld [vmem:[#allocation153_spill] sm:$0xff] }
 0x8eb   :  { %v3604_v1 = vpop.eup %3603 }
 0x8ec   :  { %v3606_v44 = vpop.eup %3605 }
 0x8ed   :  { %v3608_v9 = vpop.eup %3607  ;;  %v2612_v60 = vmul.f32 %v3606_v44, %v3604_v1  ;;  %v6339_v1 = vld [vmem:[#allocation149_spill] sm:$0xff]  ;;  %v6340_v44 = vld [vmem:[#allocation150_spill] sm:$0xff] }
 0x8ee   :  { %v2611_v57 = vmul.f32 %v3608_v9, %v5029_v2  ;;  %v3610_v51 = vpop.eup %3609  ;;  %v6333_v2 = vld [vmem:[#allocation143_spill] sm:$0xff]  ;;  %v6342_v9 = vld [vmem:[#allocation152_spill] sm:$0xff] }
 0x8ef   :  { %v3612_v55 = vpop.eup %3611 }
 0x8f0   :  { %v5179_v25 = vadd.f32 %v2612_v60, %v2611_v57  ;;  %v3614_v52 = vpop.eup %3613  ;;  %v2586_v5 = vmul.f32 %v3612_v55, %v3610_v51  ;;  %v6344_v60 = vld [vmem:[#allocation154_spill] sm:$0xff]  ;;  %v6345_v57 = vld [vmem:[#allocation155_spill] sm:$0xff]  ;;  %v6346_v51 = vld [vmem:[#allocation156_spill] sm:$0xff] }
 0x8f1   :  { %v6347_v55 = vld [vmem:[#allocation157_spill] sm:$0xff] }
 0x8f2   :  { %6332 = vst [vmem:[#allocation78_spill] sm:$0xff] %v5179_v25  ;;  %3615 = vtanh.f32 %v5179_v25  ;;  %v5182_v24 = vpack.c.bf16 %v2586_v5, %v2586_v5  ;;  %v6350_v5 = vld [vmem:[#allocation160_spill] sm:$0xff]  ;;  %v6353_v25 = vld [vmem:[#allocation163_spill] sm:$0xff] }
 0x8ff   :  { %v3616_v49 = vpop.eup %3615 }
 0x900   :  { %v2615_v33 = vmul.f32 %v3616_v49, %v3614_v52  ;;  %v6348_v52 = vld [vmem:[#allocation158_spill] sm:$0xff]  ;;  %v6349_v49 = vld [vmem:[#allocation159_spill] sm:$0xff] }
 0x902   :  { %v2616_v61 = vpack.c.bf16 %v2615_v33, %v2615_v33  ;;  %v6351_v33 = vld [vmem:[#allocation161_spill] sm:$0xff] }
 0x904   :  { %2649 = vmatprep.mubr.bf16.mxu0 %v2616_v61  ;;  %2690 = vmatprep.mubr.bf16.mxu1 %v2616_v61 }
 0x905   :  { %2650 = vmatmul.mubr.bf16.vlgmr.msra.gmra.mxu0 %v5182_v24  ;;  %2691 = vmatmul.mubr.bf16.vlgmr.msra.gmra.mxu1 %v5182_v24 }
 0x906   :  { %2700 = vmatpush1.bf16.msra.mxu0 %v4023_v54  ;;  %2741 = vmatpush1.bf16.msra.mxu1 %v5861_v0 }
 0x907   :  { %2731 = vmatprep.mubr.bf16.mxu0 %v2616_v61  ;;  %2772 = vmatprep.mubr.bf16.mxu1 %v2616_v61  ;;  %v6352_v61 = vld [vmem:[#allocation162_spill] sm:$0xff] }
 0x908   :  { %2701 = vmatprep.subr.bf16.mxu0 %v5862_v17  ;;  %2742 = vmatprep.subr.bf16.mxu1 %v5863_v39 }
 0x90a   :  { %2702 = vmatpush1.bf16.msra.mxu0 %v5864_v30  ;;  %2743 = vmatpush1.bf16.msra.mxu1 %v5865_v4 }
 0x90b   :  { %2703 = vmatprep.subr.bf16.mxu0 %v5952_v38  ;;  %2744 = vmatprep.subr.bf16.mxu1 %v5953_v40 }
 0x90e   :  { %2704 = vmatpush1.bf16.msra.mxu0 %v5954_v16  ;;  %2745 = vmatpush1.bf16.msra.mxu1 %v5955_v12 }
 0x90f   :  { %2705 = vmatprep.subr.bf16.mxu0 %v5956_v28  ;;  %2746 = vmatprep.subr.bf16.mxu1 %v5957_v34 }
 0x912   :  { %2706 = vmatpush1.bf16.msra.mxu0 %v5958_v42  ;;  %2747 = vmatpush1.bf16.msra.mxu1 %v5959_v11 }
 0x913   :  { %2707 = vmatprep.subr.bf16.mxu0 %v6046_v19  ;;  %2748 = vmatprep.subr.bf16.mxu1 %v6047_v41 }
 0x916   :  { %2708 = vmatpush1.bf16.msra.mxu0 %v6048_v59  ;;  %2749 = vmatpush1.bf16.msra.mxu1 %v6049_v58 }
 0x917   :  { %2709 = vmatprep.subr.bf16.mxu0 %v6050_v63  ;;  %2750 = vmatprep.subr.bf16.mxu1 %v6051_v47 }
 0x91a   :  { %2710 = vmatpush1.bf16.msra.mxu0 %v6052_v8  ;;  %2751 = vmatpush1.bf16.msra.mxu1 %v6053_v48 }
 0x91b   :  { %2711 = vmatprep.subr.bf16.mxu0 %v6054_v46  ;;  %2752 = vmatprep.subr.bf16.mxu1 %v6055_v50 }
 0x91e   :  { %2712 = vmatpush1.bf16.msra.mxu0 %v6056_v23  ;;  %2753 = vmatpush1.bf16.msra.mxu1 %v6057_v29 }
 0x91f   :  { %2713 = vmatprep.subr.bf16.mxu0 %v5972_v32  ;;  %2754 = vmatprep.subr.bf16.mxu1 %v5973_v18 }
 0x922   :  { %2714 = vmatpush1.bf16.msra.mxu0 %v5974_v45  ;;  %2755 = vmatpush1.bf16.msra.mxu1 %v6058_v37 }
 0x923   :  { %2715 = vmatprep.subr.bf16.mxu0 %v6059_v3  ;;  %2756 = vmatprep.subr.bf16.mxu1 %v5977_v13 }
 0x926   :  { %2716 = vmatpush2.bf16.msra.mxu0 %v5978_v26  ;;  %2757 = vmatpush2.bf16.msra.mxu1 %v5979_v27 }
 0x927   :  { %2717 = vmatprep.subr.bf16.mxu0 %v5980_v35  ;;  %2758 = vmatprep.subr.bf16.mxu1 %v5981_v36 }
 0x92a   :  { %2718 = vmatpush2.bf16.msra.mxu0 %v5982_v10  ;;  %2759 = vmatpush2.bf16.msra.mxu1 %v6333_v2 }
 0x92b   :  { %2719 = vmatprep.subr.bf16.mxu0 %v6334_v43  ;;  %2760 = vmatprep.subr.bf16.mxu1 %v6335_v7 }
 0x92e   :  { %2720 = vmatpush2.bf16.msra.mxu0 %v6336_v53  ;;  %2761 = vmatpush2.bf16.msra.mxu1 %v6337_v21 }
 0x92f   :  { %2721 = vmatprep.subr.bf16.mxu0 %v6338_v22  ;;  %2762 = vmatprep.subr.bf16.mxu1 %v6339_v1 }
 0x932   :  { %2722 = vmatpush2.bf16.msra.mxu0 %v6340_v44  ;;  %2763 = vmatpush2.bf16.msra.mxu1 %v6341_v62 }
 0x933   :  { %2723 = vmatprep.subr.bf16.mxu0 %v6342_v9  ;;  %2764 = vmatprep.subr.bf16.mxu1 %v6343_v15 }
 0x936   :  { %2724 = vmatpush2.bf16.msra.mxu0 %v6344_v60  ;;  %2765 = vmatpush2.bf16.msra.mxu1 %v6345_v57 }
 0x937   :  { %2725 = vmatprep.subr.bf16.mxu0 %v6346_v51  ;;  %2766 = vmatprep.subr.bf16.mxu1 %v6347_v55 }
 0x93a   :  { %2726 = vmatpush2.bf16.msra.mxu0 %v6348_v52  ;;  %2767 = vmatpush2.bf16.msra.mxu1 %v6349_v49  ;;  %v6359_v52 = vld [vmem:[#allocation76_spill] sm:$0xff] }
 0x93b   :  { %2727 = vmatprep.subr.bf16.mxu0 %v6350_v5  ;;  %2768 = vmatprep.subr.bf16.mxu1 %v6351_v33 }
 0x93e   :  { %2728 = vmatpush2.bf16.msra.mxu0 %v6352_v61  ;;  %2769 = vmatpush2.bf16.msra.mxu1 %v6353_v25 }
 0x93f   :  { %2729 = vmatprep.subr.bf16.mxu0 %v6354_v14  ;;  %2770 = vmatprep.subr.bf16.mxu1 %v6355_v6 }
 0x942   :  { %2730 = vmatpush2.bf16.msra.mxu0 %v6356_v56  ;;  %2771 = vmatpush2.bf16.msra.mxu1 %v6357_v20 }
 0x943   :  { %2839 = vmatprep.subr.bf16.mxu0 %v6358_v31  ;;  %2880 = vmatprep.subr.bf16.mxu1 %v6359_v52 }
 0x945   :  { %2732 = vmatmul.mubr.bf16.vlgmr.msra.gmra.mxu0 %v5182_v24  ;;  %2773 = vmatmul.mubr.bf16.vlgmr.msra.gmra.mxu1 %v5182_v24 }
 0x946   :  { %2840 = vmatpush1.bf16.msra.mxu0 %v4023_v54  ;;  %2881 = vmatpush1.bf16.msra.mxu1 %v5861_v0  ;;  %v6360_v54 = vld [vmem:[#allocation158_spill] sm:$0xff] }
 0x947   :  { %2841 = vmatprep.subr.bf16.mxu0 %v5862_v17  ;;  %2882 = vmatprep.subr.bf16.mxu1 %v5863_v39  ;;  %v6361_v39 = vld [vmem:[#allocation79_spill] sm:$0xff] }
 0x94a   :  { %2842 = vmatpush1.bf16.msra.mxu0 %v5864_v30  ;;  %2883 = vmatpush1.bf16.msra.mxu1 %v5865_v4  ;;  %v6362_v30 = vld [vmem:[#allocation168_spill] sm:$0xff] }
 0x94b   :  { %2843 = vmatprep.subr.bf16.mxu0 %v5952_v38  ;;  %2884 = vmatprep.subr.bf16.mxu1 %v5953_v40  ;;  %v395_v4 = vadd.f32 %v6362_v30, %v6361_v39  ;;  %v6363_v38 = vld [vmem:[#allocation80_spill] sm:$0xff]  ;;  %v6364_v40 = vld [vmem:[#allocation169_spill] sm:$0xff] }
 0x94e   :  { %2844 = vmatpush1.bf16.msra.mxu0 %v5954_v16  ;;  %2885 = vmatpush1.bf16.msra.mxu1 %v5955_v12  ;;  %v468_v16 = vadd.f32 %v6364_v40, %v6363_v38  ;;  %v6365_v12 = vld [vmem:[#allocation105_spill] sm:$0xff] }
 0x94f   :  { %2845 = vmatprep.subr.bf16.mxu0 %v5956_v28  ;;  %2886 = vmatprep.subr.bf16.mxu1 %v5957_v34  ;;  %v6366_v34 = vld [vmem:[#allocation106_spill] sm:$0xff] }
 0x952   :  { %2846 = vmatpush1.bf16.msra.mxu0 %v5958_v42  ;;  %2887 = vmatpush1.bf16.msra.mxu1 %v5959_v11 }
 0x953   :  { %2847 = vmatprep.subr.bf16.mxu0 %v6046_v19  ;;  %2888 = vmatprep.subr.bf16.mxu1 %v6047_v41 }
 0x956   :  { %2848 = vmatpush1.bf16.msra.mxu0 %v6048_v59  ;;  %2889 = vmatpush1.bf16.msra.mxu1 %v6049_v58 }
 0x957   :  { %2849 = vmatprep.subr.bf16.mxu0 %v6050_v63  ;;  %2890 = vmatprep.subr.bf16.mxu1 %v6051_v47 }
 0x95a   :  { %2850 = vmatpush1.bf16.msra.mxu0 %v6052_v8  ;;  %2891 = vmatpush1.bf16.msra.mxu1 %v6053_v48  ;;  %v6367_v48 = vld [vmem:[#allocation107_spill] sm:$0xff] }
 0x95b   :  { %2851 = vmatprep.subr.bf16.mxu0 %v6054_v46  ;;  %2892 = vmatprep.subr.bf16.mxu1 %v6055_v50 }
 0x95e   :  { %2852 = vmatpush1.bf16.msra.mxu0 %v6056_v23  ;;  %2893 = vmatpush1.bf16.msra.mxu1 %v6057_v29 }
 0x95f   :  { %2853 = vmatprep.subr.bf16.mxu0 %v5972_v32  ;;  %2894 = vmatprep.subr.bf16.mxu1 %v5973_v18 }
 0x962   :  { %2854 = vmatpush1.bf16.msra.mxu0 %v5974_v45  ;;  %2895 = vmatpush1.bf16.msra.mxu1 %v6058_v37 }
 0x963   :  { %2855 = vmatprep.subr.bf16.mxu0 %v6059_v3  ;;  %2896 = vmatprep.subr.bf16.mxu1 %v5977_v13 }
 0x966   :  { %2856 = vmatpush2.bf16.msra.mxu0 %v5978_v26  ;;  %2897 = vmatpush2.bf16.msra.mxu1 %v5979_v27 }
 0x967   :  { %2857 = vmatprep.subr.bf16.mxu0 %v5980_v35  ;;  %2898 = vmatprep.subr.bf16.mxu1 %v5981_v36 }
 0x96a   :  { %2858 = vmatpush2.bf16.msra.mxu0 %v5982_v10  ;;  %2899 = vmatpush2.bf16.msra.mxu1 %v6333_v2 }
 0x96b   :  { %2859 = vmatprep.subr.bf16.mxu0 %v6334_v43  ;;  %2900 = vmatprep.subr.bf16.mxu1 %v6335_v7 }
 0x96e   :  { %2860 = vmatpush2.bf16.msra.mxu0 %v6336_v53  ;;  %2901 = vmatpush2.bf16.msra.mxu1 %v6337_v21  ;;  %v6369_v53 = vld [vmem:[#allocation82_spill] sm:$0xff] }
 0x96f   :  { %2861 = vmatprep.subr.bf16.mxu0 %v6338_v22  ;;  %2902 = vmatprep.subr.bf16.mxu1 %v6339_v1 }
 0x972   :  { %2862 = vmatpush2.bf16.msra.mxu0 %v6340_v44  ;;  %2903 = vmatpush2.bf16.msra.mxu1 %v6341_v62 }
 0x973   :  { %2863 = vmatprep.subr.bf16.mxu0 %v6342_v9  ;;  %2904 = vmatprep.subr.bf16.mxu1 %v6343_v15  ;;  %v6370_v15 = vld [vmem:[#allocation83_spill] sm:$0xff] }
 0x976   :  { %2864 = vmatpush2.bf16.msra.mxu0 %v6344_v60  ;;  %2905 = vmatpush2.bf16.msra.mxu1 %v6345_v57 }
 0x977   :  { %2865 = vmatprep.subr.bf16.mxu0 %v6346_v51  ;;  %2906 = vmatprep.subr.bf16.mxu1 %v6347_v55  ;;  %v6371_v55 = vld [vmem:[#allocation84_spill] sm:$0xff] }
 0x97a   :  { %2866 = vmatpush2.bf16.msra.mxu0 %v6360_v54  ;;  %2907 = vmatpush2.bf16.msra.mxu1 %v6349_v49 }
 0x97b   :  { %2867 = vmatprep.subr.bf16.mxu0 %v6350_v5  ;;  %2908 = vmatprep.subr.bf16.mxu1 %v6351_v33 }
 0x97e   :  { %2868 = vmatpush2.bf16.msra.mxu0 %v6352_v61  ;;  %2909 = vmatpush2.bf16.msra.mxu1 %v6353_v25  ;;  %v6368_v25 = vld [vmem:[#allocation81_spill] sm:$0xff] }
 0x97f   :  { %2869 = vmatprep.subr.bf16.mxu0 %v6354_v14  ;;  %2910 = vmatprep.subr.bf16.mxu1 %v6355_v6 }
 0x982   :  { %2870 = vmatpush2.bf16.msra.mxu0 %v6356_v56  ;;  %2911 = vmatpush2.bf16.msra.mxu1 %v6357_v20 }
 0x9c5   :  { %v2651_v0 = vpop.f32.mrf.mxu0  ;;  %v2692_v17 = vpop.f32.mrf.mxu1 }
 0x9c6   :  { %v2781_v28 = vadd.f32 %v2651_v0, %v6365_v12  ;;  %v2783_v42 = vadd.f32 %v2692_v17, %v6366_v34 }
 0x9c7   :  { %v2653_v11 = vpop.f32.mrf.mxu0  ;;  %v2694_v14 = vpop.f32.mrf.mxu1 }
 0x9c8   :  { %v3293_v10 = vmul.f32 -1.442695, %v2781_v28  ;;  %v2782_v6 = vadd.f32 %v2653_v11, %v395_v4  ;;  %v2784_v32 = vadd.f32 %v2694_v14, %v468_v16  ;;  %v6372_v4 = vld [vmem:[#allocation78_spill] sm:$0xff]  ;;  %v3401_v11 = vld [vmem:[%s5369_s5 + $0x38] sm:$0xff]   ;;  %v3739_v14 = vmov 0.0  }
 0x9c9   :  { %v2655_v56 = vpop.f32.mrf.mxu0  ;;  %v2696_v18 = vpop.f32.mrf.mxu1  ;;  %3320 = vmatprep.subr.bf16.mxu0 %v3739_v14 }
 0x9ca   :  { %3617 = vpow2.f32 %v3293_v10  ;;  %v3294_v20 = vmul.f32 -1.442695, %v2782_v6  ;;  %v3295_v26 = vmul.f32 -1.442695, %v2784_v32  ;;  %v3402_v10 = vld [vmem:[%s5369_s5 + $0x30] sm:$0xff]   ;;  %v3403_v6 = vld [vmem:[%s5369_s5 + $0x28] sm:$0xff]  }
 0x9cb   :  { %v2656_v45 = vpop.f32.mrf.mxu0  ;;  %v2697_v13 = vpop.f32.mrf.mxu1  ;;  %v3404_v32 = vld [vmem:[%s5369_s5 + $0x20] sm:$0xff]   ;;  %v3405_v56 = vld [vmem:[%s5369_s5 + $0x18] sm:$0xff]   ;;  %v3406_v18 = vld [vmem:[%s5369_s5 + $0x10] sm:$0xff]  }
 0x9cc   :  { %3619 = vpow2.f32 %v3294_v20  ;;  %v3407_v20 = vld [vmem:[%s5369_s5 + $0x8] sm:$0xff]   ;;  %v3408_v45 = vld [vmem:[%s5369_s5] sm:$0xff]  }
 0x9cd   :  { %3621 = vtanh.f32 %v2783_v42 }
 0x9ce   :  { %3623 = vpow2.f32 %v3295_v26 }
 0x9d7   :  { %v3618_v27 = vpop.eup %3617 }
 0x9d8   :  { %v2788_v35 = vadd.f32 1.0, %v3618_v27 }
 0x9d9   :  { %v3620_v36 = vpop.eup %3619 }
 0x9da   :  { %3625 = vrcp.f32 %v2788_v35  ;;  %v2794_v19 = vadd.f32 1.0, %v3620_v36  ;;  %v3622_v41 = vpop.eup %3621 }
 0x9db   :  { %v3624_v59 = vpop.eup %3623 }
 0x9dc   :  { %3627 = vrcp.f32 %v2794_v19  ;;  %v2801_v8 = vadd.f32 1.0, %v3624_v59 }
 0x9de   :  { %3629 = vrcp.f32 %v2801_v8 }
 0x9e7   :  { %v3626_v58 = vpop.eup %3625 }
 0x9e8   :  { %v2805_v63 = vmul.f32 %v3626_v58, %v3622_v41 }
 0x9e9   :  { %v3628_v47 = vpop.eup %3627 }
 0x9ea   :  { %v2804_v46 = vmul.f32 %v3628_v47, %v6367_v48 }
 0x9eb   :  { %v3630_v23 = vpop.eup %3629 }
 0x9ec   :  { %v2806_v50 = vadd.f32 %v2805_v63, %v2804_v46 }
 0x9ee   :  { %3631 = vtanh.f32 %v2806_v50 }
 0x9fb   :  { %v3632_v29 = vpop.eup %3631 }
 0x9fc   :  { %v2808_v37 = vmul.f32 %v3632_v29, %v3630_v23 }
 0x9fe   :  { %v2809_v42 = vpack.c.bf16 %v2808_v37, %v2808_v37 }
 0xa05   :  { %v2733_v3 = vpop.f32.mrf.mxu0  ;;  %v2774_v31 = vpop.f32.mrf.mxu1 }
 0xa06   :  { %v2810_v24 = vadd.f32 %v2733_v3, %v6368_v25  ;;  %v2812_v52 = vadd.f32 %v2774_v31, %v6371_v55 }
 0xa07   :  { %v2735_v2 = vpop.f32.mrf.mxu0  ;;  %v2776_v43 = vpop.f32.mrf.mxu1 }
 0xa08   :  { %v3296_v7 = vmul.f32 -1.442695, %v2810_v24  ;;  %v2811_v21 = vadd.f32 %v2735_v2, %v6369_v53  ;;  %v2813_v60 = vadd.f32 %v2776_v43, %v6370_v15 }
 0xa09   :  { %v2737_v22 = vpop.f32.mrf.mxu0  ;;  %v2778_v1 = vpop.f32.mrf.mxu1 }
 0xa0a   :  { %3633 = vpow2.f32 %v3296_v7  ;;  %v3297_v44 = vmul.f32 -1.442695, %v2811_v21  ;;  %v3298_v57 = vmul.f32 -1.442695, %v2813_v60 }
 0xa0b   :  { %v2738_v62 = vpop.f32.mrf.mxu0  ;;  %v2779_v9 = vpop.f32.mrf.mxu1 }
 0xa0c   :  { %3635 = vpow2.f32 %v3297_v44  ;;  %v3302_v9 = vld [vmem:[%s5370_s6] ss:$0 sm:$0xff] }
 0xa0d   :  { %3637 = vpow2.f32 %v3298_v57 }
 0xa17   :  { %v3634_v51 = vpop.eup %3633 }
 0xa18   :  { %v2817_v49 = vadd.f32 1.0, %v3634_v51 }
 0xa19   :  { %v3636_v5 = vpop.eup %3635 }
 0xa1a   :  { %3639 = vrcp.f32 %v2817_v49  ;;  %v2823_v33 = vadd.f32 1.0, %v3636_v5  ;;  %v3638_v61 = vpop.eup %3637 }
 0xa1b   :  { %3641 = vtanh.f32 %v2812_v52  ;;  %v2830_v39 = vadd.f32 1.0, %v3638_v61 }
 0xa1c   :  { %3643 = vrcp.f32 %v2823_v33 }
 0xa1d   :  { %3645 = vrcp.f32 %v2830_v39 }
 0xa27   :  { %v3640_v54 = vpop.eup %3639 }
 0xa28   :  { %v3642_v0 = vpop.eup %3641 }
 0xa29   :  { %v3644_v17 = vpop.eup %3643  ;;  %v2834_v30 = vmul.f32 %v3642_v0, %v3640_v54 }
 0xa2a   :  { %v2833_v38 = vmul.f32 %v3644_v17, %v6372_v4  ;;  %v3646_v16 = vpop.eup %3645 }
 0xa2c   :  { %v5326_v40 = vadd.f32 %v2834_v30, %v2833_v38 }
 0xa2e   :  { %3647 = vtanh.f32 %v5326_v40 }
 0xa3b   :  { %v3648_v12 = vpop.eup %3647 }
 0xa3c   :  { %v2837_v28 = vmul.f32 %v3648_v12, %v3646_v16 }
 0xa3e   :  { %v2838_v34 = vpack.c.bf16 %v2837_v28, %v2837_v28 }
 0xa40   :  { %2871 = vmatprep.mubr.bf16.mxu0 %v2838_v34  ;;  %2912 = vmatprep.mubr.bf16.mxu1 %v2838_v34 }
 0xa41   :  { %2872 = vmatmul.mubr.bf16.vlgmr.msra.gmra.mxu0 %v2809_v42  ;;  %2913 = vmatmul.mubr.bf16.vlgmr.msra.gmra.mxu1 %v2809_v42 }
 0xa42   :  { %3321 = vmatpush3.bf16.msra.mxu0 %v3401_v11  ;;  %3336 = vmatprep.mubr.msk.bf16.mxu0 %vm3740_vm12, %v3739_v14 }
 0xa43   :  { %3322 = vmatprep.subr.bf16.mxu0 %v3739_v14 }
 0xa46   :  { %3323 = vmatpush3.bf16.msra.mxu0 %v3402_v10 }
 0xa47   :  { %3324 = vmatprep.subr.bf16.mxu0 %v3739_v14 }
 0xa4a   :  { %3325 = vmatpush3.bf16.msra.mxu0 %v3403_v6 }
 0xa4b   :  { %3326 = vmatprep.subr.bf16.mxu0 %v3739_v14 }
 0xa4e   :  { %3327 = vmatpush3.bf16.msra.mxu0 %v3404_v32 }
 0xa4f   :  { %3328 = vmatprep.subr.bf16.mxu0 %v3739_v14 }
 0xa52   :  { %3329 = vmatpush3.bf16.msra.mxu0 %v3405_v56 }
 0xa53   :  { %3330 = vmatprep.subr.bf16.mxu0 %v3739_v14 }
 0xa56   :  { %3331 = vmatpush3.bf16.msra.mxu0 %v3406_v18 }
 0xa57   :  { %3332 = vmatprep.subr.bf16.mxu0 %v3739_v14 }
 0xa5a   :  { %3333 = vmatpush3.bf16.msra.mxu0 %v3407_v20 }
 0xa5b   :  { %3334 = vmatprep.subr.bf16.mxu0 %v3739_v14 }
 0xa5e   :  { %3335 = vmatpush3.bf16.msra.mxu0 %v3408_v45 }
 0xb01   :  { %v2873_v13 = vpop.f32.mrf.mxu0  ;;  %v2914_v26 = vpop.f32.mrf.mxu1 }
 0xb02   :  { %v2921_v27 = vadd.f32 %v2873_v13, %v6368_v25  ;;  %v2923_v23 = vadd.f32 %v2914_v26, %v6371_v55 }
 0xb03   :  { %v2875_v35 = vpop.f32.mrf.mxu0  ;;  %v2916_v36 = vpop.f32.mrf.mxu1 }
 0xb04   :  { %v3299_v19 = vmul.f32 -1.442695, %v2921_v27  ;;  %v2922_v41 = vadd.f32 %v2875_v35, %v6369_v53  ;;  %v2924_v48 = vadd.f32 %v2916_v36, %v6370_v15 }
 0xb05   :  { %v2877_v59 = vpop.f32.mrf.mxu0  ;;  %v2918_v58 = vpop.f32.mrf.mxu1 }
 0xb06   :  { %3649 = vpow2.f32 %v3299_v19  ;;  %v3300_v63 = vmul.f32 -1.442695, %v2922_v41  ;;  %v3301_v46 = vmul.f32 -1.442695, %v2924_v48 }
 0xb07   :  { %v2878_v47 = vpop.f32.mrf.mxu0  ;;  %v2919_v8 = vpop.f32.mrf.mxu1 }
 0xb08   :  { %3651 = vpow2.f32 %v3300_v63 }
 0xb09   :  { %3653 = vpow2.f32 %v3301_v46 }
 0xb13   :  { %v3650_v50 = vpop.eup %3649 }
 0xb14   :  { %v2928_v29 = vadd.f32 1.0, %v3650_v50 }
 0xb15   :  { %v3652_v37 = vpop.eup %3651 }
 0xb16   :  { %3655 = vrcp.f32 %v2928_v29  ;;  %v2934_v3 = vadd.f32 1.0, %v3652_v37  ;;  %v3654_v31 = vpop.eup %3653 }
 0xb17   :  { %3657 = vtanh.f32 %v2923_v23  ;;  %v2941_v43 = vadd.f32 1.0, %v3654_v31 }
 0xb18   :  { %3659 = vrcp.f32 %v2934_v3 }
 0xb19   :  { %3661 = vrcp.f32 %v2941_v43 }
 0xb23   :  { %v3656_v25 = vpop.eup %3655 }
 0xb24   :  { %v3658_v24 = vpop.eup %3657 }
 0xb25   :  { %v3660_v2 = vpop.eup %3659  ;;  %v2945_v7 = vmul.f32 %v3658_v24, %v3656_v25 }
 0xb26   :  { %v2944_v53 = vmul.f32 %v3660_v2, %v5326_v40  ;;  %v3662_v22 = vpop.eup %3661 }
 0xb28   :  { %v2946_v21 = vadd.f32 %v2945_v7, %v2944_v53 }
 0xb2a   :  { %3663 = vtanh.f32 %v2946_v21 }
 0xb37   :  { %v3664_v1 = vpop.eup %3663 }
 0xb38   :  { %v2948_v44 = vmul.f32 %v3664_v1, %v3662_v22 }
 0xb3a   :  { %v2949_v62 = vpack.c.bf16 %v2948_v44, %v2948_v44 }
 0xb3c   :  { %3337 = vmatmul.mubr.bf16.vlgmr.msra.gmra.mxu0 %v2949_v62 }
 0xbfc   :  { %v3055_v15 = vpop.f32.mrf.mxu0 }
 0xbfd   :  { %v3056_v60 = vadd.f32 %v3302_v9, %v3055_v15 }
 0xbfe   :  { %v3338_v57 = vpop.f32.mrf.mxu0 }
 0xbff   :  { %3061 = vst [vmem:[#allocation7] sm:$0xff] %v3056_v60 }
 0xc00   :  { %v3058_v51 = vpop.f32.mrf.mxu0 }
 0xc01   :  { %3716 = shalt.err (!%p3713_p0)
}
 0xc02   :  { %3071 = dma.vmem_to_hbm [thread:$0]  %s3069_s23, 128, %s5371_s7, [#allocation4]   ;;  %v3339_v55 = vpop.f32.mrf.mxu0 }
 0xc03   :  { %3729 = dma.done.wait [#allocation4], 128  }
 0xc04   :  { %3730 = vsyncadd [#allocation4], 4294967168 }
 0xc05   :  { %3075 = vsyncpa [#allocation3], 1 }
 0xc06   :  { %3076 = vsyncpa [#allocation6], 1 }
 0xc07   :  { %3077 = vsyncpa [#allocation4], 1 }

</bundles_post_ra>
